<compile_context>
chip_gen: v6e
topology: v6e:2x2x1
jax: 0.10.0
libtpu: 0.0.40
codegen_flags: <defaults>
</compile_context>

<pallas_src>
import functools

import jax
import jax.numpy as jnp
from jax.experimental import pallas as pl
from jax.experimental.pallas import tpu as pltpu

EPS = 1e-5


# ----------------------------------------------------------------------------
# Small helpers
# ----------------------------------------------------------------------------
def _choose_tile(total, target):
    """Largest divisor of `total` <= target that is a multiple of 8; falls back
    to `total` itself (guarded by the caller)."""
    for cand in range(min(total, target), 0, -1):
        if total % cand == 0 and cand % 8 == 0:
            return cand
    return total


def _const_spec(arr):
    """Full-array BlockSpec with a constant index map: DMA'd once, VMEM-resident."""
    nd = arr.ndim
    return pl.BlockSpec(arr.shape, lambda *_: (0,) * nd)


def _vmem_budget(tr, act_bytes):
    """Scoped-VMEM budget derived from the chosen row tile (review item:
    derive vmem_limit_bytes from the tile instead of a fixed constant)."""
    stream_in = 2 * tr * 256 * act_bytes          # widest double-buffered input tile
    stream_out = 2 * tr * 256 * act_bytes         # widest double-buffered output tile
    temps = 3 * tr * 512 * 4                      # f32 body temporaries (h, y, y*y)
    resident = 4 * (256 * 512 + 128 * 256 + 128 * 128 + 16 * 128) + (2 << 20)
    est = 2 * (stream_in + stream_out + temps) + resident
    return int(min(max(est, 32 << 20), 64 << 20))


def _conv1_rows(x, w, b):
    """conv1 (1x1, tiny K = input_dim) as broadcast FMAs on the VPU
    (a K=3 MXU matmul would be starved)."""
    x = x.astype(jnp.float32)
    y = x[:, 0:1] * w[0:1, :] + b
    for c in range(1, w.shape[0]):
        y = y + x[:, c:c + 1] * w[c:c + 1, :]
    return y


def _fold_bn(s, q, g, be, count):
    """Fold training-mode BatchNorm (biased variance) into per-channel
    scale/shift.  Tiny XLA op between pallas_calls (hoisted out of the grid)."""
    tot = jnp.sum(s, axis=0)                      # (1, C) sum over megacore splits
    totq = jnp.sum(q, axis=0)
    mean = tot / count
    var = jnp.maximum(totq / count - mean * mean, 0.0)
    scale = g * jax.lax.rsqrt(var + EPS)
    shift = be - mean * scale
    return scale, shift


# ----------------------------------------------------------------------------
# Kernels
# ----------------------------------------------------------------------------
def _stats1_kernel(x_ref, w1_ref, b1_ref, sum_ref, sq_ref):
    """Pass 0: bn1 statistics of the (never-stored) conv1 output."""
    t = pl.program_id(1)
    h = _conv1_rows(x_ref[...], w1_ref[...], b1_ref[...])          # (tr, 128) f32
    psum = jnp.sum(h, axis=0, keepdims=True)[None]                 # (1, 1, 128)
    psq = jnp.sum(h * h, axis=0, keepdims=True)[None]

    @pl.when(t == 0)
    def _():
        sum_ref[...] = jnp.zeros(sum_ref.shape, sum_ref.dtype)
        sq_ref[...] = jnp.zeros(sq_ref.shape, sq_ref.dtype)

    sum_ref[...] += psum
    sq_ref[...] += psq


def _first_conv_kernel(x_ref, w1_ref, b1_ref, sc_ref, sh_ref, w2_ref, b2_ref,
                       y_ref, sum_ref, sq_ref):
    """Pass 1: recompute conv1 from x (3 FMAs), bn1 affine + ReLU, conv2 matmul,
    write y2 and accumulate bn2 statistics (from the stored value)."""
    t = pl.program_id(1)
    h1 = _conv1_rows(x_ref[...], w1_ref[...], b1_ref[...])
    h = jnp.maximum(h1 * sc_ref[...] + sh_ref[...], 0.0)
    y = jnp.dot(h.astype(w2_ref.dtype), w2_ref[...],
                preferred_element_type=jnp.float32) + b2_ref[...]
    y_q = y.astype(y_ref.dtype)
    y_ref[...] = y_q

    y32 = y_q.astype(jnp.float32)                 # stats of the *stored* value
    psum = jnp.sum(y32, axis=0, keepdims=True)[None]
    psq = jnp.sum(y32 * y32, axis=0, keepdims=True)[None]

    @pl.when(t == 0)
    def _():
        sum_ref[...] = jnp.zeros(sum_ref.shape, sum_ref.dtype)
        sq_ref[...] = jnp.zeros(sq_ref.shape, sq_ref.dtype)

    sum_ref[...] += psum
    sq_ref[...] += psq


def _bn_relu_conv_kernel(y_in_ref, sc_ref, sh_ref, w_ref, b_ref,
                         y_out_ref, sum_ref, sq_ref):
    """Middle pass: BN(prev, precomputed scale/shift) + ReLU + 1x1-conv matmul,
    write output and accumulate its statistics."""
    t = pl.program_id(1)
    h = jnp.maximum(y_in_ref[...].astype(jnp.float32) * sc_ref[...] + sh_ref[...], 0.0)
    y = jnp.dot(h.astype(w_ref.dtype), w_ref[...],
                preferred_element_type=jnp.float32) + b_ref[...]
    y_q = y.astype(y_out_ref.dtype)
    y_out_ref[...] = y_q

    y32 = y_q.astype(jnp.float32)
    psum = jnp.sum(y32, axis=0, keepdims=True)[None]
    psq = jnp.sum(y32 * y32, axis=0, keepdims=True)[None]

    @pl.when(t == 0)
    def _():
        sum_ref[...] = jnp.zeros(sum_ref.shape, sum_ref.dtype)
        sq_ref[...] = jnp.zeros(sq_ref.shape, sq_ref.dtype)

    sum_ref[...] += psum
    sq_ref[...] += psq


def _last_conv_pool_kernel(y_in_ref, sc_ref, sh_ref, w_ref, b_ref,
                           tmax_ref, tmin_ref, sum_ref, sq_ref):
    """Pass 3: BN3 + ReLU + conv4, but the pre-bn4 output is *not* stored:
    emit per-tile per-channel max/min (for the fused pool) and bn4 stats."""
    t = pl.program_id(1)
    h = jnp.maximum(y_in_ref[...].astype(jnp.float32) * sc_ref[...] + sh_ref[...], 0.0)
    y = jnp.dot(h.astype(w_ref.dtype), w_ref[...],
                preferred_element_type=jnp.float32) + b_ref[...]    # (tr, 512) f32

    tmax_ref[...] = jnp.max(y, axis=0, keepdims=True)[None]         # (1, 1, 512)
    tmin_ref[...] = jnp.min(y, axis=0, keepdims=True)[None]

    psum = jnp.sum(y, axis=0, keepdims=True)[None]
    psq = jnp.sum(y * y, axis=0, keepdims=True)[None]

    @pl.when(t == 0)
    def _():
        sum_ref[...] = jnp.zeros(sum_ref.shape, sum_ref.dtype)
        sq_ref[...] = jnp.zeros(sq_ref.shape, sq_ref.dtype)

    sum_ref[...] += psum
    sq_ref[...] += psq


def _heads_kernel(x_ref, w1, b1, g1, be1, w2, b2, g2, be2, w3, b3, out_ref):
    """Both FC heads fused via channel-concatenated / block-diagonal weights."""
    def linear(h, w_ref, b_ref):
        return jnp.dot(h, w_ref[...], preferred_element_type=jnp.float32) + b_ref[...]

    def bn(h, g_ref, be_ref):                     # training-mode BN over the batch
        mu = jnp.mean(h, axis=0, keepdims=True)
        var = jnp.mean((h - mu) * (h - mu), axis=0, keepdims=True)
        return (h - mu) * jax.lax.rsqrt(var + EPS) * g_ref[...] + be_ref[...]

    h = x_ref[...].astype(jnp.float32)            # (B, 512)
    h = jnp.maximum(bn(linear(h, w1, b1), g1, be1), 0.0)   # (B, 512)  [m | v]
    h = jnp.maximum(bn(linear(h, w2, b2), g2, be2), 0.0)   # (B, 256)  [m | v]
    out_ref[...] = linear(h, w3, b3)              # (B, OUTW) lane-dense


# ----------------------------------------------------------------------------
# Head-parameter fusion (BN is per-channel, so concatenating the two heads'
# channels and making layers 2/3 block-diagonal is mathematically exact).
# ----------------------------------------------------------------------------
def _pack_heads(head_params, zdim, outw):
    (wm1, bm1, gm1, bem1, wm2, bm2, gm2, bem2, wm3, bm3,
     wv1, bv1, gv1, bev1, wv2, bv2, gv2, bev2, wv3, bv3) = head_params

    def cat(a, b):
        return jnp.concatenate([a, b], axis=1)

    def blockdiag(a, b):
        za = jnp.zeros((a.shape[0], b.shape[1]), a.dtype)
        zb = jnp.zeros((b.shape[0], a.shape[1]), b.dtype)
        return jnp.block([[a, za], [zb, b]])

    w1, b1, g1, be1 = cat(wm1, wv1), cat(bm1, bv1), cat(gm1, gv1), cat(bem1, bev1)
    w2, b2, g2, be2 = blockdiag(wm2, wv2), cat(bm2, bv2), cat(gm2, gv2), cat(bem2, bev2)
    w3, b3 = blockdiag(wm3, wv3), cat(bm3, bv3)
    pad = outw - w3.shape[1]
    if pad:
        w3 = jnp.concatenate([w3, jnp.zeros((w3.shape[0], pad), w3.dtype)], axis=1)
        b3 = jnp.concatenate([b3, jnp.zeros((1, pad), b3.dtype)], axis=1)
    return (w1, b1, g1, be1, w2, b2, g2, be2, w3, b3)


# ----------------------------------------------------------------------------
# Wrapper
# ----------------------------------------------------------------------------
def pointnet_encoder(x, params, zdim, *, row_tile=2048, act_dtype=jnp.float32):
    """Forward pass.  x: (B, N, input_dim).  Returns (m, v), each (B, zdim)."""
    B, N, C_in = x.shape
    R = B * N
    count = float(R)

    (w1, b1, g1, be1,
     w2, b2, g2, be2,
     w3, b3, g3, be3,
     w4, b4, g4, be4, *head_params) = params

    # Row tile is a divisor of N so a tile never straddles a batch element
    # (required by the fused max/min pooling of layer 4).
    tr = _choose_tile(N, row_tile)
    if tr % 8 != 0 and B > 1:
        # TODO(synk): pad N up to a multiple of 8 instead of rejecting it.
        raise ValueError(f"N={N} has no sublane-aligned divisor <= {row_tile}")
    tiles_per_batch = N // tr
    tiles = B * tiles_per_batch
    nsplit = 2 if (tiles % 2 == 0 and tiles >= 2) else 1   # megacore split (v7x)
    t_inner = tiles // nsplit

    act_bytes = jnp.dtype(act_dtype).itemsize
    vmem_limit = _vmem_budget(tr, act_bytes)
    grid_cp = pltpu.CompilerParams(
        dimension_semantics=("parallel", "arbitrary"),
        vmem_limit_bytes=vmem_limit)
    # NOTE: if xprof still shows exposed DMA at this tile, bump the row-tiled
    # input spec to pipeline_mode=pl.Buffered(3) rather than shrinking tiles.

    def row_spec(c):
        return pl.BlockSpec((tr, c), lambda s, t: (s * t_inner + t, 0))

    def stats_spec(c):
        return pl.BlockSpec((1, 1, c), lambda s, t: (s, 0, 0))

    def stats_shape(c):
        return jax.ShapeDtypeStruct((nsplit, 1, c), jnp.float32)

    x_flat = x.reshape(R, C_in).astype(jnp.float32)

    # ---- pass 0: bn1 statistics only (y1 is never written to HBM) ----
    s1, q1 = pl.pallas_call(
        _stats1_kernel,
        grid=(nsplit, t_inner),
        in_specs=[row_spec(C_in), _const_spec(w1), _const_spec(b1)],
        out_specs=(stats_spec(128), stats_spec(128)),
        out_shape=(stats_shape(128), stats_shape(128)),
        compiler_params=grid_cp,
    )(x_flat, w1, b1)
    sc1, sh1 = _fold_bn(s1, q1, g1, be1, count)

    # ---- pass 1: recompute conv1, bn1 + relu, conv2 -> y2 + bn2 stats ----
    y2, s2, q2 = pl.pallas_call(
        _first_conv_kernel,
        grid=(nsplit, t_inner),
        in_specs=[row_spec(C_in), _const_spec(w1), _const_spec(b1),
                  _const_spec(sc1), _const_spec(sh1),
                  _const_spec(w2), _const_spec(b2)],
        out_specs=(row_spec(128), stats_spec(128), stats_spec(128)),
        out_shape=(jax.ShapeDtypeStruct((R, 128), act_dtype),
                   stats_shape(128), stats_shape(128)),
        compiler_params=grid_cp,
    )(x_flat, w1, b1, sc1, sh1, w2.astype(act_dtype), b2)
    sc2, sh2 = _fold_bn(s2, q2, g2, be2, count)

    # ---- pass 2: bn2 + relu, conv3 -> y3 + bn3 stats ----
    y3, s3, q3 = pl.pallas_call(
        _bn_relu_conv_kernel,
        grid=(nsplit, t_inner),
        in_specs=[row_spec(128), _const_spec(sc2), _const_spec(sh2),
                  _const_spec(w3), _const_spec(b3)],
        out_specs=(row_spec(256), stats_spec(256), stats_spec(256)),
        out_shape=(jax.ShapeDtypeStruct((R, 256), act_dtype),
                   stats_shape(256), stats_shape(256)),
        compiler_params=grid_cp,
    )(y2, sc2, sh2, w3.astype(act_dtype), b3)
    sc3, sh3 = _fold_bn(s3, q3, g3, be3, count)

    # ---- pass 3: bn3 + relu, conv4 fused with max-pool (y4 never stored) ----
    tile_idx = lambda s, t: (s * t_inner + t, 0, 0)
    tmax, tmin, s4, q4 = pl.pallas_call(
        _last_conv_pool_kernel,
        grid=(nsplit, t_inner),
        in_specs=[row_spec(256), _const_spec(sc3), _const_spec(sh3),
                  _const_spec(w4), _const_spec(b4)],
        out_specs=(pl.BlockSpec((1, 1, 512), tile_idx),
                   pl.BlockSpec((1, 1, 512), tile_idx),
                   stats_spec(512), stats_spec(512)),
        out_shape=(jax.ShapeDtypeStruct((tiles, 1, 512), jnp.float32),
                   jax.ShapeDtypeStruct((tiles, 1, 512), jnp.float32),
                   stats_shape(512), stats_shape(512)),
        compiler_params=grid_cp,
    )(y3, sc3, sh3, w4.astype(act_dtype), b4)

    # ---- bn4 affine + exact global max pool (per-channel affine is monotone) ----
    sc4, sh4 = _fold_bn(s4, q4, g4, be4, count)
    gmax = jnp.max(tmax.reshape(B, tiles_per_batch, 512), axis=1)
    gmin = jnp.min(tmin.reshape(B, tiles_per_batch, 512), axis=1)
    pooled = jnp.where(sc4 >= 0.0, sc4 * gmax + sh4, sc4 * gmin + sh4)   # (B, 512)

    # ---- both FC heads in one small un-gridded kernel, packed lane-dense ----
    outw = max(128, ((2 * zdim + 127) // 128) * 128)
    packed_params = _pack_heads(head_params, zdim, outw)
    vm = pl.BlockSpec(memory_space=pltpu.MemorySpace.VMEM)
    packed = pl.pallas_call(
        _heads_kernel,
        in_specs=[vm] * (1 + len(packed_params)),
        out_specs=vm,
        out_shape=jax.ShapeDtypeStruct((B, outw), jnp.float32),
        compiler_params=pltpu.CompilerParams(vmem_limit_bytes=vmem_limit),
    )(pooled, *packed_params)

    return packed[:, :zdim], packed[:, zdim:2 * zdim]


# ----------------------------------------------------------------------------
# Parameter construction (deterministic, PyTorch-default-like shapes/inits)
# ----------------------------------------------------------------------------
def init_params(key, zdim, input_dim=3):
    dims_conv = [(input_dim, 128), (128, 128), (128, 256), (256, 512)]
    dims_fc = [(512, 256), (256, 128), (128, zdim)]
    params = []
    keys = jax.random.split(key, 32)
    ki = 0

    def lin(cin, cout):
        nonlocal ki
        bound = 1.0 / jnp.sqrt(cin)
        w = jax.random.uniform(keys[ki], (cin, cout), jnp.float32, -bound, bound)
        b = jax.random.uniform(keys[ki + 1], (1, cout), jnp.float32, -bound, bound)
        ki += 2
        return w, b

    def bn(c):
        return jnp.ones((1, c), jnp.float32), jnp.zeros((1, c), jnp.float32)

    for cin, cout in dims_conv:                    # conv1..4 + bn1..4
        w, b = lin(cin, cout)
        g, be = bn(cout)
        params += [w, b, g, be]
    for _head in range(2):                         # mean head, then var head
        for idx, (cin, cout) in enumerate(dims_fc):
            w, b = lin(cin, cout)
            params += [w, b]
            if idx < 2:
                g, be = bn(cout)
                params += [g, be]
    return params


# ----------------------------------------------------------------------------
# Pure-JAX f32 reference (training-mode BN, biased variance) for correctness
# ----------------------------------------------------------------------------
def reference(x, params, zdim):
    B, N, C_in = x.shape
    p = list(params)

    def linear(h, w, b):
        return jnp.dot(h, w, precision=jax.lax.Precision.HIGHEST) + b

    def bn(h, g, be):
        mu = jnp.mean(h, axis=0, keepdims=True)
        var = jnp.mean((h - mu) ** 2, axis=0, keepdims=True)
        return (h - mu) / jnp.sqrt(var + EPS) * g + be

    h = x.reshape(B * N, C_in)
    i = 0
    for layer in range(4):
        w, b, g, be = p[i], p[i + 1], p[i + 2], p[i + 3]
        i += 4
        h = bn(linear(h, w, b), g, be)
        if layer < 3:
            h = jnp.maximum(h, 0.0)
    pooled = jnp.max(h.reshape(B, N, -1), axis=1)

    def head(hh, j):
        w, b, g, be = p[j], p[j + 1], p[j + 2], p[j + 3]
        hh = jnp.maximum(bn(linear(hh, w, b), g, be), 0.0)
        w, b, g, be = p[j + 4], p[j + 5], p[j + 6], p[j + 7]
        hh = jnp.maximum(bn(linear(hh, w, b), g, be), 0.0)
        w, b = p[j + 8], p[j + 9]
        return linear(hh, w, b)

    return head(pooled, 16), head(pooled, 26)


if __name__ == "__main__":
    B, N, C_IN, ZDIM = 4, 512, 3, 32

    key = jax.random.PRNGKey(0)
    kx, kp = jax.random.split(key)
    base = jax.random.normal(kx, (B, N, C_IN), jnp.float32)
    # Per-batch scale/offset so the pooled features differ across the (tiny)
    # batch: keeps the FC-head BatchNorm well-conditioned for the comparison.
    scale_b = (0.5 + jnp.arange(B, dtype=jnp.float32))[:, None, None]
    offs_b = jnp.linspace(-0.5, 0.5, B)[:, None, None]
    x = base * scale_b + offs_b
    params = init_params(kp, ZDIM, C_IN)

    # Small row tile so the toy problem still exercises multi-step grids, the
    # megacore split, the resident stat accumulators and the pool combine.
    fwd = jax.jit(functools.partial(pointnet_encoder, zdim=ZDIM,
                                    row_tile=128, act_dtype=jnp.float32))
    m, v = fwd(x, params)
    jax.block_until_ready((m, v))

    m_ref, v_ref = reference(x, params, ZDIM)
    assert m.shape == (B, ZDIM) and v.shape == (B, ZDIM)
    assert jnp.allclose(m, m_ref, rtol=2e-2, atol=2e-2), \
        float(jnp.max(jnp.abs(m - m_ref)))
    assert jnp.allclose(v, v_ref, rtol=2e-2, atol=2e-2), \
        float(jnp.max(jnp.abs(v - v_ref)))

    # bf16 intermediate-storage path (production HBM-traffic config): smoke run.
    fwd_bf16 = jax.jit(functools.partial(pointnet_encoder, zdim=ZDIM,
                                         row_tile=256, act_dtype=jnp.bfloat16))
    m2, v2 = fwd_bf16(x, params)
    jax.block_until_ready((m2, v2))
    assert m2.shape == (B, ZDIM) and v2.shape == (B, ZDIM)
    assert bool(jnp.all(jnp.isfinite(m2))) and bool(jnp.all(jnp.isfinite(v2)))

    print("KERNEL_OK")
</pallas_src>

<mosaic_0001>
module attributes {stable_mosaic.version = 11 : i64} {
  func.func @_stats1_kernel(%arg0: i32, %arg1: i32, %arg2: memref<128x3xf32, #tpu.memory_space<vmem>>, %arg3: memref<3x128xf32, #tpu.memory_space<vmem>>, %arg4: memref<1x128xf32, #tpu.memory_space<vmem>>, %arg5: memref<1x1x128xf32, #tpu.memory_space<vmem>>, %arg6: memref<1x1x128xf32, #tpu.memory_space<vmem>>) attributes {dimension_semantics = [#tpu.dimension_semantics<parallel>, #tpu.dimension_semantics<arbitrary>], iteration_bounds = array<i64: 2, 8>, scalar_prefetch = 0 : i64, scratch_operands = 0 : i64, tpu.core_type = #tpu.core_type<tc>, window_params = [{transform_indices = @transform_0, window_bounds = array<i64: 128, 3>}, {pipeline_mode = #tpu.pipeline_mode<synchronous>, transform_indices = @transform_1, window_bounds = array<i64: 3, 128>}, {pipeline_mode = #tpu.pipeline_mode<synchronous>, transform_indices = @transform_2, window_bounds = array<i64: 1, 128>}, {transform_indices = @transform_3, window_bounds = array<i64: 1, 1, 128>}, {transform_indices = @transform_4, window_bounds = array<i64: 1, 1, 128>}]} {
    %c0 = arith.constant 0 : index
    %c0_0 = arith.constant 0 : index
    %0 = vector.load %arg2[%c0, %c0_0] : memref<128x3xf32, #tpu.memory_space<vmem>>, vector<128x3xf32>
    %c0_1 = arith.constant 0 : index
    %c0_2 = arith.constant 0 : index
    %1 = vector.load %arg3[%c0_1, %c0_2] : memref<3x128xf32, #tpu.memory_space<vmem>>, vector<3x128xf32>
    %c0_3 = arith.constant 0 : index
    %c0_4 = arith.constant 0 : index
    %2 = vector.load %arg4[%c0_3, %c0_4] : memref<1x128xf32, #tpu.memory_space<vmem>>, vector<1x128xf32>
    %3 = vector.extract_strided_slice %0 {offsets = [0, 0], sizes = [128, 1], strides = [1, 1]} : vector<128x3xf32> to vector<128x1xf32>
    %4 = vector.extract_strided_slice %1 {offsets = [0, 0], sizes = [1, 128], strides = [1, 1]} : vector<3x128xf32> to vector<1x128xf32>
    %5 = vector.broadcast %3 : vector<128x1xf32> to vector<128x128xf32>
    %6 = vector.broadcast %4 : vector<1x128xf32> to vector<128x128xf32>
    %7 = arith.mulf %5, %6 : vector<128x128xf32>
    %8 = vector.broadcast %2 : vector<1x128xf32> to vector<128x128xf32>
    %9 = arith.addf %7, %8 : vector<128x128xf32>
    %10 = vector.extract_strided_slice %0 {offsets = [0, 1], sizes = [128, 1], strides = [1, 1]} : vector<128x3xf32> to vector<128x1xf32>
    %11 = vector.extract_strided_slice %1 {offsets = [1, 0], sizes = [1, 128], strides = [1, 1]} : vector<3x128xf32> to vector<1x128xf32>
    %12 = vector.broadcast %10 : vector<128x1xf32> to vector<128x128xf32>
    %13 = vector.broadcast %11 : vector<1x128xf32> to vector<128x128xf32>
    %14 = arith.mulf %12, %13 : vector<128x128xf32>
    %15 = arith.addf %9, %14 : vector<128x128xf32>
    %16 = vector.extract_strided_slice %0 {offsets = [0, 2], sizes = [128, 1], strides = [1, 1]} : vector<128x3xf32> to vector<128x1xf32>
    %17 = vector.extract_strided_slice %1 {offsets = [2, 0], sizes = [1, 128], strides = [1, 1]} : vector<3x128xf32> to vector<1x128xf32>
    %18 = vector.broadcast %16 : vector<128x1xf32> to vector<128x128xf32>
    %19 = vector.broadcast %17 : vector<1x128xf32> to vector<128x128xf32>
    %20 = arith.mulf %18, %19 : vector<128x128xf32>
    %21 = arith.addf %15, %20 : vector<128x128xf32>
    %cst = arith.constant dense<0.000000e+00> : vector<128xf32>
    %22 = vector.multi_reduction <add>, %21, %cst [0] : vector<128x128xf32> to vector<128xf32>
    %23 = vector.shape_cast %22 : vector<128xf32> to vector<1x128xf32>
    %24 = vector.shape_cast %23 : vector<1x128xf32> to vector<1x1x128xf32>
    %25 = arith.mulf %21, %21 : vector<128x128xf32>
    %cst_5 = arith.constant dense<0.000000e+00> : vector<128xf32>
    %26 = vector.multi_reduction <add>, %25, %cst_5 [0] : vector<128x128xf32> to vector<128xf32>
    %27 = vector.shape_cast %26 : vector<128xf32> to vector<1x128xf32>
    %28 = vector.shape_cast %27 : vector<1x128xf32> to vector<1x1x128xf32>
    %c0_i32 = arith.constant 0 : i32
    %29 = arith.cmpi eq, %arg1, %c0_i32 : i32
    %30 = arith.extui %29 : i1 to i32
    %c0_i32_6 = arith.constant 0 : i32
    %31 = arith.cmpi ne, %30, %c0_i32_6 : i32
    scf.if %31 {
      %cst_19 = arith.constant 0.000000e+00 : f32
      %38 = vector.broadcast %cst_19 : f32 to vector<1x1x128xf32>
      %c0_20 = arith.constant 0 : index
      %c0_21 = arith.constant 0 : index
      %c0_22 = arith.constant 0 : index
      %39 = vector.load %arg5[%c0_20, %c0_21, %c0_22] : memref<1x1x128xf32, #tpu.memory_space<vmem>>, vector<1x1x128xf32>
      tpu.vector_store %arg5[%c0_20, %c0_21, %c0_22], %38 {strides = array<i32>} : memref<1x1x128xf32, #tpu.memory_space<vmem>>, vector<1x1x128xf32>,
      %cst_23 = arith.constant 0.000000e+00 : f32
      %40 = vector.broadcast %cst_23 : f32 to vector<1x1x128xf32>
      %c0_24 = arith.constant 0 : index
      %c0_25 = arith.constant 0 : index
      %c0_26 = arith.constant 0 : index
      %41 = vector.load %arg6[%c0_24, %c0_25, %c0_26] : memref<1x1x128xf32, #tpu.memory_space<vmem>>, vector<1x1x128xf32>
      tpu.vector_store %arg6[%c0_24, %c0_25, %c0_26], %40 {strides = array<i32>} : memref<1x1x128xf32, #tpu.memory_space<vmem>>, vector<1x1x128xf32>,
    } else {
    }
    %c0_7 = arith.constant 0 : index
    %c0_8 = arith.constant 0 : index
    %c0_9 = arith.constant 0 : index
    %32 = vector.load %arg5[%c0_7, %c0_8, %c0_9] : memref<1x1x128xf32, #tpu.memory_space<vmem>>, vector<1x1x128xf32>
    %33 = arith.addf %32, %24 : vector<1x1x128xf32>
    %c0_10 = arith.constant 0 : index
    %c0_11 = arith.constant 0 : index
    %c0_12 = arith.constant 0 : index
    %34 = vector.load %arg5[%c0_10, %c0_11, %c0_12] : memref<1x1x128xf32, #tpu.memory_space<vmem>>, vector<1x1x128xf32>
    tpu.vector_store %arg5[%c0_10, %c0_11, %c0_12], %33 {strides = array<i32>} : memref<1x1x128xf32, #tpu.memory_space<vmem>>, vector<1x1x128xf32>,
    %c0_13 = arith.constant 0 : index
    %c0_14 = arith.constant 0 : index
    %c0_15 = arith.constant 0 : index
    %35 = vector.load %arg6[%c0_13, %c0_14, %c0_15] : memref<1x1x128xf32, #tpu.memory_space<vmem>>, vector<1x1x128xf32>
    %36 = arith.addf %35, %28 : vector<1x1x128xf32>
    %c0_16 = arith.constant 0 : index
    %c0_17 = arith.constant 0 : index
    %c0_18 = arith.constant 0 : index
    %37 = vector.load %arg6[%c0_16, %c0_17, %c0_18] : memref<1x1x128xf32, #tpu.memory_space<vmem>>, vector<1x1x128xf32>
    tpu.vector_store %arg6[%c0_16, %c0_17, %c0_18], %36 {strides = array<i32>} : memref<1x1x128xf32, #tpu.memory_space<vmem>>, vector<1x1x128xf32>,
    return
  }
  func.func @transform_0(%arg0: i32, %arg1: i32) -> (i32, i32) {
    %c8_i32 = arith.constant 8 : i32
    %0 = arith.muli %arg0, %c8_i32 : i32
    %1 = arith.addi %0, %arg1 : i32
    %c0_i32 = arith.constant 0 : i32
    %c0_i32_0 = arith.constant 0 : i32
    return %1, %c0_i32 : i32, i32
  }
  func.func @transform_1(%arg0: i32, %arg1: i32) -> (i32, i32) {
    %c0_i32 = arith.constant 0 : i32
    %c0_i32_0 = arith.constant 0 : i32
    %c0_i32_1 = arith.constant 0 : i32
    return %c0_i32, %c0_i32_0 : i32, i32
  }
  func.func @transform_2(%arg0: i32, %arg1: i32) -> (i32, i32) {
    %c0_i32 = arith.constant 0 : i32
    %c0_i32_0 = arith.constant 0 : i32
    %c0_i32_1 = arith.constant 0 : i32
    return %c0_i32, %c0_i32_0 : i32, i32
  }
  func.func @transform_3(%arg0: i32, %arg1: i32) -> (i32, i32, i32) {
    %c0_i32 = arith.constant 0 : i32
    %c0_i32_0 = arith.constant 0 : i32
    %c0_i32_1 = arith.constant 0 : i32
    return %arg0, %c0_i32, %c0_i32_0 : i32, i32, i32
  }
  func.func @transform_4(%arg0: i32, %arg1: i32) -> (i32, i32, i32) {
    %c0_i32 = arith.constant 0 : i32
    %c0_i32_0 = arith.constant 0 : i32
    %c0_i32_1 = arith.constant 0 : i32
    return %arg0, %c0_i32, %c0_i32_0 : i32, i32, i32
  }
}

module attributes {stable_mosaic.version = 11 : i64} {
  func.func @_bn_relu_conv_kernel(%arg0: i32, %arg1: i32, %arg2: memref<128x128xf32, #tpu.memory_space<vmem>>, %arg3: memref<1x128xf32, #tpu.memory_space<vmem>>, %arg4: memref<1x128xf32, #tpu.memory_space<vmem>>, %arg5: memref<128x256xf32, #tpu.memory_space<vmem>>, %arg6: memref<1x256xf32, #tpu.memory_space<vmem>>, %arg7: memref<128x256xf32, #tpu.memory_space<vmem>>, %arg8: memref<1x1x256xf32, #tpu.memory_space<vmem>>, %arg9: memref<1x1x256xf32, #tpu.memory_space<vmem>>) attributes {dimension_semantics = [#tpu.dimension_semantics<parallel>, #tpu.dimension_semantics<arbitrary>], iteration_bounds = array<i64: 2, 8>, scalar_prefetch = 0 : i64, scratch_operands = 0 : i64, tpu.core_type = #tpu.core_type<tc>, window_params = [{transform_indices = @transform_0, window_bounds = array<i64: 128, 128>}, {pipeline_mode = #tpu.pipeline_mode<synchronous>, transform_indices = @transform_1, window_bounds = array<i64: 1, 128>}, {pipeline_mode = #tpu.pipeline_mode<synchronous>, transform_indices = @transform_2, window_bounds = array<i64: 1, 128>}, {pipeline_mode = #tpu.pipeline_mode<synchronous>, transform_indices = @transform_3, window_bounds = array<i64: 128, 256>}, {pipeline_mode = #tpu.pipeline_mode<synchronous>, transform_indices = @transform_4, window_bounds = array<i64: 1, 256>}, {transform_indices = @transform_5, window_bounds = array<i64: 128, 256>}, {transform_indices = @transform_6, window_bounds = array<i64: 1, 1, 256>}, {transform_indices = @transform_7, window_bounds = array<i64: 1, 1, 256>}]} {
    %c0 = arith.constant 0 : index
    %c0_0 = arith.constant 0 : index
    %0 = vector.load %arg2[%c0, %c0_0] : memref<128x128xf32, #tpu.memory_space<vmem>>, vector<128x128xf32>
    %c0_1 = arith.constant 0 : index
    %c0_2 = arith.constant 0 : index
    %1 = vector.load %arg3[%c0_1, %c0_2] : memref<1x128xf32, #tpu.memory_space<vmem>>, vector<1x128xf32>
    %2 = vector.broadcast %1 : vector<1x128xf32> to vector<128x128xf32>
    %3 = arith.mulf %0, %2 : vector<128x128xf32>
    %c0_3 = arith.constant 0 : index
    %c0_4 = arith.constant 0 : index
    %4 = vector.load %arg4[%c0_3, %c0_4] : memref<1x128xf32, #tpu.memory_space<vmem>>, vector<1x128xf32>
    %5 = vector.broadcast %4 : vector<1x128xf32> to vector<128x128xf32>
    %6 = arith.addf %3, %5 : vector<128x128xf32>
    %cst = arith.constant 0.000000e+00 : f32
    %7 = vector.broadcast %cst : f32 to vector<128x128xf32>
    %8 = arith.maximumf %6, %7 : vector<128x128xf32>
    %c0_5 = arith.constant 0 : index
    %c0_6 = arith.constant 0 : index
    %9 = vector.load %arg5[%c0_5, %c0_6] : memref<128x256xf32, #tpu.memory_space<vmem>>, vector<128x256xf32>
    %cst_7 = arith.constant dense<0.000000e+00> : vector<128x256xf32>
    %10 = tpu.matmul %8, %9, %cst_7 {dimension_numbers = #tpu.dot_dimension_numbers<[1], [0], [0], [1], [0, 0, 1, 1], [], []>} : vector<128x128xf32>, vector<128x256xf32>, vector<128x256xf32> -> vector<128x256xf32>
    %c0_8 = arith.constant 0 : index
    %c0_9 = arith.constant 0 : index
    %11 = vector.load %arg6[%c0_8, %c0_9] : memref<1x256xf32, #tpu.memory_space<vmem>>, vector<1x256xf32>
    %12 = vector.broadcast %11 : vector<1x256xf32> to vector<128x256xf32>
    %13 = arith.addf %10, %12 : vector<128x256xf32>
    %c0_10 = arith.constant 0 : index
    %c0_11 = arith.constant 0 : index
    %14 = vector.load %arg7[%c0_10, %c0_11] : memref<128x256xf32, #tpu.memory_space<vmem>>, vector<128x256xf32>
    tpu.vector_store %arg7[%c0_10, %c0_11], %13 {strides = array<i32>} : memref<128x256xf32, #tpu.memory_space<vmem>>, vector<128x256xf32>,
    %cst_12 = arith.constant dense<0.000000e+00> : vector<256xf32>
    %15 = vector.multi_reduction <add>, %13, %cst_12 [0] : vector<128x256xf32> to vector<256xf32>
    %16 = vector.shape_cast %15 : vector<256xf32> to vector<1x256xf32>
    %17 = vector.shape_cast %16 : vector<1x256xf32> to vector<1x1x256xf32>
    %18 = arith.mulf %13, %13 : vector<128x256xf32>
    %cst_13 = arith.constant dense<0.000000e+00> : vector<256xf32>
    %19 = vector.multi_reduction <add>, %18, %cst_13 [0] : vector<128x256xf32> to vector<256xf32>
    %20 = vector.shape_cast %19 : vector<256xf32> to vector<1x256xf32>
    %21 = vector.shape_cast %20 : vector<1x256xf32> to vector<1x1x256xf32>
    %c0_i32 = arith.constant 0 : i32
    %22 = arith.cmpi eq, %arg1, %c0_i32 : i32
    %23 = arith.extui %22 : i1 to i32
    %c0_i32_14 = arith.constant 0 : i32
    %24 = arith.cmpi ne, %23, %c0_i32_14 : i32
    scf.if %24 {
      %cst_27 = arith.constant 0.000000e+00 : f32
      %31 = vector.broadcast %cst_27 : f32 to vector<1x1x256xf32>
      %c0_28 = arith.constant 0 : index
      %c0_29 = arith.constant 0 : index
      %c0_30 = arith.constant 0 : index
      %32 = vector.load %arg8[%c0_28, %c0_29, %c0_30] : memref<1x1x256xf32, #tpu.memory_space<vmem>>, vector<1x1x256xf32>
      tpu.vector_store %arg8[%c0_28, %c0_29, %c0_30], %31 {strides = array<i32>} : memref<1x1x256xf32, #tpu.memory_space<vmem>>, vector<1x1x256xf32>,
      %cst_31 = arith.constant 0.000000e+00 : f32
      %33 = vector.broadcast %cst_31 : f32 to vector<1x1x256xf32>
      %c0_32 = arith.constant 0 : index
      %c0_33 = arith.constant 0 : index
      %c0_34 = arith.constant 0 : index
      %34 = vector.load %arg9[%c0_32, %c0_33, %c0_34] : memref<1x1x256xf32, #tpu.memory_space<vmem>>, vector<1x1x256xf32>
      tpu.vector_store %arg9[%c0_32, %c0_33, %c0_34], %33 {strides = array<i32>} : memref<1x1x256xf32, #tpu.memory_space<vmem>>, vector<1x1x256xf32>,
    } else {
    }
    %c0_15 = arith.constant 0 : index
    %c0_16 = arith.constant 0 : index
    %c0_17 = arith.constant 0 : index
    %25 = vector.load %arg8[%c0_15, %c0_16, %c0_17] : memref<1x1x256xf32, #tpu.memory_space<vmem>>, vector<1x1x256xf32>
    %26 = arith.addf %25, %17 : vector<1x1x256xf32>
    %c0_18 = arith.constant 0 : index
    %c0_19 = arith.constant 0 : index
    %c0_20 = arith.constant 0 : index
    %27 = vector.load %arg8[%c0_18, %c0_19, %c0_20] : memref<1x1x256xf32, #tpu.memory_space<vmem>>, vector<1x1x256xf32>
    tpu.vector_store %arg8[%c0_18, %c0_19, %c0_20], %26 {strides = array<i32>} : memref<1x1x256xf32, #tpu.memory_space<vmem>>, vector<1x1x256xf32>,
    %c0_21 = arith.constant 0 : index
    %c0_22 = arith.constant 0 : index
    %c0_23 = arith.constant 0 : index
    %28 = vector.load %arg9[%c0_21, %c0_22, %c0_23] : memref<1x1x256xf32, #tpu.memory_space<vmem>>, vector<1x1x256xf32>
    %29 = arith.addf %28, %21 : vector<1x1x256xf32>
    %c0_24 = arith.constant 0 : index
    %c0_25 = arith.constant 0 : index
    %c0_26 = arith.constant 0 : index
    %30 = vector.load %arg9[%c0_24, %c0_25, %c0_26] : memref<1x1x256xf32, #tpu.memory_space<vmem>>, vector<1x1x256xf32>
    tpu.vector_store %arg9[%c0_24, %c0_25, %c0_26], %29 {strides = array<i32>} : memref<1x1x256xf32, #tpu.memory_space<vmem>>, vector<1x1x256xf32>,
    return
  }
  func.func @transform_0(%arg0: i32, %arg1: i32) -> (i32, i32) {
    %c8_i32 = arith.constant 8 : i32
    %0 = arith.muli %arg0, %c8_i32 : i32
    %1 = arith.addi %0, %arg1 : i32
    %c0_i32 = arith.constant 0 : i32
    %c0_i32_0 = arith.constant 0 : i32
    return %1, %c0_i32 : i32, i32
  }
  func.func @transform_1(%arg0: i32, %arg1: i32) -> (i32, i32) {
    %c0_i32 = arith.constant 0 : i32
    %c0_i32_0 = arith.constant 0 : i32
    %c0_i32_1 = arith.constant 0 : i32
    return %c0_i32, %c0_i32_0 : i32, i32
  }
  func.func @transform_2(%arg0: i32, %arg1: i32) -> (i32, i32) {
    %c0_i32 = arith.constant 0 : i32
    %c0_i32_0 = arith.constant 0 : i32
    %c0_i32_1 = arith.constant 0 : i32
    return %c0_i32, %c0_i32_0 : i32, i32
  }
  func.func @transform_3(%arg0: i32, %arg1: i32) -> (i32, i32) {
    %c0_i32 = arith.constant 0 : i32
    %c0_i32_0 = arith.constant 0 : i32
    %c0_i32_1 = arith.constant 0 : i32
    return %c0_i32, %c0_i32_0 : i32, i32
  }
  func.func @transform_4(%arg0: i32, %arg1: i32) -> (i32, i32) {
    %c0_i32 = arith.constant 0 : i32
    %c0_i32_0 = arith.constant 0 : i32
    %c0_i32_1 = arith.constant 0 : i32
    return %c0_i32, %c0_i32_0 : i32, i32
  }
  func.func @transform_5(%arg0: i32, %arg1: i32) -> (i32, i32) {
    %c8_i32 = arith.constant 8 : i32
    %0 = arith.muli %arg0, %c8_i32 : i32
    %1 = arith.addi %0, %arg1 : i32
    %c0_i32 = arith.constant 0 : i32
    %c0_i32_0 = arith.constant 0 : i32
    return %1, %c0_i32 : i32, i32
  }
  func.func @transform_6(%arg0: i32, %arg1: i32) -> (i32, i32, i32) {
    %c0_i32 = arith.constant 0 : i32
    %c0_i32_0 = arith.constant 0 : i32
    %c0_i32_1 = arith.constant 0 : i32
    return %arg0, %c0_i32, %c0_i32_0 : i32, i32, i32
  }
  func.func @transform_7(%arg0: i32, %arg1: i32) -> (i32, i32, i32) {
    %c0_i32 = arith.constant 0 : i32
    %c0_i32_0 = arith.constant 0 : i32
    %c0_i32_1 = arith.constant 0 : i32
    return %arg0, %c0_i32, %c0_i32_0 : i32, i32, i32
  }
}

module attributes {stable_mosaic.version = 11 : i64} {
  func.func @_first_conv_kernel(%arg0: i32, %arg1: i32, %arg2: memref<128x3xf32, #tpu.memory_space<vmem>>, %arg3: memref<3x128xf32, #tpu.memory_space<vmem>>, %arg4: memref<1x128xf32, #tpu.memory_space<vmem>>, %arg5: memref<1x128xf32, #tpu.memory_space<vmem>>, %arg6: memref<1x128xf32, #tpu.memory_space<vmem>>, %arg7: memref<128x128xf32, #tpu.memory_space<vmem>>, %arg8: memref<1x128xf32, #tpu.memory_space<vmem>>, %arg9: memref<128x128xf32, #tpu.memory_space<vmem>>, %arg10: memref<1x1x128xf32, #tpu.memory_space<vmem>>, %arg11: memref<1x1x128xf32, #tpu.memory_space<vmem>>) attributes {dimension_semantics = [#tpu.dimension_semantics<parallel>, #tpu.dimension_semantics<arbitrary>], iteration_bounds = array<i64: 2, 8>, scalar_prefetch = 0 : i64, scratch_operands = 0 : i64, tpu.core_type = #tpu.core_type<tc>, window_params = [{transform_indices = @transform_0, window_bounds = array<i64: 128, 3>}, {pipeline_mode = #tpu.pipeline_mode<synchronous>, transform_indices = @transform_1, window_bounds = array<i64: 3, 128>}, {pipeline_mode = #tpu.pipeline_mode<synchronous>, transform_indices = @transform_2, window_bounds = array<i64: 1, 128>}, {pipeline_mode = #tpu.pipeline_mode<synchronous>, transform_indices = @transform_3, window_bounds = array<i64: 1, 128>}, {pipeline_mode = #tpu.pipeline_mode<synchronous>, transform_indices = @transform_4, window_bounds = array<i64: 1, 128>}, {pipeline_mode = #tpu.pipeline_mode<synchronous>, transform_indices = @transform_5, window_bounds = array<i64: 128, 128>}, {pipeline_mode = #tpu.pipeline_mode<synchronous>, transform_indices = @transform_6, window_bounds = array<i64: 1, 128>}, {transform_indices = @transform_7, window_bounds = array<i64: 128, 128>}, {transform_indices = @transform_8, window_bounds = array<i64: 1, 1, 128>}, {transform_indices = @transform_9, window_bounds = array<i64: 1, 1, 128>}]} {
    %c0 = arith.constant 0 : index
    %c0_0 = arith.constant 0 : index
    %0 = vector.load %arg2[%c0, %c0_0] : memref<128x3xf32, #tpu.memory_space<vmem>>, vector<128x3xf32>
    %c0_1 = arith.constant 0 : index
    %c0_2 = arith.constant 0 : index
    %1 = vector.load %arg3[%c0_1, %c0_2] : memref<3x128xf32, #tpu.memory_space<vmem>>, vector<3x128xf32>
    %c0_3 = arith.constant 0 : index
    %c0_4 = arith.constant 0 : index
    %2 = vector.load %arg4[%c0_3, %c0_4] : memref<1x128xf32, #tpu.memory_space<vmem>>, vector<1x128xf32>
    %3 = vector.extract_strided_slice %0 {offsets = [0, 0], sizes = [128, 1], strides = [1, 1]} : vector<128x3xf32> to vector<128x1xf32>
    %4 = vector.extract_strided_slice %1 {offsets = [0, 0], sizes = [1, 128], strides = [1, 1]} : vector<3x128xf32> to vector<1x128xf32>
    %5 = vector.broadcast %3 : vector<128x1xf32> to vector<128x128xf32>
    %6 = vector.broadcast %4 : vector<1x128xf32> to vector<128x128xf32>
    %7 = arith.mulf %5, %6 : vector<128x128xf32>
    %8 = vector.broadcast %2 : vector<1x128xf32> to vector<128x128xf32>
    %9 = arith.addf %7, %8 : vector<128x128xf32>
    %10 = vector.extract_strided_slice %0 {offsets = [0, 1], sizes = [128, 1], strides = [1, 1]} : vector<128x3xf32> to vector<128x1xf32>
    %11 = vector.extract_strided_slice %1 {offsets = [1, 0], sizes = [1, 128], strides = [1, 1]} : vector<3x128xf32> to vector<1x128xf32>
    %12 = vector.broadcast %10 : vector<128x1xf32> to vector<128x128xf32>
    %13 = vector.broadcast %11 : vector<1x128xf32> to vector<128x128xf32>
    %14 = arith.mulf %12, %13 : vector<128x128xf32>
    %15 = arith.addf %9, %14 : vector<128x128xf32>
    %16 = vector.extract_strided_slice %0 {offsets = [0, 2], sizes = [128, 1], strides = [1, 1]} : vector<128x3xf32> to vector<128x1xf32>
    %17 = vector.extract_strided_slice %1 {offsets = [2, 0], sizes = [1, 128], strides = [1, 1]} : vector<3x128xf32> to vector<1x128xf32>
    %18 = vector.broadcast %16 : vector<128x1xf32> to vector<128x128xf32>
    %19 = vector.broadcast %17 : vector<1x128xf32> to vector<128x128xf32>
    %20 = arith.mulf %18, %19 : vector<128x128xf32>
    %21 = arith.addf %15, %20 : vector<128x128xf32>
    %c0_5 = arith.constant 0 : index
    %c0_6 = arith.constant 0 : index
    %22 = vector.load %arg5[%c0_5, %c0_6] : memref<1x128xf32, #tpu.memory_space<vmem>>, vector<1x128xf32>
    %23 = vector.broadcast %22 : vector<1x128xf32> to vector<128x128xf32>
    %24 = arith.mulf %21, %23 : vector<128x128xf32>
    %c0_7 = arith.constant 0 : index
    %c0_8 = arith.constant 0 : index
    %25 = vector.load %arg6[%c0_7, %c0_8] : memref<1x128xf32, #tpu.memory_space<vmem>>, vector<1x128xf32>
    %26 = vector.broadcast %25 : vector<1x128xf32> to vector<128x128xf32>
    %27 = arith.addf %24, %26 : vector<128x128xf32>
    %cst = arith.constant 0.000000e+00 : f32
    %28 = vector.broadcast %cst : f32 to vector<128x128xf32>
    %29 = arith.maximumf %27, %28 : vector<128x128xf32>
    %c0_9 = arith.constant 0 : index
    %c0_10 = arith.constant 0 : index
    %30 = vector.load %arg7[%c0_9, %c0_10] : memref<128x128xf32, #tpu.memory_space<vmem>>, vector<128x128xf32>
    %cst_11 = arith.constant dense<0.000000e+00> : vector<128x128xf32>
    %31 = tpu.matmul %29, %30, %cst_11 {dimension_numbers = #tpu.dot_dimension_numbers<[1], [0], [0], [1], [0, 0, 1, 1], [], []>} : vector<128x128xf32>, vector<128x128xf32>, vector<128x128xf32> -> vector<128x128xf32>
    %c0_12 = arith.constant 0 : index
    %c0_13 = arith.constant 0 : index
    %32 = vector.load %arg8[%c0_12, %c0_13] : memref<1x128xf32, #tpu.memory_space<vmem>>, vector<1x128xf32>
    %33 = vector.broadcast %32 : vector<1x128xf32> to vector<128x128xf32>
    %34 = arith.addf %31, %33 : vector<128x128xf32>
    %c0_14 = arith.constant 0 : index
    %c0_15 = arith.constant 0 : index
    %35 = vector.load %arg9[%c0_14, %c0_15] : memref<128x128xf32, #tpu.memory_space<vmem>>, vector<128x128xf32>
    tpu.vector_store %arg9[%c0_14, %c0_15], %34 {strides = array<i32>} : memref<128x128xf32, #tpu.memory_space<vmem>>, vector<128x128xf32>,
    %cst_16 = arith.constant dense<0.000000e+00> : vector<128xf32>
    %36 = vector.multi_reduction <add>, %34, %cst_16 [0] : vector<128x128xf32> to vector<128xf32>
    %37 = vector.shape_cast %36 : vector<128xf32> to vector<1x128xf32>
    %38 = vector.shape_cast %37 : vector<1x128xf32> to vector<1x1x128xf32>
    %39 = arith.mulf %34, %34 : vector<128x128xf32>
    %cst_17 = arith.constant dense<0.000000e+00> : vector<128xf32>
    %40 = vector.multi_reduction <add>, %39, %cst_17 [0] : vector<128x128xf32> to vector<128xf32>
    %41 = vector.shape_cast %40 : vector<128xf32> to vector<1x128xf32>
    %42 = vector.shape_cast %41 : vector<1x128xf32> to vector<1x1x128xf32>
    %c0_i32 = arith.constant 0 : i32
    %43 = arith.cmpi eq, %arg1, %c0_i32 : i32
    %44 = arith.extui %43 : i1 to i32
    %c0_i32_18 = arith.constant 0 : i32
    %45 = arith.cmpi ne, %44, %c0_i32_18 : i32
    scf.if %45 {
      %cst_31 = arith.constant 0.000000e+00 : f32
      %52 = vector.broadcast %cst_31 : f32 to vector<1x1x128xf32>
      %c0_32 = arith.constant 0 : index
      %c0_33 = arith.constant 0 : index
      %c0_34 = arith.constant 0 : index
      %53 = vector.load %arg10[%c0_32, %c0_33, %c0_34] : memref<1x1x128xf32, #tpu.memory_space<vmem>>, vector<1x1x128xf32>
      tpu.vector_store %arg10[%c0_32, %c0_33, %c0_34], %52 {strides = array<i32>} : memref<1x1x128xf32, #tpu.memory_space<vmem>>, vector<1x1x128xf32>,
      %cst_35 = arith.constant 0.000000e+00 : f32
      %54 = vector.broadcast %cst_35 : f32 to vector<1x1x128xf32>
      %c0_36 = arith.constant 0 : index
      %c0_37 = arith.constant 0 : index
      %c0_38 = arith.constant 0 : index
      %55 = vector.load %arg11[%c0_36, %c0_37, %c0_38] : memref<1x1x128xf32, #tpu.memory_space<vmem>>, vector<1x1x128xf32>
      tpu.vector_store %arg11[%c0_36, %c0_37, %c0_38], %54 {strides = array<i32>} : memref<1x1x128xf32, #tpu.memory_space<vmem>>, vector<1x1x128xf32>,
    } else {
    }
    %c0_19 = arith.constant 0 : index
    %c0_20 = arith.constant 0 : index
    %c0_21 = arith.constant 0 : index
    %46 = vector.load %arg10[%c0_19, %c0_20, %c0_21] : memref<1x1x128xf32, #tpu.memory_space<vmem>>, vector<1x1x128xf32>
    %47 = arith.addf %46, %38 : vector<1x1x128xf32>
    %c0_22 = arith.constant 0 : index
    %c0_23 = arith.constant 0 : index
    %c0_24 = arith.constant 0 : index
    %48 = vector.load %arg10[%c0_22, %c0_23, %c0_24] : memref<1x1x128xf32, #tpu.memory_space<vmem>>, vector<1x1x128xf32>
    tpu.vector_store %arg10[%c0_22, %c0_23, %c0_24], %47 {strides = array<i32>} : memref<1x1x128xf32, #tpu.memory_space<vmem>>, vector<1x1x128xf32>,
    %c0_25 = arith.constant 0 : index
    %c0_26 = arith.constant 0 : index
    %c0_27 = arith.constant 0 : index
    %49 = vector.load %arg11[%c0_25, %c0_26, %c0_27] : memref<1x1x128xf32, #tpu.memory_space<vmem>>, vector<1x1x128xf32>
    %50 = arith.addf %49, %42 : vector<1x1x128xf32>
    %c0_28 = arith.constant 0 : index
    %c0_29 = arith.constant 0 : index
    %c0_30 = arith.constant 0 : index
    %51 = vector.load %arg11[%c0_28, %c0_29, %c0_30] : memref<1x1x128xf32, #tpu.memory_space<vmem>>, vector<1x1x128xf32>
    tpu.vector_store %arg11[%c0_28, %c0_29, %c0_30], %50 {strides = array<i32>} : memref<1x1x128xf32, #tpu.memory_space<vmem>>, vector<1x1x128xf32>,
    return
  }
  func.func @transform_0(%arg0: i32, %arg1: i32) -> (i32, i32) {
    %c8_i32 = arith.constant 8 : i32
    %0 = arith.muli %arg0, %c8_i32 : i32
    %1 = arith.addi %0, %arg1 : i32
    %c0_i32 = arith.constant 0 : i32
    %c0_i32_0 = arith.constant 0 : i32
    return %1, %c0_i32 : i32, i32
  }
  func.func @transform_1(%arg0: i32, %arg1: i32) -> (i32, i32) {
    %c0_i32 = arith.constant 0 : i32
    %c0_i32_0 = arith.constant 0 : i32
    %c0_i32_1 = arith.constant 0 : i32
    return %c0_i32, %c0_i32_0 : i32, i32
  }
  func.func @transform_2(%arg0: i32, %arg1: i32) -> (i32, i32) {
    %c0_i32 = arith.constant 0 : i32
    %c0_i32_0 = arith.constant 0 : i32
    %c0_i32_1 = arith.constant 0 : i32
    return %c0_i32, %c0_i32_0 : i32, i32
  }
  func.func @transform_3(%arg0: i32, %arg1: i32) -> (i32, i32) {
    %c0_i32 = arith.constant 0 : i32
    %c0_i32_0 = arith.constant 0 : i32
    %c0_i32_1 = arith.constant 0 : i32
    return %c0_i32, %c0_i32_0 : i32, i32
  }
  func.func @transform_4(%arg0: i32, %arg1: i32) -> (i32, i32) {
    %c0_i32 = arith.constant 0 : i32
    %c0_i32_0 = arith.constant 0 : i32
    %c0_i32_1 = arith.constant 0 : i32
    return %c0_i32, %c0_i32_0 : i32, i32
  }
  func.func @transform_5(%arg0: i32, %arg1: i32) -> (i32, i32) {
    %c0_i32 = arith.constant 0 : i32
    %c0_i32_0 = arith.constant 0 : i32
    %c0_i32_1 = arith.constant 0 : i32
    return %c0_i32, %c0_i32_0 : i32, i32
  }
  func.func @transform_6(%arg0: i32, %arg1: i32) -> (i32, i32) {
    %c0_i32 = arith.constant 0 : i32
    %c0_i32_0 = arith.constant 0 : i32
    %c0_i32_1 = arith.constant 0 : i32
    return %c0_i32, %c0_i32_0 : i32, i32
  }
  func.func @transform_7(%arg0: i32, %arg1: i32) -> (i32, i32) {
    %c8_i32 = arith.constant 8 : i32
    %0 = arith.muli %arg0, %c8_i32 : i32
    %1 = arith.addi %0, %arg1 : i32
    %c0_i32 = arith.constant 0 : i32
    %c0_i32_0 = arith.constant 0 : i32
    return %1, %c0_i32 : i32, i32
  }
  func.func @transform_8(%arg0: i32, %arg1: i32) -> (i32, i32, i32) {
    %c0_i32 = arith.constant 0 : i32
    %c0_i32_0 = arith.constant 0 : i32
    %c0_i32_1 = arith.constant 0 : i32
    return %arg0, %c0_i32, %c0_i32_0 : i32, i32, i32
  }
  func.func @transform_9(%arg0: i32, %arg1: i32) -> (i32, i32, i32) {
    %c0_i32 = arith.constant 0 : i32
    %c0_i32_0 = arith.constant 0 : i32
    %c0_i32_1 = arith.constant 0 : i32
    return %arg0, %c0_i32, %c0_i32_0 : i32, i32, i32
  }
}

module attributes {stable_mosaic.version = 11 : i64} {
  func.func @_last_conv_pool_kernel(%arg0: i32, %arg1: i32, %arg2: memref<128x256xf32, #tpu.memory_space<vmem>>, %arg3: memref<1x256xf32, #tpu.memory_space<vmem>>, %arg4: memref<1x256xf32, #tpu.memory_space<vmem>>, %arg5: memref<256x512xf32, #tpu.memory_space<vmem>>, %arg6: memref<1x512xf32, #tpu.memory_space<vmem>>, %arg7: memref<1x1x512xf32, #tpu.memory_space<vmem>>, %arg8: memref<1x1x512xf32, #tpu.memory_space<vmem>>, %arg9: memref<1x1x512xf32, #tpu.memory_space<vmem>>, %arg10: memref<1x1x512xf32, #tpu.memory_space<vmem>>) attributes {dimension_semantics = [#tpu.dimension_semantics<parallel>, #tpu.dimension_semantics<arbitrary>], iteration_bounds = array<i64: 2, 8>, scalar_prefetch = 0 : i64, scratch_operands = 0 : i64, tpu.core_type = #tpu.core_type<tc>, window_params = [{transform_indices = @transform_0, window_bounds = array<i64: 128, 256>}, {pipeline_mode = #tpu.pipeline_mode<synchronous>, transform_indices = @transform_1, window_bounds = array<i64: 1, 256>}, {pipeline_mode = #tpu.pipeline_mode<synchronous>, transform_indices = @transform_2, window_bounds = array<i64: 1, 256>}, {pipeline_mode = #tpu.pipeline_mode<synchronous>, transform_indices = @transform_3, window_bounds = array<i64: 256, 512>}, {pipeline_mode = #tpu.pipeline_mode<synchronous>, transform_indices = @transform_4, window_bounds = array<i64: 1, 512>}, {transform_indices = @transform_5, window_bounds = array<i64: 1, 1, 512>}, {transform_indices = @transform_6, window_bounds = array<i64: 1, 1, 512>}, {transform_indices = @transform_7, window_bounds = array<i64: 1, 1, 512>}, {transform_indices = @transform_8, window_bounds = array<i64: 1, 1, 512>}]} {
    %c0 = arith.constant 0 : index
    %c0_0 = arith.constant 0 : index
    %0 = vector.load %arg2[%c0, %c0_0] : memref<128x256xf32, #tpu.memory_space<vmem>>, vector<128x256xf32>
    %c0_1 = arith.constant 0 : index
    %c0_2 = arith.constant 0 : index
    %1 = vector.load %arg3[%c0_1, %c0_2] : memref<1x256xf32, #tpu.memory_space<vmem>>, vector<1x256xf32>
    %2 = vector.broadcast %1 : vector<1x256xf32> to vector<128x256xf32>
    %3 = arith.mulf %0, %2 : vector<128x256xf32>
    %c0_3 = arith.constant 0 : index
    %c0_4 = arith.constant 0 : index
    %4 = vector.load %arg4[%c0_3, %c0_4] : memref<1x256xf32, #tpu.memory_space<vmem>>, vector<1x256xf32>
    %5 = vector.broadcast %4 : vector<1x256xf32> to vector<128x256xf32>
    %6 = arith.addf %3, %5 : vector<128x256xf32>
    %cst = arith.constant 0.000000e+00 : f32
    %7 = vector.broadcast %cst : f32 to vector<128x256xf32>
    %8 = arith.maximumf %6, %7 : vector<128x256xf32>
    %c0_5 = arith.constant 0 : index
    %c0_6 = arith.constant 0 : index
    %9 = vector.load %arg5[%c0_5, %c0_6] : memref<256x512xf32, #tpu.memory_space<vmem>>, vector<256x512xf32>
    %cst_7 = arith.constant dense<0.000000e+00> : vector<128x512xf32>
    %10 = tpu.matmul %8, %9, %cst_7 {dimension_numbers = #tpu.dot_dimension_numbers<[1], [0], [0], [1], [0, 0, 1, 1], [], []>} : vector<128x256xf32>, vector<256x512xf32>, vector<128x512xf32> -> vector<128x512xf32>
    %c0_8 = arith.constant 0 : index
    %c0_9 = arith.constant 0 : index
    %11 = vector.load %arg6[%c0_8, %c0_9] : memref<1x512xf32, #tpu.memory_space<vmem>>, vector<1x512xf32>
    %12 = vector.broadcast %11 : vector<1x512xf32> to vector<128x512xf32>
    %13 = arith.addf %10, %12 : vector<128x512xf32>
    %cst_10 = arith.constant dense<0xFF800000> : vector<512xf32>
    %14 = vector.multi_reduction <maximumf>, %13, %cst_10 [0] : vector<128x512xf32> to vector<512xf32>
    %15 = vector.shape_cast %14 : vector<512xf32> to vector<1x512xf32>
    %16 = vector.shape_cast %15 : vector<1x512xf32> to vector<1x1x512xf32>
    %c0_11 = arith.constant 0 : index
    %c0_12 = arith.constant 0 : index
    %c0_13 = arith.constant 0 : index
    %17 = vector.load %arg7[%c0_11, %c0_12, %c0_13] : memref<1x1x512xf32, #tpu.memory_space<vmem>>, vector<1x1x512xf32>
    tpu.vector_store %arg7[%c0_11, %c0_12, %c0_13], %16 {strides = array<i32>} : memref<1x1x512xf32, #tpu.memory_space<vmem>>, vector<1x1x512xf32>,
    %cst_14 = arith.constant dense<0x7F800000> : vector<512xf32>
    %18 = vector.multi_reduction <minimumf>, %13, %cst_14 [0] : vector<128x512xf32> to vector<512xf32>
    %19 = vector.shape_cast %18 : vector<512xf32> to vector<1x512xf32>
    %20 = vector.shape_cast %19 : vector<1x512xf32> to vector<1x1x512xf32>
    %c0_15 = arith.constant 0 : index
    %c0_16 = arith.constant 0 : index
    %c0_17 = arith.constant 0 : index
    %21 = vector.load %arg8[%c0_15, %c0_16, %c0_17] : memref<1x1x512xf32, #tpu.memory_space<vmem>>, vector<1x1x512xf32>
    tpu.vector_store %arg8[%c0_15, %c0_16, %c0_17], %20 {strides = array<i32>} : memref<1x1x512xf32, #tpu.memory_space<vmem>>, vector<1x1x512xf32>,
    %cst_18 = arith.constant dense<0.000000e+00> : vector<512xf32>
    %22 = vector.multi_reduction <add>, %13, %cst_18 [0] : vector<128x512xf32> to vector<512xf32>
    %23 = vector.shape_cast %22 : vector<512xf32> to vector<1x512xf32>
    %24 = vector.shape_cast %23 : vector<1x512xf32> to vector<1x1x512xf32>
    %25 = arith.mulf %13, %13 : vector<128x512xf32>
    %cst_19 = arith.constant dense<0.000000e+00> : vector<512xf32>
    %26 = vector.multi_reduction <add>, %25, %cst_19 [0] : vector<128x512xf32> to vector<512xf32>
    %27 = vector.shape_cast %26 : vector<512xf32> to vector<1x512xf32>
    %28 = vector.shape_cast %27 : vector<1x512xf32> to vector<1x1x512xf32>
    %c0_i32 = arith.constant 0 : i32
    %29 = arith.cmpi eq, %arg1, %c0_i32 : i32
    %30 = arith.extui %29 : i1 to i32
    %c0_i32_20 = arith.constant 0 : i32
    %31 = arith.cmpi ne, %30, %c0_i32_20 : i32
    scf.if %31 {
      %cst_33 = arith.constant 0.000000e+00 : f32
      %38 = vector.broadcast %cst_33 : f32 to vector<1x1x512xf32>
      %c0_34 = arith.constant 0 : index
      %c0_35 = arith.constant 0 : index
      %c0_36 = arith.constant 0 : index
      %39 = vector.load %arg9[%c0_34, %c0_35, %c0_36] : memref<1x1x512xf32, #tpu.memory_space<vmem>>, vector<1x1x512xf32>
      tpu.vector_store %arg9[%c0_34, %c0_35, %c0_36], %38 {strides = array<i32>} : memref<1x1x512xf32, #tpu.memory_space<vmem>>, vector<1x1x512xf32>,
      %cst_37 = arith.constant 0.000000e+00 : f32
      %40 = vector.broadcast %cst_37 : f32 to vector<1x1x512xf32>
      %c0_38 = arith.constant 0 : index
      %c0_39 = arith.constant 0 : index
      %c0_40 = arith.constant 0 : index
      %41 = vector.load %arg10[%c0_38, %c0_39, %c0_40] : memref<1x1x512xf32, #tpu.memory_space<vmem>>, vector<1x1x512xf32>
      tpu.vector_store %arg10[%c0_38, %c0_39, %c0_40], %40 {strides = array<i32>} : memref<1x1x512xf32, #tpu.memory_space<vmem>>, vector<1x1x512xf32>,
    } else {
    }
    %c0_21 = arith.constant 0 : index
    %c0_22 = arith.constant 0 : index
    %c0_23 = arith.constant 0 : index
    %32 = vector.load %arg9[%c0_21, %c0_22, %c0_23] : memref<1x1x512xf32, #tpu.memory_space<vmem>>, vector<1x1x512xf32>
    %33 = arith.addf %32, %24 : vector<1x1x512xf32>
    %c0_24 = arith.constant 0 : index
    %c0_25 = arith.constant 0 : index
    %c0_26 = arith.constant 0 : index
    %34 = vector.load %arg9[%c0_24, %c0_25, %c0_26] : memref<1x1x512xf32, #tpu.memory_space<vmem>>, vector<1x1x512xf32>
    tpu.vector_store %arg9[%c0_24, %c0_25, %c0_26], %33 {strides = array<i32>} : memref<1x1x512xf32, #tpu.memory_space<vmem>>, vector<1x1x512xf32>,
    %c0_27 = arith.constant 0 : index
    %c0_28 = arith.constant 0 : index
    %c0_29 = arith.constant 0 : index
    %35 = vector.load %arg10[%c0_27, %c0_28, %c0_29] : memref<1x1x512xf32, #tpu.memory_space<vmem>>, vector<1x1x512xf32>
    %36 = arith.addf %35, %28 : vector<1x1x512xf32>
    %c0_30 = arith.constant 0 : index
    %c0_31 = arith.constant 0 : index
    %c0_32 = arith.constant 0 : index
    %37 = vector.load %arg10[%c0_30, %c0_31, %c0_32] : memref<1x1x512xf32, #tpu.memory_space<vmem>>, vector<1x1x512xf32>
    tpu.vector_store %arg10[%c0_30, %c0_31, %c0_32], %36 {strides = array<i32>} : memref<1x1x512xf32, #tpu.memory_space<vmem>>, vector<1x1x512xf32>,
    return
  }
  func.func @transform_0(%arg0: i32, %arg1: i32) -> (i32, i32) {
    %c8_i32 = arith.constant 8 : i32
    %0 = arith.muli %arg0, %c8_i32 : i32
    %1 = arith.addi %0, %arg1 : i32
    %c0_i32 = arith.constant 0 : i32
    %c0_i32_0 = arith.constant 0 : i32
    return %1, %c0_i32 : i32, i32
  }
  func.func @transform_1(%arg0: i32, %arg1: i32) -> (i32, i32) {
    %c0_i32 = arith.constant 0 : i32
    %c0_i32_0 = arith.constant 0 : i32
    %c0_i32_1 = arith.constant 0 : i32
    return %c0_i32, %c0_i32_0 : i32, i32
  }
  func.func @transform_2(%arg0: i32, %arg1: i32) -> (i32, i32) {
    %c0_i32 = arith.constant 0 : i32
    %c0_i32_0 = arith.constant 0 : i32
    %c0_i32_1 = arith.constant 0 : i32
    return %c0_i32, %c0_i32_0 : i32, i32
  }
  func.func @transform_3(%arg0: i32, %arg1: i32) -> (i32, i32) {
    %c0_i32 = arith.constant 0 : i32
    %c0_i32_0 = arith.constant 0 : i32
    %c0_i32_1 = arith.constant 0 : i32
    return %c0_i32, %c0_i32_0 : i32, i32
  }
  func.func @transform_4(%arg0: i32, %arg1: i32) -> (i32, i32) {
    %c0_i32 = arith.constant 0 : i32
    %c0_i32_0 = arith.constant 0 : i32
    %c0_i32_1 = arith.constant 0 : i32
    return %c0_i32, %c0_i32_0 : i32, i32
  }
  func.func @transform_5(%arg0: i32, %arg1: i32) -> (i32, i32, i32) {
    %c8_i32 = arith.constant 8 : i32
    %0 = arith.muli %arg0, %c8_i32 : i32
    %1 = arith.addi %0, %arg1 : i32
    %c0_i32 = arith.constant 0 : i32
    %c0_i32_0 = arith.constant 0 : i32
    %c0_i32_1 = arith.constant 0 : i32
    return %1, %c0_i32, %c0_i32_0 : i32, i32, i32
  }
  func.func @transform_6(%arg0: i32, %arg1: i32) -> (i32, i32, i32) {
    %c8_i32 = arith.constant 8 : i32
    %0 = arith.muli %arg0, %c8_i32 : i32
    %1 = arith.addi %0, %arg1 : i32
    %c0_i32 = arith.constant 0 : i32
    %c0_i32_0 = arith.constant 0 : i32
    %c0_i32_1 = arith.constant 0 : i32
    return %1, %c0_i32, %c0_i32_0 : i32, i32, i32
  }
  func.func @transform_7(%arg0: i32, %arg1: i32) -> (i32, i32, i32) {
    %c0_i32 = arith.constant 0 : i32
    %c0_i32_0 = arith.constant 0 : i32
    %c0_i32_1 = arith.constant 0 : i32
    return %arg0, %c0_i32, %c0_i32_0 : i32, i32, i32
  }
  func.func @transform_8(%arg0: i32, %arg1: i32) -> (i32, i32, i32) {
    %c0_i32 = arith.constant 0 : i32
    %c0_i32_0 = arith.constant 0 : i32
    %c0_i32_1 = arith.constant 0 : i32
    return %arg0, %c0_i32, %c0_i32_0 : i32, i32, i32
  }
}

module attributes {stable_mosaic.version = 11 : i64} {
  func.func @_heads_kernel(%arg0: memref<4x512xf32, #tpu.memory_space<vmem>>, %arg1: memref<512x512xf32, #tpu.memory_space<vmem>>, %arg2: memref<1x512xf32, #tpu.memory_space<vmem>>, %arg3: memref<1x512xf32, #tpu.memory_space<vmem>>, %arg4: memref<1x512xf32, #tpu.memory_space<vmem>>, %arg5: memref<512x256xf32, #tpu.memory_space<vmem>>, %arg6: memref<1x256xf32, #tpu.memory_space<vmem>>, %arg7: memref<1x256xf32, #tpu.memory_space<vmem>>, %arg8: memref<1x256xf32, #tpu.memory_space<vmem>>, %arg9: memref<256x128xf32, #tpu.memory_space<vmem>>, %arg10: memref<1x128xf32, #tpu.memory_space<vmem>>, %arg11: memref<4x128xf32, #tpu.memory_space<vmem>>) attributes {dimension_semantics = [], scalar_prefetch = 0 : i64, scratch_operands = 0 : i64, tpu.core_type = #tpu.core_type<tc>} {
    %c0 = arith.constant 0 : index
    %c0_0 = arith.constant 0 : index
    %0 = vector.load %arg0[%c0, %c0_0] : memref<4x512xf32, #tpu.memory_space<vmem>>, vector<4x512xf32>
    %c0_1 = arith.constant 0 : index
    %c0_2 = arith.constant 0 : index
    %1 = vector.load %arg1[%c0_1, %c0_2] : memref<512x512xf32, #tpu.memory_space<vmem>>, vector<512x512xf32>
    %cst = arith.constant dense<0.000000e+00> : vector<4x512xf32>
    %2 = tpu.matmul %0, %1, %cst {dimension_numbers = #tpu.dot_dimension_numbers<[1], [0], [0], [1], [0, 0, 1, 1], [], []>} : vector<4x512xf32>, vector<512x512xf32>, vector<4x512xf32> -> vector<4x512xf32>
    %c0_3 = arith.constant 0 : index
    %c0_4 = arith.constant 0 : index
    %3 = vector.load %arg2[%c0_3, %c0_4] : memref<1x512xf32, #tpu.memory_space<vmem>>, vector<1x512xf32>
    %4 = vector.broadcast %3 : vector<1x512xf32> to vector<4x512xf32>
    %5 = arith.addf %2, %4 : vector<4x512xf32>
    %cst_5 = arith.constant dense<0.000000e+00> : vector<512xf32>
    %6 = vector.multi_reduction <add>, %5, %cst_5 [0] : vector<4x512xf32> to vector<512xf32>
    %7 = vector.shape_cast %6 : vector<512xf32> to vector<1x512xf32>
    %cst_6 = arith.constant 4.000000e+00 : f32
    %8 = vector.broadcast %cst_6 : f32 to vector<1x512xf32>
    %9 = arith.divf %7, %8 : vector<1x512xf32>
    %10 = vector.broadcast %9 : vector<1x512xf32> to vector<4x512xf32>
    %11 = arith.subf %5, %10 : vector<4x512xf32>
    %12 = vector.broadcast %9 : vector<1x512xf32> to vector<4x512xf32>
    %13 = arith.subf %5, %12 : vector<4x512xf32>
    %14 = arith.mulf %11, %13 : vector<4x512xf32>
    %cst_7 = arith.constant dense<0.000000e+00> : vector<512xf32>
    %15 = vector.multi_reduction <add>, %14, %cst_7 [0] : vector<4x512xf32> to vector<512xf32>
    %16 = vector.shape_cast %15 : vector<512xf32> to vector<1x512xf32>
    %cst_8 = arith.constant 4.000000e+00 : f32
    %17 = vector.broadcast %cst_8 : f32 to vector<1x512xf32>
    %18 = arith.divf %16, %17 : vector<1x512xf32>
    %19 = vector.broadcast %9 : vector<1x512xf32> to vector<4x512xf32>
    %20 = arith.subf %5, %19 : vector<4x512xf32>
    %cst_9 = arith.constant 9.99999974E-6 : f32
    %21 = vector.broadcast %cst_9 : f32 to vector<1x512xf32>
    %22 = arith.addf %18, %21 : vector<1x512xf32>
    %23 = math.rsqrt %22 : vector<1x512xf32>
    %24 = vector.broadcast %23 : vector<1x512xf32> to vector<4x512xf32>
    %25 = arith.mulf %20, %24 : vector<4x512xf32>
    %c0_10 = arith.constant 0 : index
    %c0_11 = arith.constant 0 : index
    %26 = vector.load %arg3[%c0_10, %c0_11] : memref<1x512xf32, #tpu.memory_space<vmem>>, vector<1x512xf32>
    %27 = vector.broadcast %26 : vector<1x512xf32> to vector<4x512xf32>
    %28 = arith.mulf %25, %27 : vector<4x512xf32>
    %c0_12 = arith.constant 0 : index
    %c0_13 = arith.constant 0 : index
    %29 = vector.load %arg4[%c0_12, %c0_13] : memref<1x512xf32, #tpu.memory_space<vmem>>, vector<1x512xf32>
    %30 = vector.broadcast %29 : vector<1x512xf32> to vector<4x512xf32>
    %31 = arith.addf %28, %30 : vector<4x512xf32>
    %cst_14 = arith.constant 0.000000e+00 : f32
    %32 = vector.broadcast %cst_14 : f32 to vector<4x512xf32>
    %33 = arith.maximumf %31, %32 : vector<4x512xf32>
    %c0_15 = arith.constant 0 : index
    %c0_16 = arith.constant 0 : index
    %34 = vector.load %arg5[%c0_15, %c0_16] : memref<512x256xf32, #tpu.memory_space<vmem>>, vector<512x256xf32>
    %cst_17 = arith.constant dense<0.000000e+00> : vector<4x256xf32>
    %35 = tpu.matmul %33, %34, %cst_17 {dimension_numbers = #tpu.dot_dimension_numbers<[1], [0], [0], [1], [0, 0, 1, 1], [], []>} : vector<4x512xf32>, vector<512x256xf32>, vector<4x256xf32> -> vector<4x256xf32>
    %c0_18 = arith.constant 0 : index
    %c0_19 = arith.constant 0 : index
    %36 = vector.load %arg6[%c0_18, %c0_19] : memref<1x256xf32, #tpu.memory_space<vmem>>, vector<1x256xf32>
    %37 = vector.broadcast %36 : vector<1x256xf32> to vector<4x256xf32>
    %38 = arith.addf %35, %37 : vector<4x256xf32>
    %cst_20 = arith.constant dense<0.000000e+00> : vector<256xf32>
    %39 = vector.multi_reduction <add>, %38, %cst_20 [0] : vector<4x256xf32> to vector<256xf32>
    %40 = vector.shape_cast %39 : vector<256xf32> to vector<1x256xf32>
    %cst_21 = arith.constant 4.000000e+00 : f32
    %41 = vector.broadcast %cst_21 : f32 to vector<1x256xf32>
    %42 = arith.divf %40, %41 : vector<1x256xf32>
    %43 = vector.broadcast %42 : vector<1x256xf32> to vector<4x256xf32>
    %44 = arith.subf %38, %43 : vector<4x256xf32>
    %45 = vector.broadcast %42 : vector<1x256xf32> to vector<4x256xf32>
    %46 = arith.subf %38, %45 : vector<4x256xf32>
    %47 = arith.mulf %44, %46 : vector<4x256xf32>
    %cst_22 = arith.constant dense<0.000000e+00> : vector<256xf32>
    %48 = vector.multi_reduction <add>, %47, %cst_22 [0] : vector<4x256xf32> to vector<256xf32>
    %49 = vector.shape_cast %48 : vector<256xf32> to vector<1x256xf32>
    %cst_23 = arith.constant 4.000000e+00 : f32
    %50 = vector.broadcast %cst_23 : f32 to vector<1x256xf32>
    %51 = arith.divf %49, %50 : vector<1x256xf32>
    %52 = vector.broadcast %42 : vector<1x256xf32> to vector<4x256xf32>
    %53 = arith.subf %38, %52 : vector<4x256xf32>
    %cst_24 = arith.constant 9.99999974E-6 : f32
    %54 = vector.broadcast %cst_24 : f32 to vector<1x256xf32>
    %55 = arith.addf %51, %54 : vector<1x256xf32>
    %56 = math.rsqrt %55 : vector<1x256xf32>
    %57 = vector.broadcast %56 : vector<1x256xf32> to vector<4x256xf32>
    %58 = arith.mulf %53, %57 : vector<4x256xf32>
    %c0_25 = arith.constant 0 : index
    %c0_26 = arith.constant 0 : index
    %59 = vector.load %arg7[%c0_25, %c0_26] : memref<1x256xf32, #tpu.memory_space<vmem>>, vector<1x256xf32>
    %60 = vector.broadcast %59 : vector<1x256xf32> to vector<4x256xf32>
    %61 = arith.mulf %58, %60 : vector<4x256xf32>
    %c0_27 = arith.constant 0 : index
    %c0_28 = arith.constant 0 : index
    %62 = vector.load %arg8[%c0_27, %c0_28] : memref<1x256xf32, #tpu.memory_space<vmem>>, vector<1x256xf32>
    %63 = vector.broadcast %62 : vector<1x256xf32> to vector<4x256xf32>
    %64 = arith.addf %61, %63 : vector<4x256xf32>
    %cst_29 = arith.constant 0.000000e+00 : f32
    %65 = vector.broadcast %cst_29 : f32 to vector<4x256xf32>
    %66 = arith.maximumf %64, %65 : vector<4x256xf32>
    %c0_30 = arith.constant 0 : index
    %c0_31 = arith.constant 0 : index
    %67 = vector.load %arg9[%c0_30, %c0_31] : memref<256x128xf32, #tpu.memory_space<vmem>>, vector<256x128xf32>
    %cst_32 = arith.constant dense<0.000000e+00> : vector<4x128xf32>
    %68 = tpu.matmul %66, %67, %cst_32 {dimension_numbers = #tpu.dot_dimension_numbers<[1], [0], [0], [1], [0, 0, 1, 1], [], []>} : vector<4x256xf32>, vector<256x128xf32>, vector<4x128xf32> -> vector<4x128xf32>
    %c0_33 = arith.constant 0 : index
    %c0_34 = arith.constant 0 : index
    %69 = vector.load %arg10[%c0_33, %c0_34] : memref<1x128xf32, #tpu.memory_space<vmem>>, vector<1x128xf32>
    %70 = vector.broadcast %69 : vector<1x128xf32> to vector<4x128xf32>
    %71 = arith.addf %68, %70 : vector<4x128xf32>
    %c0_35 = arith.constant 0 : index
    %c0_36 = arith.constant 0 : index
    %72 = vector.load %arg11[%c0_35, %c0_36] : memref<4x128xf32, #tpu.memory_space<vmem>>, vector<4x128xf32>
    tpu.vector_store %arg11[%c0_35, %c0_36], %71 {strides = array<i32>} : memref<4x128xf32, #tpu.memory_space<vmem>>, vector<4x128xf32>,
    return
  }
}

</mosaic_0001>

<bundles_post_ra>
// kernel: pointnet_encoder.5
= control target key start
LH: loop header
LB: loop body
LE: loop exit
PB: predicated region body
PF: predicated region fallthrough
CT: control target
= control target key end

     0   :  { %10 = vsyncpa [#allocation3], 0  ;;  %s1215_s0 = inlined_call_operand.vmem [shape: f32[2048,3], index: 0, kind: input, shape index: {}]   ;;  %s1216_s1 = inlined_call_operand.hbm [shape: f32[3,128], index: 1, kind: input, shape index: {}]   ;;  %s1217_s2 = inlined_call_operand.hbm [shape: f32[1,128], index: 2, kind: input, shape index: {}]   ;;  %s1218_s3 = inlined_call_operand.vmem [shape: f32[2,1,128], index: 3, kind: output, shape index: {0}]   ;;  %s1219_s4 = inlined_call_operand.vmem [shape: f32[2,1,128], index: 4, kind: output, shape index: {1}]  }
   0x1   :  { %11 = vsyncpa [#allocation5], 0  ;;  %s995_s15 = smov 0   ;;  %s997_s16 = smov 0  }
   0x2   :  { %s999_s17 = smov 0   ;;  %s1001_s18 = smov 0  }
   0x3   :  { %s1003_s19 = smov 0  }
   0x4 LB: > { %s773_s20 = sadd.s32 4294967295, %s962_s19   ;;  %s26_s21 = sadd.s32 1, %s954_s17  ;;  %s962_s19 = sphi %s1003_s19, %s17_s19   ;;  %s958_s18 = sphi %s1001_s18, %s1226_s18   ;;  %s954_s17 = sphi %s999_s17, %s1225_s17   ;;  %s950_s16 = sphi %s997_s16, %s1224_s16   ;;  %s946_s15 = sphi %s995_s15, %s1223_s15  }
   0x5   : > { %p27_p0 = scmp.ge.s32.totalorder %s26_s21, 8  ;;  %s29_s22 = sadd.s32 1, %s958_s18 }
   0x6   : > { %p777_p1 = scmp.ge.s32.totalorder %s962_s19, 1  ;;  %p158_p2 = scmp.lt.s32.totalorder %s962_s19, 17 }
   0x7   : > { %s1228_s21 = smov (%p27_p0, %s26_s21), 0  ;;  %s1230_s22 = smov (!%p27_p0, %s29_s22), %s958_s18 }
   0x8   : > { %p1028_p3 = pnand %p777_p1, %p158_p2  ;;  %p31_p4 = scmp.ge.s32.totalorder %s1230_s22, 2 }
   0x9   : > { %p1032_p5 = scmp.eq.s32.totalorder %s773_s20, 0  ;;  %s964_s25 = smov [#allocation2]  }
   0xa   : > { %p799_p6 = pneg %p1028_p3  ;;  %s1232_s22 = smov (%p31_p4, %s1230_s22), 0 }
   0xb   : > { %s171_s26 = sshll.u32 %s964_s25, 4  ;;  %s965_s28 = smov [#allocation4]   ;;  %s172_s26 = int_to_ptr.vmem [resolvable:$true] %s171_s26 }
   0xc   : > { %p1042_p7 = pnand %p1032_p5, %p799_p6  ;;  %s182_s29 = sshll.u32 %s965_s28, 4  ;;  %s183_s29 = int_to_ptr.vmem [resolvable:$true] %s182_s29 }
   0xd   : > { %s875_s30 = scalar_lea.vmem %s172_s26, 64  ;;  %p883_p12 = scmp.lt.s32.totalorder %s172_s26, %s172_s26 }
   0xe   : > { %p866_p8 = pneg %p1042_p7  ;;  %p876_p9 = scmp.ne.s32.totalorder %s172_s26, %s875_s30 }
   0xf   : > { %p884_p13 = scmp.lt.s32.totalorder %s875_s30, %s875_s30 }
  0x10   : > { %p878_p10 = pnand %p876_p9, %p866_p8 }
  0x11   : > { %p885_p0 = por %p884_p13, %p883_p12 }
  0x12   : > { %p879_p11 = pneg %p878_p10 }
  0x14   : > { %p886_p1 = pnand %p885_p0, %p879_p11 }
  0x16   : > { %889 = shalt.err (!%p886_p1)
}
  0x17   : > { %802 = dma.hbm_to_vmem [thread:$0]  (!%p1042_p7), %s1216_s1, 64, %s172_s26, [#allocation3]  }
  0x18   : > { %s901_s7 = scalar_lea.vmem %s183_s29, 16  ;;  %s908_s8 = scalar_lea.vmem %s183_s29, 32 }
  0x19   : > { %p902_p2 = scmp.ne.s32.totalorder %s183_s29, %s901_s7  ;;  %p909_p9 = scmp.lt.s32.totalorder %s183_s29, %s183_s29 }
  0x1a   : > { %p910_p10 = scmp.lt.s32.totalorder %s908_s8, %s901_s7 }
  0x1b   : > { %p904_p4 = pnand %p902_p2, %p866_p8 }
  0x1c   : > { %p911_p12 = por %p910_p10, %p909_p9 }
  0x1d   : > { %p905_p6 = pneg %p904_p4 }
  0x1f   : > { %p912_p11 = pnand %p911_p12, %p905_p6 }
  0x21   : > { %915 = shalt.err (!%p912_p11)
}
  0x22   : > { %805 = dma.hbm_to_vmem [thread:$0]  (!%p1042_p7), %s1217_s2, 16, %s183_s29, [#allocation5]  }
  0x23   : > { %208 = sbr.rel (%p1028_p3) target bundleno = 308 (0x134), region = 32 }
  0x28   : > { %937 = dma.done.wait (%p1032_p5), [#allocation3], 64  }
  0x29   : > { %939 = vsyncadd (%p1032_p5), [#allocation3], 4294967232 }
  0x2a   : > { %941 = dma.done.wait (%p1032_p5), [#allocation5], 16  }
  0x2b   : > { %943 = vsyncadd (%p1032_p5), [#allocation5], 4294967280  ;;  %s784_s11 = sshll.u32 %s950_s16, 3  ;;  %v966_v0 = vmov 0   ;;  %v967_v17 = vmov 1   ;;  %v968_v18 = vmov 2   ;;  %v355_v33 = vlaneseq }
  0x2c   : > { %857 = vset.pattern.permute.xlu1 %v966_v0  ;;  %856 = vset.pattern.permute.xlu0 %v966_v0  ;;  %s242_s12 = sadd.s32 %s946_s15, %s784_s11  ;;  %p251_p5 = scmp.lt.s32.totalorder %s950_s16, 1  ;;  %v273_v41 = vld [vmem:[#allocation2] sm:$0x7]  ;;  %v1120_v53 = vld [vmem:[#allocation4] ss:$0 sm:$0xff] }
  0x2d   : > { %s785_s13 = sshll.u32 %s242_s12, 4  ;;  %v356_v36 = vshrl.u32 %v355_v33, 7  ;;  %p788_p7 = scmp.ne.s32.totalorder %s946_s15, 0 }
  0x2e   : > { %p244_p3 = scmp.lt.s32.totalorder %s785_s13, 255  ;;  %s1236_s16 = smov (!%p251_p5, %s950_s16), 1 }
  0x2f   : > { %s1084_s27 = scalar_lea.vmem %s1218_s3, %s1236_s16  ;;  %s1089_s30 = scalar_lea.vmem %s1219_s4, %s1236_s16  ;;  %v357_v39 = vsub.s32 0, %v356_v36  ;;  %v463_v40 = vsub.s32 1, %v356_v36  ;;  %v563_v44 = vsub.s32 2, %v356_v36 }
  0x30   : > { %s1234_s13 = smov (!%p244_p3, %s785_s13), 255 }
  0x31   : > { %s786_s14 = sshll.u32 %s1234_s13, 3  ;;  %v1111_v45 = vrot.slane %v273_v41, %v357_v39  ;;  %v1113_v46 = vrot.slane %v273_v41, %v463_v40  ;;  %v1117_v50 = vrot.slane %v273_v41, %v563_v44 }
  0x32   : > { %s247_s25 = scalar_lea.vmem %s1215_s0, %s786_s14 }
  0x33   : > { %v259_v1 = vld [vmem:[%s247_s25 + $0x10] sm:$0xff]  ;;  %v257_v2 = vld [vmem:[%s247_s25] sm:$0xff]  ;;  %v260_v3 = vld [vmem:[%s247_s25 + $0x18] sm:$0xff] }
  0x34   : > { %287 = vperm.xlu1 %857, %v259_v1   ;;  %277 = vperm.xlu0 %856, %v257_v2   ;;  %v258_v4 = vld [vmem:[%s247_s25 + $0x8] sm:$0xff]  ;;  %v261_v6 = vld [vmem:[%s247_s25 + $0x20] sm:$0xff]  ;;  %v264_v7 = vld [vmem:[%s247_s25 + $0x38] sm:$0xff] }
  0x35   : > { %v262_v5 = vld [vmem:[%s247_s25 + $0x28] sm:$0xff]  ;;  %v263_v8 = vld [vmem:[%s247_s25 + $0x30] sm:$0xff]  ;;  %v265_v10 = vld [vmem:[%s247_s25 + $0x40] sm:$0xff] }
  0x36   : > { %v266_v9 = vld [vmem:[%s247_s25 + $0x48] sm:$0xff]  ;;  %v268_v11 = vld [vmem:[%s247_s25 + $0x58] sm:$0xff]  ;;  %v267_v12 = vld [vmem:[%s247_s25 + $0x50] sm:$0xff] }
  0x37   : > { %v270_v13 = vld [vmem:[%s247_s25 + $0x68] sm:$0xff]  ;;  %v269_v14 = vld [vmem:[%s247_s25 + $0x60] sm:$0xff]  ;;  %v272_v15 = vld [vmem:[%s247_s25 + $0x78] sm:$0xff] }
  0x38   : > { %292 = vperm.xlu1 %857, %v260_v3   ;;  %282 = vperm.xlu0 %856, %v258_v4   ;;  %v271_v16 = vld [vmem:[%s247_s25 + $0x70] sm:$0xff] }
  0x3c   : > { %302 = vperm.xlu1 %857, %v262_v5   ;;  %297 = vperm.xlu0 %856, %v261_v6  }
  0x40   : > { %312 = vperm.xlu1 %857, %v264_v7   ;;  %307 = vperm.xlu0 %856, %v263_v8  }
  0x44   : > { %322 = vperm.xlu1 %857, %v266_v9   ;;  %317 = vperm.xlu0 %856, %v265_v10  }
  0x48   : > { %332 = vperm.xlu1 %857, %v268_v11   ;;  %327 = vperm.xlu0 %856, %v267_v12  }
  0x4c   : > { %342 = vperm.xlu1 %857, %v270_v13   ;;  %337 = vperm.xlu0 %856, %v269_v14  }
  0x50   : > { %352 = vperm.xlu1 %857, %v272_v15   ;;  %347 = vperm.xlu0 %856, %v271_v16  }
  0x54   : > { %859 = vset.pattern.permute.xlu1 %v967_v17  ;;  %858 = vset.pattern.permute.xlu0 %v967_v17 }
  0x55   : > { %402 = vperm.xlu1 %859, %v258_v4   ;;  %398 = vperm.xlu0 %858, %v257_v2  }
  0x59   : > { %406 = vperm.xlu1 %859, %v259_v1   ;;  %410 = vperm.xlu0 %858, %v260_v3  }
  0x5d   : > { %414 = vperm.xlu1 %859, %v261_v6   ;;  %860 = vset.pattern.permute.xlu0 %v968_v18 }
  0x5e   : > { %498 = vperm.xlu0 %860, %v257_v2  }
  0x61   : > { %861 = vset.pattern.permute.xlu1 %v968_v18 }
  0x62   : > { %502 = vperm.xlu1 %861, %v258_v4   ;;  %510 = vperm.xlu0 %860, %v260_v3  }
  0x66   : > { %506 = vperm.xlu1 %861, %v259_v1   ;;  %514 = vperm.xlu0 %860, %v261_v6  }
  0x6a   : > { %862 = vset.pattern.permute.xlu1 %v967_v17  ;;  %518 = vperm.xlu0 %860, %v262_v5  }
  0x6b   : > { %418 = vperm.xlu1 %862, %v262_v5  }
  0x6e   : > { %522 = vperm.xlu0 %860, %v263_v8  }
  0x6f   : > { %422 = vperm.xlu1 %862, %v263_v8  }
  0x72   : > { %526 = vperm.xlu0 %860, %v264_v7  }
  0x73   : > { %426 = vperm.xlu1 %862, %v264_v7  }
  0x76   : > { %530 = vperm.xlu0 %860, %v265_v10  }
  0x77   : > { %430 = vperm.xlu1 %862, %v265_v10  }
  0x7a   : > { %534 = vperm.xlu0 %860, %v266_v9  }
  0x7b   : > { %434 = vperm.xlu1 %862, %v266_v9  }
  0x7e   : > { %538 = vperm.xlu0 %860, %v267_v12  }
  0x7f   : > { %438 = vperm.xlu1 %862, %v267_v12  }
  0x82   : > { %542 = vperm.xlu0 %860, %v268_v11  }
  0x83   : > { %442 = vperm.xlu1 %862, %v268_v11  }
  0x86   : > { %546 = vperm.xlu0 %860, %v269_v14  }
  0x87   : > { %446 = vperm.xlu1 %862, %v269_v14  }
  0x8a   : > { %550 = vperm.xlu0 %860, %v270_v13  }
  0x8b   : > { %450 = vperm.xlu1 %862, %v270_v13  }
  0x8e   : > { %554 = vperm.xlu0 %860, %v271_v16  }
  0x8f   : > { %454 = vperm.xlu1 %862, %v271_v16  }
  0x93   : > { %458 = vperm.xlu1 %862, %v272_v15  }
  0x97   : > { %863 = vset.pattern.permute.xlu1 %v968_v18 }
  0x98   : > { %558 = vperm.xlu1 %863, %v272_v15  }
  0xaf   : > { %v288_v19 = vpop.permute.xlu1 %287  ;;  %v278_v20 = vpop.permute.xlu0 %277 }
  0xb0   : > { %v359_v48 = vmul.f32 %v1111_v45, %v278_v20  ;;  %v361_v55 = vmul.f32 %v1111_v45, %v288_v19 }
  0xb2   : > { %v381_v57 = vadd.f32 %v1120_v53, %v359_v48  ;;  %v383_v4 = vadd.f32 %v1120_v53, %v361_v55 }
  0xb3   : > { %v293_v21 = vpop.permute.xlu1 %292  ;;  %v283_v22 = vpop.permute.xlu0 %282 }
  0xb4   : > { %v360_v47 = vmul.f32 %v1111_v45, %v283_v22  ;;  %v362_v58 = vmul.f32 %v1111_v45, %v293_v21 }
  0xb6   : > { %v382_v56 = vadd.f32 %v1120_v53, %v360_v47  ;;  %v384_v6 = vadd.f32 %v1120_v53, %v362_v58 }
  0xb7   : > { %v303_v23 = vpop.permute.xlu1 %302  ;;  %v298_v24 = vpop.permute.xlu0 %297 }
  0xb8   : > { %v363_v60 = vmul.f32 %v1111_v45, %v298_v24  ;;  %v364_v17 = vmul.f32 %v1111_v45, %v303_v23 }
  0xba   : > { %v385_v10 = vadd.f32 %v1120_v53, %v363_v60  ;;  %v386_v41 = vadd.f32 %v1120_v53, %v364_v17 }
  0xbb   : > { %v1091_v25 = vpop.permute.xlu1 %312  ;;  %v1093_v26 = vpop.permute.xlu0 %307 }
  0xbf   : > { %v1095_v27 = vpop.permute.xlu1 %322  ;;  %v1097_v28 = vpop.permute.xlu0 %317 }
  0xc3   : > { %v1099_v29 = vpop.permute.xlu1 %332  ;;  %v1101_v30 = vpop.permute.xlu0 %327 }
  0xc7   : > { %v1103_v31 = vpop.permute.xlu1 %342  ;;  %v1105_v32 = vpop.permute.xlu0 %337 }
  0xcb   : > { %v1107_v34 = vpop.permute.xlu1 %352  ;;  %v1109_v35 = vpop.permute.xlu0 %347 }
  0xd0   : > { %v403_v37 = vpop.permute.xlu1 %402  ;;  %v399_v38 = vpop.permute.xlu0 %398 }
  0xd1   : > { %v466_v51 = vmul.f32 %v1113_v46, %v403_v37  ;;  %v465_v54 = vmul.f32 %v1113_v46, %v399_v38 }
  0xd3   : > { %v482_v61 = vadd.f32 %v466_v51, %v382_v56  ;;  %v481_v0 = vadd.f32 %v465_v54, %v381_v57 }
  0xd4   : > { %v407_v42 = vpop.permute.xlu1 %406  ;;  %v411_v43 = vpop.permute.xlu0 %410 }
  0xd5   : > { %v467_v1 = vmul.f32 %v1113_v46, %v407_v42  ;;  %v468_v2 = vmul.f32 %v1113_v46, %v411_v43  ;;  %v365_v42 = vmul.f32 %v1111_v45, %v1093_v26 }
  0xd7   : > { %v483_v13 = vadd.f32 %v467_v1, %v383_v4  ;;  %v484_v14 = vadd.f32 %v468_v2, %v384_v6  ;;  %v387_v58 = vadd.f32 %v1120_v53, %v365_v42  ;;  %v370_v42 = vmul.f32 %v1111_v45, %v1099_v29 }
  0xd8   : > { %v415_v49 = vpop.permute.xlu1 %414  ;;  %v371_v29 = vmul.f32 %v1111_v45, %v1105_v32 }
  0xd9   : > { %v499_v52 = vpop.permute.xlu0 %498  ;;  %v469_v5 = vmul.f32 %v1113_v46, %v415_v49 }
  0xda   : > { %v565_v59 = vmul.f32 %v1117_v50, %v499_v52  ;;  %v366_v52 = vmul.f32 %v1111_v45, %v1091_v25  ;;  %v367_v25 = vmul.f32 %v1111_v45, %v1097_v28 }
  0xdb   : > { %v485_v18 = vadd.f32 %v469_v5, %v385_v10 }
  0xdc   : > { %v581_v7 = vadd.f32 %v565_v59, %v481_v0  ;;  %v388_v2 = vadd.f32 %v1120_v53, %v366_v52 }
  0xdd   : > { %v503_v62 = vpop.permute.xlu1 %502  ;;  %v511_v63 = vpop.permute.xlu0 %510 }
  0xde   : > { %v566_v3 = vmul.f32 %v1117_v50, %v503_v62  ;;  %v568_v9 = vmul.f32 %v1117_v50, %v511_v63  ;;  %v618_v20 = vmul.f32 %v581_v7, %v581_v7 }
  0xe0   : > { %v582_v8 = vadd.f32 %v566_v3, %v482_v61  ;;  %v584_v22 = vadd.f32 %v568_v9, %v484_v14 }
  0xe1   : > { %v507_v11 = vpop.permute.xlu1 %506  ;;  %v515_v12 = vpop.permute.xlu0 %514 }
  0xe2   : > { %v619_v15 = vmul.f32 %v582_v8, %v582_v8  ;;  %v567_v16 = vmul.f32 %v1117_v50, %v507_v11  ;;  %v569_v19 = vmul.f32 %v1117_v50, %v515_v12  ;;  %v597_v21 = vadd.f32 %v582_v8, %v581_v7 }
  0xe3   : > { %v621_v43 = vmul.f32 %v584_v22, %v584_v22  ;;  %v368_v11 = vmul.f32 %v1111_v45, %v1095_v27  ;;  %v369_v27 = vmul.f32 %v1111_v45, %v1101_v30 }
  0xe4   : > { %v583_v24 = vadd.f32 %v567_v16, %v483_v13  ;;  %v634_v36 = vadd.f32 %v619_v15, %v618_v20  ;;  %v585_v39 = vadd.f32 %v569_v19, %v485_v18  ;;  %v389_v13 = vadd.f32 %v1120_v53, %v367_v25 }
  0xe5   : > { %v519_v33 = vpop.permute.xlu0 %518 }
  0xe6   : > { %v598_v37 = vadd.f32 %v597_v21, %v583_v24  ;;  %v620_v38 = vmul.f32 %v583_v24, %v583_v24  ;;  %v419_v40 = vpop.permute.xlu1 %418  ;;  %v570_v48 = vmul.f32 %v1117_v50, %v519_v33  ;;  %v622_v56 = vmul.f32 %v585_v39, %v585_v39 }
  0xe7   : > { %v470_v23 = vmul.f32 %v1113_v46, %v419_v40 }
  0xe8   : > { %v635_v44 = vadd.f32 %v634_v36, %v620_v38  ;;  %v599_v47 = vadd.f32 %v598_v37, %v584_v22  ;;  %v390_v22 = vadd.f32 %v1120_v53, %v368_v11 }
  0xe9   : > { %v486_v49 = vadd.f32 %v470_v23, %v386_v41  ;;  %v523_v51 = vpop.permute.xlu0 %522 }
  0xea   : > { %v636_v54 = vadd.f32 %v635_v44, %v621_v43  ;;  %v600_v55 = vadd.f32 %v599_v47, %v585_v39  ;;  %v423_v57 = vpop.permute.xlu1 %422  ;;  %v571_v63 = vmul.f32 %v1117_v50, %v523_v51  ;;  %v391_v43 = vadd.f32 %v1120_v53, %v369_v27 }
  0xeb   : > { %v586_v59 = vadd.f32 %v570_v48, %v486_v49  ;;  %v471_v26 = vmul.f32 %v1113_v46, %v423_v57 }
  0xec   : > { %v637_v60 = vadd.f32 %v636_v54, %v622_v56  ;;  %v392_v56 = vadd.f32 %v1120_v53, %v370_v42 }
  0xed   : > { %v601_v61 = vadd.f32 %v600_v55, %v586_v59  ;;  %v623_v62 = vmul.f32 %v586_v59, %v586_v59  ;;  %v487_v0 = vadd.f32 %v471_v26, %v387_v58  ;;  %v527_v1 = vpop.permute.xlu0 %526 }
  0xee   : > { %v427_v3 = vpop.permute.xlu1 %426  ;;  %v572_v8 = vmul.f32 %v1117_v50, %v527_v1 }
  0xef   : > { %v638_v4 = vadd.f32 %v637_v60, %v623_v62  ;;  %v587_v5 = vadd.f32 %v571_v63, %v487_v0  ;;  %v472_v6 = vmul.f32 %v1113_v46, %v427_v3  ;;  %v372_v0 = vmul.f32 %v1111_v45, %v1103_v31 }
  0xf0   : > { %v373_v31 = vmul.f32 %v1111_v45, %v1109_v35 }
  0xf1   : > { %v624_v7 = vmul.f32 %v587_v5, %v587_v5  ;;  %v488_v9 = vadd.f32 %v472_v6, %v388_v2  ;;  %v531_v10 = vpop.permute.xlu0 %530  ;;  %v602_v14 = vadd.f32 %v601_v61, %v587_v5  ;;  %v393_v2 = vadd.f32 %v1120_v53, %v371_v29 }
  0xf2   : > { %v431_v12 = vpop.permute.xlu1 %430  ;;  %v573_v28 = vmul.f32 %v1117_v50, %v531_v10  ;;  %v394_v10 = vadd.f32 %v1120_v53, %v372_v0 }
  0xf3   : > { %v588_v15 = vadd.f32 %v572_v8, %v488_v9  ;;  %v473_v16 = vmul.f32 %v1113_v46, %v431_v12  ;;  %v639_v17 = vadd.f32 %v638_v4, %v624_v7 }
  0xf5   : > { %v603_v18 = vadd.f32 %v602_v14, %v588_v15  ;;  %v625_v19 = vmul.f32 %v588_v15, %v588_v15  ;;  %v489_v20 = vadd.f32 %v473_v16, %v389_v13  ;;  %v535_v21 = vpop.permute.xlu0 %534 }
  0xf6   : > { %v435_v24 = vpop.permute.xlu1 %434  ;;  %v574_v39 = vmul.f32 %v1117_v50, %v535_v21 }
  0xf7   : > { %v640_v33 = vadd.f32 %v639_v17, %v625_v19  ;;  %v589_v36 = vadd.f32 %v573_v28, %v489_v20  ;;  %v474_v37 = vmul.f32 %v1113_v46, %v435_v24 }
  0xf9   : > { %v626_v38 = vmul.f32 %v589_v36, %v589_v36  ;;  %v490_v40 = vadd.f32 %v474_v37, %v390_v22  ;;  %v539_v41 = vpop.permute.xlu0 %538  ;;  %v604_v44 = vadd.f32 %v603_v18, %v589_v36  ;;  %v395_v18 = vadd.f32 %v1120_v53, %v373_v31 }
  0xfa   : > { %v439_v23 = vpop.permute.xlu1 %438  ;;  %v575_v30 = vmul.f32 %v1117_v50, %v539_v41  ;;  %v374_v36 = vmul.f32 %v1111_v45, %v1107_v34 }
  0xfb   : > { %v590_v47 = vadd.f32 %v574_v39, %v490_v40  ;;  %v475_v48 = vmul.f32 %v1113_v46, %v439_v23  ;;  %v641_v49 = vadd.f32 %v640_v33, %v626_v38 }
  0xfc   : > { %v396_v42 = vadd.f32 %v1120_v53, %v374_v36 }
  0xfd   : > { %v605_v51 = vadd.f32 %v604_v44, %v590_v47  ;;  %v627_v52 = vmul.f32 %v590_v47, %v590_v47  ;;  %v491_v54 = vadd.f32 %v475_v48, %v391_v43  ;;  %v543_v55 = vpop.permute.xlu0 %542 }
  0xfe   : > { %v443_v57 = vpop.permute.xlu1 %442  ;;  %v576_v61 = vmul.f32 %v1117_v50, %v543_v55 }
  0xff   : > { %v642_v58 = vadd.f32 %v641_v49, %v627_v52  ;;  %v591_v59 = vadd.f32 %v575_v30, %v491_v54  ;;  %v476_v26 = vmul.f32 %v1113_v46, %v443_v57 }
 0x101   : > { %v628_v60 = vmul.f32 %v591_v59, %v591_v59  ;;  %v492_v62 = vadd.f32 %v476_v26, %v392_v56  ;;  %v547_v63 = vpop.permute.xlu0 %546  ;;  %v606_v3 = vadd.f32 %v605_v51, %v591_v59 }
 0x102   : > { %v447_v1 = vpop.permute.xlu1 %446  ;;  %v577_v32 = vmul.f32 %v1117_v50, %v547_v63 }
 0x103   : > { %v592_v25 = vadd.f32 %v576_v61, %v492_v62  ;;  %v477_v4 = vmul.f32 %v1113_v46, %v447_v1  ;;  %v643_v5 = vadd.f32 %v642_v58, %v628_v60 }
 0x105   : > { %v607_v6 = vadd.f32 %v606_v3, %v592_v25  ;;  %v629_v7 = vmul.f32 %v592_v25, %v592_v25  ;;  %v493_v8 = vadd.f32 %v477_v4, %v393_v2  ;;  %v551_v9 = vpop.permute.xlu0 %550 }
 0x106   : > { %v451_v11 = vpop.permute.xlu1 %450  ;;  %v578_v16 = vmul.f32 %v1117_v50, %v551_v9 }
 0x107   : > { %v644_v12 = vadd.f32 %v643_v5, %v629_v7  ;;  %v593_v13 = vadd.f32 %v577_v32, %v493_v8  ;;  %v478_v14 = vmul.f32 %v1113_v46, %v451_v11 }
 0x109   : > { %v630_v15 = vmul.f32 %v593_v13, %v593_v13  ;;  %v494_v28 = vadd.f32 %v478_v14, %v394_v10  ;;  %v608_v19 = vadd.f32 %v607_v6, %v593_v13  ;;  %v555_v21 = vpop.permute.xlu0 %554 }
 0x10a   : > { %v455_v17 = vpop.permute.xlu1 %454  ;;  %v579_v37 = vmul.f32 %v1117_v50, %v555_v21 }
 0x10b   : > { %v594_v20 = vadd.f32 %v578_v16, %v494_v28  ;;  %v479_v22 = vmul.f32 %v1113_v46, %v455_v17  ;;  %v645_v24 = vadd.f32 %v644_v12, %v630_v15 }
 0x10d   : > { %v609_v27 = vadd.f32 %v608_v19, %v594_v20  ;;  %v631_v33 = vmul.f32 %v594_v20, %v594_v20  ;;  %v495_v35 = vadd.f32 %v479_v22, %v395_v18 }
 0x10e   : > { %v459_v38 = vpop.permute.xlu1 %458 }
 0x10f   : > { %v646_v39 = vadd.f32 %v645_v24, %v631_v33  ;;  %v595_v40 = vadd.f32 %v579_v37, %v495_v35  ;;  %v480_v41 = vmul.f32 %v1113_v46, %v459_v38 }
 0x111   : > { %v632_v43 = vmul.f32 %v595_v40, %v595_v40  ;;  %v496_v44 = vadd.f32 %v480_v41, %v396_v42  ;;  %v610_v30 = vadd.f32 %v609_v27, %v595_v40 }
 0x113   : > { %v559_v23 = vpop.permute.xlu1 %558  ;;  %v647_v52 = vadd.f32 %v646_v39, %v632_v43 }
 0x114   : > { %v580_v47 = vmul.f32 %v1117_v50, %v559_v23 }
 0x116   : > { %v596_v48 = vadd.f32 %v580_v47, %v496_v44 }
 0x118   : > { %v611_v49 = vadd.f32 %v610_v30, %v596_v48  ;;  %v633_v51 = vmul.f32 %v596_v48, %v596_v48 }
 0x11a   : > { %v612_v34 = vrot.slane %v611_v49, 4  ;;  %v648_v45 = vadd.f32 %v647_v52, %v633_v51 }
 0x11c   : > { %v613_v54 = vadd.f32 %v612_v34, %v611_v49  ;;  %v649_v55 = vrot.slane %v648_v45, 4 }
 0x11e   : > { %v614_v56 = vrot.slane %v613_v54, 2  ;;  %v650_v57 = vadd.f32 %v649_v55, %v648_v45 }
 0x120   : > { %v615_v29 = vadd.f32 %v614_v56, %v613_v54  ;;  %v651_v46 = vrot.slane %v650_v57, 2 }
 0x122   : > { %v616_v58 = vrot.slane %v615_v29, 1  ;;  %v652_v53 = vadd.f32 %v651_v46, %v650_v57  ;;  %658 = sbr.rel (%p788_p7) target bundleno = 297 (0x129), region = 44 }
 0x124   : > { %v617_v59 = vadd.f32 %v616_v58, %v615_v29  ;;  %v653_v26 = vrot.slane %v652_v53, 1 }
 0x126   : > { %v654_v60 = vadd.f32 %v653_v26, %v652_v53 }
 0x127   : > { %v969_v50 = vmov 0.0  }
 0x128   : > { %659 = vst [vmem:[%s1084_s27] sm:$0x1] %v969_v50  ;;  %660 = vst [vmem:[%s1089_s30] sm:$0x1] %v969_v50 }
 0x129 PF:  {}
 0x12f   : > { %v661_v61 = vld [vmem:[%s1084_s27] sm:$0x1] }
 0x130   : > { %v664_v62 = vld [vmem:[%s1089_s30] sm:$0x1]  ;;  %v662_v63 = vadd.f32 %v661_v61, %v617_v59 }
 0x131   : > { %v665_v0 = vadd.f32 %v664_v62, %v654_v60 }
 0x132   : > { %663 = vst [vmem:[%s1084_s27] sm:$0x1] %v662_v63 }
 0x133   : > { %666 = vst [vmem:[%s1089_s30] sm:$0x1] %v665_v0 }
 0x134 PF: > { %s17_s19 = sadd.s32 1, %s962_s19   ;;  %s1223_s15 = smov %s954_s17 }
 0x135   : > { %p14_p8 = scmp.ge.s32.totalorder %s17_s19, 18   ;;  %s1224_s16 = smov %s958_s18 }
 0x136   : > { %s1225_s17 = smov %s1228_s21  ;;  %s1226_s18 = smov %s1232_s22 }
 0x137   :  { %16 = sbr.rel (!%p14_p8) target bundleno = 4 (0x4), region = 87 }
 0x13c   :  { %696 = vsyncpa [#allocation3], 1 }
 0x13d   :  { %698 = vsyncpa [#allocation3 + $0x1], 1 }
 0x13e   :  { %699 = vsyncpa [#allocation5], 1 }

// kernel: pointnet_encoder.7
= control target key start
LH: loop header
LB: loop body
LE: loop exit
PB: predicated region body
PF: predicated region fallthrough
CT: control target
= control target key end

     0   :  { %s1148_s24 = smov 0   ;;  %s1150_s25 = smov 0   ;;  %s1560_s0 = inlined_call_operand.vmem [shape: f32[2048,128], index: 0, kind: input, shape index: {}]   ;;  %s1561_s1 = inlined_call_operand.vmem [shape: f32[1,128], index: 1, kind: input, shape index: {}]   ;;  %s1562_s2 = inlined_call_operand.vmem [shape: f32[1,128], index: 2, kind: input, shape index: {}]   ;;  %s1563_s3 = inlined_call_operand.vmem [shape: f32[128,256], index: 3, kind: input, shape index: {}]   ;;  %s1564_s4 = inlined_call_operand.vmem [shape: f32[1,256], index: 4, kind: input, shape index: {}]   ;;  %s1565_s5 = inlined_call_operand.vmem [shape: f32[2048,256], index: 5, kind: output, shape index: {0}]   ;;  %s1566_s6 = inlined_call_operand.vmem [shape: f32[2,1,256], index: 6, kind: output, shape index: {1}]   ;;  %s1567_s7 = inlined_call_operand.vmem [shape: f32[2,1,256], index: 7, kind: output, shape index: {2}]  }
   0x1   :  { %s1152_s26 = smov 0   ;;  %s1154_s27 = smov 0  }
   0x2   :  { %s1156_s28 = smov 0  }
   0x3 LB: > { %s27_s29 = sadd.s32 1, %s1095_s26  ;;  %s30_s30 = sadd.s32 1, %s1099_s27  ;;  %s1103_s28 = sphi %s1156_s28, %s18_s28   ;;  %s1099_s27 = sphi %s1154_s27, %s1572_s27   ;;  %s1095_s26 = sphi %s1152_s26, %s1571_s26   ;;  %s1091_s25 = sphi %s1150_s25, %s1570_s25   ;;  %s1087_s24 = sphi %s1148_s24, %s1569_s24  }
   0x4   : > { %p28_p0 = scmp.ge.s32.totalorder %s27_s29, 8  ;;  %p974_p1 = scmp.ge.s32.totalorder %s1103_s28, 1 }
   0x5   : > { %p267_p2 = scmp.lt.s32.totalorder %s1103_s28, 17 }
   0x6   : > { %s1574_s29 = smov (%p28_p0, %s27_s29), 0  ;;  %s1576_s30 = smov (!%p28_p0, %s30_s30), %s1099_s27 }
   0x7   : > { %p268_p3 = pnand %p974_p1, %p267_p2  ;;  %p32_p4 = scmp.ge.s32.totalorder %s1576_s30, 2 }
   0x8   : > { %p333_p5 = scmp.lt.s32.totalorder (!%p268_p3), %s1091_s25, 1  ;;  %s975_s14 = sshll.u32 (!%p268_p3), %s1091_s25, 3 }
   0x9   : > { %s1578_s30 = smov (%p32_p4, %s1576_s30), 0  ;;  %271 = sbr.rel (%p268_p3) target bundleno = 319 (0x13f), region = 40 }
   0xa   : > { %s313_s17 = sadd.s32 (!%p268_p3), %s1087_s24, %s975_s14  ;;  %p986_p7 = scmp.ne.s32.totalorder (!%p268_p3), %s1087_s24, 0 }
   0xb   : > { %s976_s22 = sshll.u32 (!%p268_p3), %s313_s17, 4 }
   0xc   : > { %p1202_p6 = scmp.lt.s32.totalorder (!%p268_p3), %s976_s22, 255 }
   0xe   : > { %v450_v0 = vld [vmem:[%s1563_s3 + $0xf8] sm:$0xff]  ;;  %v449_v1 = vld [vmem:[%s1563_s3 + $0xf0] sm:$0xff]  ;;  %v448_v2 = vld [vmem:[%s1563_s3 + $0xe8] sm:$0xff]  ;;  %s1580_s25 = smov (!%p333_p5, %s1091_s25), 1  ;;  %s1582_s22 = smov (!%p1202_p6, %s976_s22), 255  ;;  %v1105_v24 = vmov 0.0  }
   0xf   : > { %463 = vmatprep.subr.mxu0 %v450_v0  ;;  %v447_v3 = vld [vmem:[%s1563_s3 + $0xe0] sm:$0xff]  ;;  %990 = vmatprep.subr.mxu1 %v450_v0  ;;  %v446_v4 = vld [vmem:[%s1563_s3 + $0xd8] sm:$0xff]  ;;  %v445_v5 = vld [vmem:[%s1563_s3 + $0xd0] sm:$0xff]  ;;  %s982_s23 = sshll.u32 %s1580_s25, 1  ;;  %s977_s18 = sshll.u32 %s1582_s22, 3 }
  0x10   : > { %464 = vmatpush1.msra.mxu0 %v449_v1  ;;  %1006 = vmatpush1.msra.mxu1 %v449_v1  ;;  %v444_v6 = vld [vmem:[%s1563_s3 + $0xc8] sm:$0xff]  ;;  %s1209_s13 = scalar_lea.vmem %s1566_s6, %s982_s23  ;;  %s1214_s25 = scalar_lea.vmem %s1567_s7, %s982_s23  ;;  %v443_v7 = vld [vmem:[%s1563_s3 + $0xc0] sm:$0xff]  ;;  %v442_v8 = vld [vmem:[%s1563_s3 + $0xb8] sm:$0xff] }
  0x11   : > { %465 = vmatprep.subr.mxu0 %v448_v2  ;;  %991 = vmatprep.subr.mxu1 %v448_v2  ;;  %v441_v9 = vld [vmem:[%s1563_s3 + $0xb0] sm:$0xff]  ;;  %v440_v10 = vld [vmem:[%s1563_s3 + $0xa8] sm:$0xff]  ;;  %v439_v11 = vld [vmem:[%s1563_s3 + $0xa0] sm:$0xff]  ;;  %s1257_s14 = scalar_lea.vmem %s1560_s0, %s977_s18  ;;  %s989_s21 = sshll.u32 %s1582_s22, 4 }
  0x12   : > { %466 = vmatpush1.msra.mxu0 %v447_v3  ;;  %1007 = vmatpush1.msra.mxu1 %v447_v3  ;;  %v438_v12 = vld [vmem:[%s1563_s3 + $0x98] sm:$0xff]  ;;  %v437_v13 = vld [vmem:[%s1563_s3 + $0x90] sm:$0xff]  ;;  %v436_v14 = vld [vmem:[%s1563_s3 + $0x88] sm:$0xff]  ;;  %s1391_s9 = scalar_lea.vmem %s1565_s5, %s989_s21 }
  0x13   : > { %467 = vmatprep.subr.mxu0 %v446_v4  ;;  %992 = vmatprep.subr.mxu1 %v446_v4  ;;  %v435_v15 = vld [vmem:[%s1563_s3 + $0x80] sm:$0xff]  ;;  %v434_v16 = vld [vmem:[%s1563_s3 + $0x78] sm:$0xff]  ;;  %v433_v17 = vld [vmem:[%s1563_s3 + $0x70] sm:$0xff] }
  0x14   : > { %468 = vmatpush1.msra.mxu0 %v445_v5  ;;  %1008 = vmatpush1.msra.mxu1 %v445_v5  ;;  %v432_v18 = vld [vmem:[%s1563_s3 + $0x68] sm:$0xff]  ;;  %v431_v19 = vld [vmem:[%s1563_s3 + $0x60] sm:$0xff]  ;;  %v430_v20 = vld [vmem:[%s1563_s3 + $0x58] sm:$0xff] }
  0x15   : > { %469 = vmatprep.subr.mxu0 %v444_v6  ;;  %993 = vmatprep.subr.mxu1 %v444_v6  ;;  %v341_v21 = vld [vmem:[%s1257_s14] sm:$0xff]  ;;  %v429_v23 = vld [vmem:[%s1563_s3 + $0x50] sm:$0xff]  ;;  %v428_v25 = vld [vmem:[%s1563_s3 + $0x48] sm:$0xff] }
  0x16   : > { %470 = vmatpush1.msra.mxu0 %v443_v7  ;;  %1009 = vmatpush1.msra.mxu1 %v443_v7  ;;  %v1272_v22 = vld [vmem:[%s1561_s1] ss:$0 sm:$0xff]  ;;  %v426_v29 = vld [vmem:[%s1563_s3 + $0x38] sm:$0xff]  ;;  %v342_v31 = vld [vmem:[%s1257_s14 + $0x8] sm:$0xff] }
  0x17   : > { %471 = vmatprep.subr.mxu0 %v442_v8  ;;  %994 = vmatprep.subr.mxu1 %v442_v8  ;;  %v349_v26 = vld [vmem:[%s1257_s14 + $0x40] sm:$0xff]  ;;  %v364_v28 = vmul.f32 %v1272_v22, %v341_v21  ;;  %v425_v32 = vld [vmem:[%s1563_s3 + $0x30] sm:$0xff]  ;;  %v424_v34 = vld [vmem:[%s1563_s3 + $0x28] sm:$0xff]  ;;  %v365_v38 = vmul.f32 %v1272_v22, %v342_v31 }
  0x18   : > { %472 = vmatpush1.msra.mxu0 %v441_v9  ;;  %1010 = vmatpush1.msra.mxu1 %v441_v9  ;;  %v427_v27 = vld [vmem:[%s1563_s3 + $0x40] sm:$0xff]  ;;  %v372_v33 = vmul.f32 %v1272_v22, %v349_v26  ;;  %v350_v35 = vld [vmem:[%s1257_s14 + $0x48] sm:$0xff]  ;;  %v422_v39 = vld [vmem:[%s1563_s3 + $0x18] sm:$0xff] }
  0x19   : > { %473 = vmatprep.subr.mxu0 %v440_v10  ;;  %995 = vmatprep.subr.mxu1 %v440_v10  ;;  %v1292_v30 = vld [vmem:[%s1562_s2] ss:$0 sm:$0xff]  ;;  %v343_v40 = vld [vmem:[%s1257_s14 + $0x10] sm:$0xff]  ;;  %v373_v43 = vmul.f32 %v1272_v22, %v350_v35  ;;  %v420_v44 = vld [vmem:[%s1563_s3 + $0x8] sm:$0xff] }
  0x1a   : > { %474 = vmatpush1.msra.mxu0 %v439_v11  ;;  %1011 = vmatpush1.msra.mxu1 %v439_v11  ;;  %v423_v36 = vld [vmem:[%s1563_s3 + $0x20] sm:$0xff]  ;;  %v387_v37 = vadd.f32 %v1292_v30, %v364_v28  ;;  %v421_v41 = vld [vmem:[%s1563_s3 + $0x10] sm:$0xff]  ;;  %v395_v42 = vadd.f32 %v1292_v30, %v372_v33  ;;  %v388_v48 = vadd.f32 %v1292_v30, %v365_v38  ;;  %v344_v50 = vld [vmem:[%s1257_s14 + $0x18] sm:$0xff] }
  0x1b   : > { %475 = vmatprep.subr.mxu0 %v438_v12  ;;  %996 = vmatprep.subr.mxu1 %v438_v12  ;;  %v351_v45 = vld [vmem:[%s1257_s14 + $0x50] sm:$0xff]  ;;  %v419_v46 = vld [vmem:[%s1563_s3] sm:$0xff]  ;;  %v366_v49 = vmul.f32 %v1272_v22, %v343_v40  ;;  %v396_v52 = vadd.f32 %v1292_v30, %v373_v43  ;;  %v352_v54 = vld [vmem:[%s1257_s14 + $0x58] sm:$0xff]  ;;  %v367_v57 = vmul.f32 %v1272_v22, %v344_v50 }
  0x1c   : > { %476 = vmatpush1.msra.mxu0 %v437_v13  ;;  %1012 = vmatpush1.msra.mxu1 %v437_v13  ;;  %v403_v47 = vmax.f32 %v387_v37, 0.0  ;;  %v411_v51 = vmax.f32 %v395_v42, 0.0  ;;  %v374_v53 = vmul.f32 %v1272_v22, %v351_v45  ;;  %v404_v55 = vmax.f32 %v388_v48, 0.0  ;;  %v345_v58 = vld [vmem:[%s1257_s14 + $0x20] sm:$0xff]  ;;  %v346_v2 = vld [vmem:[%s1257_s14 + $0x28] sm:$0xff]  ;;  %v347_v10 = vld [vmem:[%s1257_s14 + $0x30] sm:$0xff] }
  0x1d   : > { %477 = vmatprep.subr.mxu0 %v436_v14  ;;  %997 = vmatprep.subr.mxu1 %v436_v14  ;;  %v389_v56 = vadd.f32 %v1292_v30, %v366_v49  ;;  %v412_v59 = vmax.f32 %v396_v52, 0.0  ;;  %v375_v61 = vmul.f32 %v1272_v22, %v352_v54  ;;  %v353_v62 = vld [vmem:[%s1257_s14 + $0x60] sm:$0xff]  ;;  %v390_v0 = vadd.f32 %v1292_v30, %v367_v57  ;;  %v354_v6 = vld [vmem:[%s1257_s14 + $0x68] sm:$0xff]  ;;  %v355_v14 = vld [vmem:[%s1257_s14 + $0x70] sm:$0xff] }
  0x1e   : > { %478 = vmatpush1.msra.mxu0 %v435_v15  ;;  %1013 = vmatpush1.msra.mxu1 %v435_v15  ;;  %v397_v60 = vadd.f32 %v1292_v30, %v374_v53  ;;  %v368_v1 = vmul.f32 %v1272_v22, %v345_v58  ;;  %v376_v5 = vmul.f32 %v1272_v22, %v353_v62  ;;  %v453_v37 = vlaneseq }
  0x1f   : > { %479 = vmatprep.subr.mxu0 %v434_v16  ;;  %998 = vmatprep.subr.mxu1 %v434_v16  ;;  %v405_v63 = vmax.f32 %v389_v56, 0.0  ;;  %v398_v4 = vadd.f32 %v1292_v30, %v375_v61  ;;  %v406_v7 = vmax.f32 %v390_v0, 0.0  ;;  %v369_v9 = vmul.f32 %v1272_v22, %v346_v2 }
  0x20   : > { %480 = vmatpush1.msra.mxu0 %v433_v17  ;;  %1014 = vmatpush1.msra.mxu1 %v433_v17  ;;  %v413_v3 = vmax.f32 %v397_v60, 0.0  ;;  %v391_v8 = vadd.f32 %v1292_v30, %v368_v1  ;;  %v399_v12 = vadd.f32 %v1292_v30, %v376_v5  ;;  %v377_v13 = vmul.f32 %v1272_v22, %v354_v6 }
  0x21   : > { %481 = vmatprep.subr.mxu0 %v432_v18  ;;  %527 = vmatprep.mubr.f32.mxu0 %v1105_v24  ;;  %v414_v11 = vmax.f32 %v398_v4, 0.0  ;;  %v392_v16 = vadd.f32 %v1292_v30, %v369_v9  ;;  %v370_v17 = vmul.f32 %v1272_v22, %v347_v10  ;;  %v378_v21 = vmul.f32 %v1272_v22, %v355_v14 }
  0x22   : > { %482 = vmatpush1.msra.mxu0 %v431_v19  ;;  %999 = vmatprep.subr.mxu1 %v432_v18  ;;  %v407_v15 = vmax.f32 %v391_v8, 0.0  ;;  %v348_v18 = vld [vmem:[%s1257_s14 + $0x38] sm:$0xff]  ;;  %v1376_v38 = vshrl.u32 %v453_v37, 7 }
  0x23   : > { %483 = vmatprep.subr.mxu0 %v430_v20  ;;  %1015 = vmatpush1.msra.mxu1 %v431_v19  ;;  %v415_v19 = vmax.f32 %v399_v12, 0.0  ;;  %v393_v26 = vadd.f32 %v1292_v30, %v370_v17 }
  0x24   : > { %484 = vmatpush1.msra.mxu0 %v429_v23  ;;  %1000 = vmatprep.subr.mxu1 %v430_v20  ;;  %v400_v20 = vadd.f32 %v1292_v30, %v377_v13  ;;  %v459_v40 = vsub.s32 1, %v1376_v38 }
  0x25   : > { %485 = vmatprep.subr.mxu0 %v428_v25  ;;  %1016 = vmatpush1.msra.mxu1 %v429_v23  ;;  %v356_v23 = vld [vmem:[%s1257_s14 + $0x78] sm:$0xff] }
  0x26   : > { %486 = vmatpush1.msra.mxu0 %v427_v27  ;;  %1001 = vmatprep.subr.mxu1 %v428_v25  ;;  %v408_v25 = vmax.f32 %v392_v16, 0.0  ;;  %v416_v28 = vmax.f32 %v400_v20, 0.0  ;;  %v379_v31 = vmul.f32 %v1272_v22, %v356_v23 }
  0x27   : > { %487 = vmatprep.subr.mxu0 %v426_v29  ;;  %1017 = vmatpush1.msra.mxu1 %v427_v27  ;;  %v371_v27 = vmul.f32 %v1272_v22, %v348_v18 }
  0x28   : > { %488 = vmatpush1.msra.mxu0 %v425_v32  ;;  %1002 = vmatprep.subr.mxu1 %v426_v29  ;;  %v401_v29 = vadd.f32 %v1292_v30, %v378_v21  ;;  %v402_v35 = vadd.f32 %v1292_v30, %v379_v31 }
  0x29   : > { %489 = vmatprep.subr.mxu0 %v424_v34  ;;  %1018 = vmatpush1.msra.mxu1 %v425_v32  ;;  %v409_v32 = vmax.f32 %v393_v26, 0.0  ;;  %v394_v33 = vadd.f32 %v1292_v30, %v371_v27  ;;  %v451_v30 = vld [vmem:[%s1564_s4] sm:$0x3] }
  0x2a   : > { %490 = vmatpush1.msra.mxu0 %v423_v36  ;;  %1003 = vmatprep.subr.mxu1 %v424_v34  ;;  %v417_v34 = vmax.f32 %v401_v29, 0.0  ;;  %v418_v22 = vmax.f32 %v402_v35, 0.0  ;;  %v1386_v42 = vrot.slane %v451_v30, %v459_v40 }
  0x2b   : > { %491 = vmatprep.subr.mxu0 %v422_v39  ;;  %1019 = vmatpush1.msra.mxu1 %v423_v36  ;;  %v410_v36 = vmax.f32 %v394_v33, 0.0 }
  0x2c   : > { %492 = vmatpush1.msra.mxu0 %v421_v41  ;;  %1004 = vmatprep.subr.mxu1 %v422_v39  ;;  %v455_v39 = vsub.s32 0, %v1376_v38 }
  0x2d   : > { %493 = vmatprep.subr.mxu0 %v420_v44  ;;  %1020 = vmatpush1.msra.mxu1 %v421_v41 }
  0x2e   : > { %494 = vmatpush1.msra.mxu0 %v419_v46  ;;  %1005 = vmatprep.subr.mxu1 %v420_v44  ;;  %v1384_v41 = vrot.slane %v451_v30, %v455_v39 }
  0x2f   : > { %528 = vmatmul.mubr.f32.vlgmr.msra.gmra.mxu0 %v403_v47  ;;  %1021 = vmatpush1.msra.mxu1 %v419_v46 }
  0x30   : > { %533 = vmatprep.mubr.f32.mxu0 %v1105_v24  ;;  %575 = vmatprep.mubr.f32.mxu1 %v1105_v24 }
  0x31   : > { %576 = vmatmul.mubr.f32.vlgmr.msra.gmra.mxu1 %v411_v51 }
  0x32   : > { %581 = vmatprep.mubr.f32.mxu1 %v1105_v24 }
  0x33   : > { %534 = vmatmul.mubr.f32.gmra.mxu0 %v404_v55 }
  0x34   : > { %539 = vmatprep.mubr.f32.mxu0 %v1105_v24 }
  0x35   : > { %582 = vmatmul.mubr.f32.gmra.mxu1 %v412_v59 }
  0x36   : > { %587 = vmatprep.mubr.f32.mxu1 %v1105_v24 }
  0x37   : > { %540 = vmatmul.mubr.f32.gmra.mxu0 %v405_v63 }
  0x38   : > { %545 = vmatprep.mubr.f32.mxu0 %v1105_v24 }
  0x39   : > { %588 = vmatmul.mubr.f32.gmra.mxu1 %v413_v3 }
  0x3a   : > { %593 = vmatprep.mubr.f32.mxu1 %v1105_v24 }
  0x3b   : > { %546 = vmatmul.mubr.f32.gmra.mxu0 %v406_v7 }
  0x3c   : > { %551 = vmatprep.mubr.f32.mxu0 %v1105_v24 }
  0x3d   : > { %594 = vmatmul.mubr.f32.gmra.mxu1 %v414_v11 }
  0x3e   : > { %599 = vmatprep.mubr.f32.mxu1 %v1105_v24 }
  0x3f   : > { %552 = vmatmul.mubr.f32.gmra.mxu0 %v407_v15 }
  0x40   : > { %557 = vmatprep.mubr.f32.mxu0 %v1105_v24 }
  0x41   : > { %600 = vmatmul.mubr.f32.gmra.mxu1 %v415_v19 }
  0x42   : > { %605 = vmatprep.mubr.f32.mxu1 %v1105_v24 }
  0x43   : > { %558 = vmatmul.mubr.f32.gmra.mxu0 %v408_v25 }
  0x44   : > { %563 = vmatprep.mubr.f32.mxu0 %v1105_v24 }
  0x45   : > { %606 = vmatmul.mubr.f32.gmra.mxu1 %v416_v28 }
  0x46   : > { %611 = vmatprep.mubr.f32.mxu1 %v1105_v24 }
  0x47   : > { %564 = vmatmul.mubr.f32.gmra.mxu0 %v409_v32 }
  0x48   : > { %569 = vmatprep.mubr.f32.mxu0 %v1105_v24 }
  0x49   : > { %612 = vmatmul.mubr.f32.gmra.mxu1 %v417_v34 }
  0x4a   : > { %617 = vmatprep.mubr.f32.mxu1 %v1105_v24 }
  0x4b   : > { %570 = vmatmul.mubr.f32.gmra.mxu0 %v410_v36 }
  0x4d   : > { %618 = vmatmul.mubr.f32.gmra.mxu1 %v418_v22 }
  0xef   : > { %v529_v24 = vpop.f32.mrf.mxu0 }
  0xf0   : > { %v530_v43 = vadd.f32 %v529_v24, %v1384_v41 }
  0xf1   : > { %v531_v44 = vpop.f32.mrf.mxu0  ;;  %v577_v45 = vpop.f32.mrf.mxu1 }
  0xf2   : > { %624 = vst [vmem:[%s1391_s9] sm:$0xff] %v530_v43  ;;  %v532_v46 = vadd.f32 %v531_v44, %v1386_v42  ;;  %v1397_v47 = vadd.f32 %v577_v45, %v1384_v41  ;;  %v698_v13 = vmul.f32 %v530_v43, %v530_v43 }
  0xf3   : > { %v535_v48 = vpop.f32.mrf.mxu0  ;;  %v579_v49 = vpop.f32.mrf.mxu1 }
  0xf4   : > { %625 = vst [vmem:[%s1391_s9 + $0x8] sm:$0xff] %v532_v46  ;;  %v536_v50 = vadd.f32 %v535_v48, %v1384_v41  ;;  %640 = vst [vmem:[%s1391_s9 + $0x80] sm:$0xff] %v1397_v47  ;;  %v1404_v51 = vadd.f32 %v579_v49, %v1386_v42  ;;  %v699_v18 = vmul.f32 %v532_v46, %v532_v46 }
  0xf5   : > { %v537_v52 = vpop.f32.mrf.mxu0  ;;  %v583_v53 = vpop.f32.mrf.mxu1 }
  0xf6   : > { %626 = vst [vmem:[%s1391_s9 + $0x10] sm:$0xff] %v536_v50  ;;  %v538_v54 = vadd.f32 %v537_v52, %v1386_v42  ;;  %641 = vst [vmem:[%s1391_s9 + $0x88] sm:$0xff] %v1404_v51  ;;  %v1411_v56 = vadd.f32 %v583_v53, %v1384_v41  ;;  %v700_v7 = vmul.f32 %v536_v50, %v536_v50 }
  0xf7   : > { %v541_v55 = vpop.f32.mrf.mxu0  ;;  %v585_v57 = vpop.f32.mrf.mxu1  ;;  %v656_v19 = vadd.f32 %v536_v50, %v530_v43 }
  0xf8   : > { %627 = vst [vmem:[%s1391_s9 + $0x18] sm:$0xff] %v538_v54  ;;  %v542_v58 = vadd.f32 %v541_v55, %v1384_v41  ;;  %642 = vst [vmem:[%s1391_s9 + $0x90] sm:$0xff] %v1411_v56  ;;  %v1418_v60 = vadd.f32 %v585_v57, %v1386_v42  ;;  %v701_v11 = vmul.f32 %v538_v54, %v538_v54 }
  0xf9   : > { %v543_v59 = vpop.f32.mrf.mxu0  ;;  %v589_v61 = vpop.f32.mrf.mxu1  ;;  %v730_v23 = vadd.f32 %v700_v7, %v698_v13  ;;  %v677_v29 = vadd.f32 %v538_v54, %v532_v46 }
  0xfa   : > { %628 = vst [vmem:[%s1391_s9 + $0x20] sm:$0xff] %v542_v58  ;;  %v544_v62 = vadd.f32 %v543_v59, %v1386_v42  ;;  %643 = vst [vmem:[%s1391_s9 + $0x98] sm:$0xff] %v1418_v60  ;;  %v1425_v0 = vadd.f32 %v589_v61, %v1384_v41  ;;  %v702_v14 = vmul.f32 %v542_v58, %v542_v58 }
  0xfb   : > { %v547_v63 = vpop.f32.mrf.mxu0  ;;  %v591_v1 = vpop.f32.mrf.mxu1  ;;  %v751_v31 = vadd.f32 %v701_v11, %v699_v18  ;;  %v657_v32 = vadd.f32 %v656_v19, %v542_v58 }
  0xfc   : > { %629 = vst [vmem:[%s1391_s9 + $0x28] sm:$0xff] %v544_v62  ;;  %v548_v2 = vadd.f32 %v547_v63, %v1384_v41  ;;  %644 = vst [vmem:[%s1391_s9 + $0xa0] sm:$0xff] %v1425_v0  ;;  %v1432_v4 = vadd.f32 %v591_v1, %v1386_v42  ;;  %v703_v20 = vmul.f32 %v544_v62, %v544_v62 }
  0xfd   : > { %v549_v3 = vpop.f32.mrf.mxu0  ;;  %v595_v5 = vpop.f32.mrf.mxu1  ;;  %v731_v34 = vadd.f32 %v730_v23, %v702_v14  ;;  %v678_v40 = vadd.f32 %v677_v29, %v544_v62  ;;  %v714_v29 = vmul.f32 %v1397_v47, %v1397_v47 }
  0xfe   : > { %630 = vst [vmem:[%s1391_s9 + $0x30] sm:$0xff] %v548_v2  ;;  %v550_v6 = vadd.f32 %v549_v3, %v1386_v42  ;;  %645 = vst [vmem:[%s1391_s9 + $0xa8] sm:$0xff] %v1432_v4  ;;  %v1439_v9 = vadd.f32 %v595_v5, %v1384_v41  ;;  %v704_v25 = vmul.f32 %v548_v2, %v548_v2 }
  0xff   : > { %v553_v8 = vpop.f32.mrf.mxu0  ;;  %v597_v10 = vpop.f32.mrf.mxu1  ;;  %v752_v24 = vadd.f32 %v751_v31, %v703_v20  ;;  %v658_v43 = vadd.f32 %v657_v32, %v548_v2 }
 0x100   : > { %631 = vst [vmem:[%s1391_s9 + $0x38] sm:$0xff] %v550_v6  ;;  %v554_v12 = vadd.f32 %v553_v8, %v1384_v41  ;;  %646 = vst [vmem:[%s1391_s9 + $0xb0] sm:$0xff] %v1439_v9  ;;  %v1446_v16 = vadd.f32 %v597_v10, %v1386_v42  ;;  %v705_v35 = vmul.f32 %v550_v6, %v550_v6 }
 0x101   : > { %v555_v15 = vpop.f32.mrf.mxu0  ;;  %v601_v17 = vpop.f32.mrf.mxu1  ;;  %v732_v45 = vadd.f32 %v731_v34, %v704_v25  ;;  %v679_v53 = vadd.f32 %v678_v40, %v550_v6  ;;  %v716_v40 = vmul.f32 %v1411_v56, %v1411_v56 }
 0x102   : > { %632 = vst [vmem:[%s1391_s9 + $0x40] sm:$0xff] %v554_v12  ;;  %v556_v21 = vadd.f32 %v555_v15, %v1386_v42  ;;  %647 = vst [vmem:[%s1391_s9 + $0xb8] sm:$0xff] %v1446_v16  ;;  %v1453_v27 = vadd.f32 %v601_v17, %v1384_v41  ;;  %v706_v36 = vmul.f32 %v554_v12, %v554_v12 }
 0x103   : > { %v559_v26 = vpop.f32.mrf.mxu0  ;;  %v603_v28 = vpop.f32.mrf.mxu1  ;;  %v659_v54 = vadd.f32 %v658_v43, %v554_v12  ;;  %v753_v57 = vadd.f32 %v752_v24, %v705_v35 }
 0x104   : > { %633 = vst [vmem:[%s1391_s9 + $0x48] sm:$0xff] %v556_v21  ;;  %v560_v33 = vadd.f32 %v559_v26, %v1384_v41  ;;  %648 = vst [vmem:[%s1391_s9 + $0xc0] sm:$0xff] %v1453_v27  ;;  %v1460_v39 = vadd.f32 %v603_v28, %v1386_v42  ;;  %v707_v46 = vmul.f32 %v556_v21, %v556_v21 }
 0x105   : > { %v561_v22 = vpop.f32.mrf.mxu0  ;;  %v607_v30 = vpop.f32.mrf.mxu1  ;;  %v733_v58 = vadd.f32 %v732_v45, %v706_v36  ;;  %v680_v1 = vadd.f32 %v679_v53, %v556_v21 }
 0x106   : > { %634 = vst [vmem:[%s1391_s9 + $0x50] sm:$0xff] %v560_v33  ;;  %v562_v44 = vadd.f32 %v561_v22, %v1386_v42  ;;  %v708_v48 = vmul.f32 %v560_v33, %v560_v33  ;;  %649 = vst [vmem:[%s1391_s9 + $0xc8] sm:$0xff] %v1460_v39  ;;  %v1467_v50 = vadd.f32 %v607_v30, %v1384_v41 }
 0x107   : > { %v565_v49 = vpop.f32.mrf.mxu0  ;;  %v609_v52 = vpop.f32.mrf.mxu1  ;;  %v660_v2 = vadd.f32 %v659_v54, %v560_v33  ;;  %v754_v6 = vadd.f32 %v753_v57, %v707_v46  ;;  %v715_v30 = vmul.f32 %v1404_v51, %v1404_v51  ;;  %v718_v46 = vmul.f32 %v1425_v0, %v1425_v0 }
 0x108   : > { %635 = vst [vmem:[%s1391_s9 + $0x58] sm:$0xff] %v562_v44  ;;  %v566_v55 = vadd.f32 %v565_v49, %v1384_v41  ;;  %v709_v59 = vmul.f32 %v562_v44, %v562_v44  ;;  %650 = vst [vmem:[%s1391_s9 + $0xd0] sm:$0xff] %v1467_v50  ;;  %v1474_v62 = vadd.f32 %v609_v52, %v1386_v42 }
 0x109   : > { %v567_v61 = vpop.f32.mrf.mxu0  ;;  %v613_v63 = vpop.f32.mrf.mxu1  ;;  %v734_v7 = vadd.f32 %v733_v58, %v708_v48  ;;  %v681_v12 = vadd.f32 %v680_v1, %v562_v44  ;;  %v721_v58 = vmul.f32 %v1446_v16, %v1446_v16  ;;  %v723_v1 = vmul.f32 %v1460_v39, %v1460_v39 }
 0x10a   : > { %636 = vst [vmem:[%s1391_s9 + $0x60] sm:$0xff] %v566_v55  ;;  %v710_v3 = vmul.f32 %v566_v55, %v566_v55  ;;  %v568_v5 = vadd.f32 %v567_v61, %v1386_v42  ;;  %651 = vst [vmem:[%s1391_s9 + $0xd8] sm:$0xff] %v1474_v62  ;;  %v1481_v10 = vadd.f32 %v613_v63, %v1384_v41 }
 0x10b   : > { %v571_v8 = vpop.f32.mrf.mxu0  ;;  %v615_v11 = vpop.f32.mrf.mxu1  ;;  %v661_v13 = vadd.f32 %v660_v2, %v566_v55  ;;  %v755_v17 = vadd.f32 %v754_v6, %v709_v59  ;;  %v725_v6 = vmul.f32 %v1474_v62, %v1474_v62 }
 0x10c   : > { %637 = vst [vmem:[%s1391_s9 + $0x68] sm:$0xff] %v568_v5  ;;  %v711_v14 = vmul.f32 %v568_v5, %v568_v5  ;;  %v572_v15 = vadd.f32 %v571_v8, %v1384_v41  ;;  %v735_v18 = vadd.f32 %v734_v7, %v710_v3  ;;  %652 = vst [vmem:[%s1391_s9 + $0xe0] sm:$0xff] %v1481_v10 }
 0x10d   : > { %v573_v19 = vpop.f32.mrf.mxu0  ;;  %v616_v20 = vadd.f32 %v615_v11, %v1386_v42  ;;  %v619_v21 = vpop.f32.mrf.mxu1  ;;  %v682_v23 = vadd.f32 %v681_v12, %v568_v5 }
 0x10e   : > { %638 = vst [vmem:[%s1391_s9 + $0x70] sm:$0xff] %v572_v15  ;;  %v662_v25 = vadd.f32 %v661_v13, %v572_v15  ;;  %v712_v26 = vmul.f32 %v572_v15, %v572_v15  ;;  %v574_v28 = vadd.f32 %v573_v19, %v1386_v42  ;;  %v756_v31 = vadd.f32 %v755_v17, %v711_v14 }
 0x10f   : > { %653 = vst [vmem:[%s1391_s9 + $0xe8] sm:$0xff] %v616_v20  ;;  %v620_v32 = vadd.f32 %v619_v21, %v1384_v41  ;;  %v621_v33 = vpop.f32.mrf.mxu1  ;;  %v727_v13 = vmul.f32 %v616_v20, %v616_v20 }
 0x110   : > { %v663_v34 = vadd.f32 %v662_v25, %v1397_v47  ;;  %v736_v35 = vadd.f32 %v735_v18, %v712_v26  ;;  %639 = vst [vmem:[%s1391_s9 + $0x78] sm:$0xff] %v574_v28  ;;  %v683_v36 = vadd.f32 %v682_v23, %v574_v28  ;;  %v713_v22 = vmul.f32 %v574_v28, %v574_v28 }
 0x111   : > { %654 = vst [vmem:[%s1391_s9 + $0xf0] sm:$0xff] %v620_v32  ;;  %v622_v24 = vadd.f32 %v621_v33, %v1386_v42  ;;  %v717_v47 = vmul.f32 %v1418_v60, %v1418_v60  ;;  %v719_v42 = vmul.f32 %v1432_v4, %v1432_v4 }
 0x112   : > { %v664_v43 = vadd.f32 %v663_v34, %v1411_v56  ;;  %v737_v41 = vadd.f32 %v736_v35, %v714_v29  ;;  %v684_v44 = vadd.f32 %v683_v36, %v1404_v51  ;;  %v757_v45 = vadd.f32 %v756_v31, %v713_v22 }
 0x113   : > { %655 = vst [vmem:[%s1391_s9 + $0xf8] sm:$0xff] %v622_v24  ;;  %v720_v51 = vmul.f32 %v1439_v9, %v1439_v9  ;;  %v729_v18 = vmul.f32 %v622_v24, %v622_v24 }
 0x114   : > { %v738_v48 = vadd.f32 %v737_v41, %v716_v40  ;;  %v685_v49 = vadd.f32 %v684_v44, %v1418_v60  ;;  %v758_v52 = vadd.f32 %v757_v45, %v715_v30  ;;  %v665_v53 = vadd.f32 %v664_v43, %v1425_v0 }
 0x115   : > { %v722_v60 = vmul.f32 %v1453_v27, %v1453_v27 }
 0x116   : > { %v759_v56 = vadd.f32 %v758_v52, %v717_v47  ;;  %v666_v54 = vadd.f32 %v665_v53, %v1439_v9  ;;  %v739_v55 = vadd.f32 %v738_v48, %v718_v46  ;;  %v686_v57 = vadd.f32 %v685_v49, %v1432_v4 }
 0x117   : > { %v724_v9 = vmul.f32 %v1467_v50, %v1467_v50 }
 0x118   : > { %v667_v0 = vadd.f32 %v666_v54, %v1453_v27  ;;  %v740_v59 = vadd.f32 %v739_v55, %v720_v51  ;;  %v687_v61 = vadd.f32 %v686_v57, %v1446_v16  ;;  %v760_v63 = vadd.f32 %v759_v56, %v719_v42 }
 0x119   : > { %v726_v27 = vmul.f32 %v1481_v10, %v1481_v10  ;;  %v728_v16 = vmul.f32 %v620_v32, %v620_v32 }
 0x11a   : > { %v741_v2 = vadd.f32 %v740_v59, %v722_v60  ;;  %v688_v4 = vadd.f32 %v687_v61, %v1460_v39  ;;  %v761_v3 = vadd.f32 %v760_v63, %v721_v58  ;;  %v668_v5 = vadd.f32 %v667_v0, %v1467_v50 }
 0x11c   : > { %v762_v7 = vadd.f32 %v761_v3, %v723_v1  ;;  %v742_v8 = vadd.f32 %v741_v2, %v724_v9  ;;  %v689_v11 = vadd.f32 %v688_v4, %v1474_v62  ;;  %v669_v12 = vadd.f32 %v668_v5, %v1481_v10 }
 0x11e   : > { %v763_v14 = vadd.f32 %v762_v7, %v725_v6  ;;  %v743_v15 = vadd.f32 %v742_v8, %v726_v27  ;;  %v690_v39 = vadd.f32 %v689_v11, %v616_v20  ;;  %v670_v17 = vadd.f32 %v669_v12, %v620_v32 }
 0x120   : > { %v764_v50 = vadd.f32 %v763_v14, %v727_v13  ;;  %v671_v19 = vrot.slane %v670_v17, 4  ;;  %v744_v21 = vadd.f32 %v743_v15, %v728_v16  ;;  %v691_v23 = vadd.f32 %v690_v39, %v622_v24 }
 0x122   : > { %v672_v25 = vadd.f32 %v671_v19, %v670_v17  ;;  %v745_v26 = vrot.slane %v744_v21, 4  ;;  %v692_v28 = vrot.slane %v691_v23, 4  ;;  %v765_v29 = vadd.f32 %v764_v50, %v729_v18 }
 0x124   : > { %v673_v31 = vrot.slane %v672_v25, 2  ;;  %v746_v33 = vadd.f32 %v745_v26, %v744_v21  ;;  %v693_v34 = vadd.f32 %v692_v28, %v691_v23  ;;  %v766_v62 = vrot.slane %v765_v29, 4 }
 0x126   : > { %v674_v35 = vadd.f32 %v673_v31, %v672_v25  ;;  %v747_v10 = vrot.slane %v746_v33, 2  ;;  %v694_v36 = vrot.slane %v693_v34, 2  ;;  %v767_v22 = vadd.f32 %v766_v62, %v765_v29 }
 0x128   : > { %v675_v30 = vrot.slane %v674_v35, 1  ;;  %v748_v20 = vadd.f32 %v747_v10, %v746_v33  ;;  %v695_v32 = vadd.f32 %v694_v36, %v693_v34  ;;  %v768_v40 = vrot.slane %v767_v22, 2 }
 0x12a   : > { %v676_v43 = vadd.f32 %v675_v30, %v674_v35  ;;  %v749_v41 = vrot.slane %v748_v20, 1  ;;  %v696_v44 = vrot.slane %v695_v32, 1  ;;  %v769_v24 = vadd.f32 %v768_v40, %v767_v22  ;;  %775 = sbr.rel (%p986_p7) target bundleno = 305 (0x131), region = 44 }
 0x12c   : > { %v750_v45 = vadd.f32 %v749_v41, %v748_v20  ;;  %v697_v47 = vadd.f32 %v696_v44, %v695_v32  ;;  %v770_v46 = vrot.slane %v769_v24, 1 }
 0x12e   : > { %v771_v48 = vadd.f32 %v770_v46, %v769_v24 }
 0x12f   : > { %vm778_vm0 = vcmp.lt.s32.totalorder %v453_v37, 256  ;;  %v1106_v49 = vmov 0.0  }
 0x130   : > { %780 = vst.msk [vmem:[%s1209_s13] sm:$0x3] %vm778_vm0, %v1106_v49  ;;  %781 = vst.msk [vmem:[%s1214_s25] sm:$0x3] %vm778_vm0, %v1106_v49 }
 0x131 PF: > { %v1107_v52 = vmov 1966171168   ;;  %v785_v42 = vcombine.low %v676_v43, %v697_v47  ;;  %v810_v56 = vcombine.low %v750_v45, %v771_v48  ;;  %vm804_vm1 = vcmp.lt.s32.totalorder %v453_v37, 256 }
 0x132   : > { %v787_v53 = vunpack.c.l.s4 %v1107_v52 }
 0x134   : > { %v788_v51 = vunpack.c.0.s8 %v787_v53 }
 0x136   : > { %v791_v54 = vsub.s32 %v788_v51, %v1376_v38 }
 0x137   : > { %v782_v58 = vld [vmem:[%s1209_s13] sm:$0x3] }
 0x138   : > { %v792_v55 = vrot.slane %v785_v42, %v791_v54  ;;  %v817_v57 = vrot.slane %v810_v56, %v791_v54  ;;  %v807_v60 = vld [vmem:[%s1214_s25] sm:$0x3] }
 0x13a   : > { %v799_v0 = vrot.slane %v792_v55, %v791_v54  ;;  %v824_v59 = vrot.slane %v817_v57, %v791_v54 }
 0x13c   : > { %v801_v61 = vadd.f32 %v799_v0, %v782_v58  ;;  %v826_v63 = vadd.f32 %v824_v59, %v807_v60 }
 0x13e   : > { %806 = vst.msk [vmem:[%s1209_s13] sm:$0x3] %vm804_vm1, %v801_v61  ;;  %827 = vst.msk [vmem:[%s1214_s25] sm:$0x3] %vm804_vm1, %v826_v63 }
 0x13f PF: > { %s18_s28 = sadd.s32 1, %s1103_s28   ;;  %s1569_s24 = smov %s1095_s26 }
 0x140   : > { %p15_p8 = scmp.ge.s32.totalorder %s18_s28, 18   ;;  %s1570_s25 = smov %s1099_s27 }
 0x141   : > { %s1571_s26 = smov %s1574_s29  ;;  %s1572_s27 = smov %s1578_s30 }
 0x142   :  { %17 = sbr.rel (!%p15_p8) target bundleno = 3 (0x3), region = 98 }

// kernel: pointnet_encoder.6
= control target key start
LH: loop header
LB: loop body
LE: loop exit
PB: predicated region body
PF: predicated region fallthrough
CT: control target
= control target key end

     0   :  { %s1475_s30 = smov 0   ;;  %s1477_s10 = smov 0   ;;  %s1830_s0 = inlined_call_operand.vmem [shape: f32[2048,3], index: 0, kind: input, shape index: {}]   ;;  %s1831_s1 = inlined_call_operand.vmem [shape: f32[3,128], index: 1, kind: input, shape index: {}]   ;;  %s1832_s2 = inlined_call_operand.vmem [shape: f32[1,128], index: 2, kind: input, shape index: {}]   ;;  %s1833_s3 = inlined_call_operand.vmem [shape: f32[1,128], index: 3, kind: input, shape index: {}]   ;;  %s1834_s4 = inlined_call_operand.vmem [shape: f32[1,128], index: 4, kind: input, shape index: {}]   ;;  %s1835_s5 = inlined_call_operand.vmem [shape: f32[128,128], index: 5, kind: input, shape index: {}]   ;;  %s1836_s6 = inlined_call_operand.vmem [shape: f32[1,128], index: 6, kind: input, shape index: {}]   ;;  %s1837_s7 = inlined_call_operand.vmem [shape: f32[2048,128], index: 7, kind: output, shape index: {0}]   ;;  %s1838_s8 = inlined_call_operand.vmem [shape: f32[2,1,128], index: 8, kind: output, shape index: {1}]   ;;  %s1839_s9 = inlined_call_operand.vmem [shape: f32[2,1,128], index: 9, kind: output, shape index: {2}]  }
   0x1   :  { %s1479_s11 = smov 0   ;;  %s1481_s12 = smov 0  }
   0x2   :  { %s1483_s13 = smov 0  }
   0x3 LB: > { %s29_s14 = sadd.s32 1, %s1411_s11  ;;  %s32_s15 = sadd.s32 1, %s1415_s12  ;;  %s1419_s13 = sphi %s1483_s13, %s20_s13   ;;  %s1415_s12 = sphi %s1481_s12, %s1843_s12   ;;  %s1411_s11 = sphi %s1479_s11, %s1842_s11   ;;  %s1407_s10 = sphi %s1477_s10, %s1841_s10   ;;  %s1403_s30 = sphi %s1475_s30, %s1840_s30  }
   0x4   : > { %p30_p0 = scmp.ge.s32.totalorder %s29_s14, 8  ;;  %p1177_p1 = scmp.ge.s32.totalorder %s1419_s13, 1 }
   0x5   : > { %p317_p2 = scmp.lt.s32.totalorder %s1419_s13, 17 }
   0x6   : > { %s1845_s14 = smov (%p30_p0, %s29_s14), 0  ;;  %s1847_s15 = smov (!%p30_p0, %s32_s15), %s1415_s12 }
   0x7   : > { %p318_p3 = pnand %p1177_p1, %p317_p2  ;;  %p34_p4 = scmp.ge.s32.totalorder %s1847_s15, 2 }
   0x8   : > { %s1178_s16 = sshll.u32 (!%p318_p3), %s1407_s10, 3  ;;  %p383_p5 = scmp.lt.s32.totalorder (!%p318_p3), %s1407_s10, 1 }
   0x9   : > { %s1849_s15 = smov (%p34_p4, %s1847_s15), 0  ;;  %321 = sbr.rel (%p318_p3) target bundleno = 523 (0x20b), region = 48 }
   0xa   : > { %s364_s19 = sadd.s32 (!%p318_p3), %s1403_s30, %s1178_s16  ;;  %p1188_p7 = scmp.ne.s32.totalorder (!%p318_p3), %s1403_s30, 0 }
   0xb   : > { %s1179_s22 = sshll.u32 (!%p318_p3), %s364_s19, 4 }
   0xc   : > { %p366_p6 = scmp.lt.s32.totalorder (!%p318_p3), %s1179_s22, 255 }
   0xe   : > { %v806_v0 = vld [vmem:[%s1835_s5 + $0x78] sm:$0xff]  ;;  %v1421_v1 = vmov 1   ;;  %v1422_v2 = vmov 0   ;;  %v805_v3 = vld [vmem:[%s1835_s5 + $0x70] sm:$0xff]  ;;  %v804_v4 = vld [vmem:[%s1835_s5 + $0x68] sm:$0xff]  ;;  %s1851_s10 = smov (!%p383_p5, %s1407_s10), 1  ;;  %v487_v35 = vlaneseq }
   0xf   : > { %1356 = vset.pattern.permute.xlu1 %v1421_v1  ;;  %1355 = vset.pattern.permute.xlu0 %v1422_v2  ;;  %s1853_s22 = smov (!%p366_p6, %s1179_s22), 255  ;;  %v803_v5 = vld [vmem:[%s1835_s5 + $0x60] sm:$0xff]  ;;  %s1534_s29 = scalar_lea.vmem %s1838_s8, %s1851_s10  ;;  %v802_v6 = vld [vmem:[%s1835_s5 + $0x58] sm:$0xff]  ;;  %v801_v8 = vld [vmem:[%s1835_s5 + $0x50] sm:$0xff]  ;;  %v1423_v13 = vmov 2  }
  0x10   : > { %1223 = vmatprep.subr.mxu0 %v806_v0  ;;  %1279 = vmatprep.subr.mxu1 %v806_v0  ;;  %s1539_s18 = scalar_lea.vmem %s1839_s9, %s1851_s10  ;;  %s1180_s19 = sshll.u32 %s1853_s22, 3  ;;  %v800_v10 = vld [vmem:[%s1835_s5 + $0x48] sm:$0xff]  ;;  %v799_v12 = vld [vmem:[%s1835_s5 + $0x40] sm:$0xff]  ;;  %v798_v14 = vld [vmem:[%s1835_s5 + $0x38] sm:$0xff]  ;;  %v488_v36 = vshrl.u32 %v487_v35, 7 }
  0x11   : > { %1224 = vmatpush3.msra.mxu0 %v806_v0  ;;  %1295 = vmatpush3.msra.mxu1 %v806_v0  ;;  %s1547_s23 = scalar_lea.vmem %s1830_s0, %s1180_s19  ;;  %v797_v16 = vld [vmem:[%s1835_s5 + $0x30] sm:$0xff]  ;;  %v796_v17 = vld [vmem:[%s1835_s5 + $0x28] sm:$0xff]  ;;  %v795_v18 = vld [vmem:[%s1835_s5 + $0x20] sm:$0xff]  ;;  %s1774_s28 = scalar_lea.vmem %s1837_s7, %s1180_s19 }
  0x12   : > { %1225 = vmatprep.subr.mxu0 %v805_v3  ;;  %1280 = vmatprep.subr.mxu1 %v805_v3  ;;  %v389_v7 = vld [vmem:[%s1547_s23] sm:$0xff]  ;;  %v390_v9 = vld [vmem:[%s1547_s23 + $0x8] sm:$0xff]  ;;  %v1561_v11 = vld [vmem:[%s1547_s23 + $0x10] sm:$0xff]  ;;  %v489_v37 = vsub.s32 0, %v488_v36  ;;  %v595_v40 = vsub.s32 1, %v488_v36  ;;  %v695_v44 = vsub.s32 2, %v488_v36 }
  0x13   : > { %1226 = vmatpush3.msra.mxu0 %v805_v3  ;;  %1296 = vmatpush3.msra.mxu1 %v805_v3  ;;  %v392_v15 = vld [vmem:[%s1547_s23 + $0x18] sm:$0xff]  ;;  %v393_v20 = vld [vmem:[%s1547_s23 + $0x20] sm:$0xff]  ;;  %v793_v21 = vld [vmem:[%s1835_s5 + $0x10] sm:$0xff] }
  0x14   : > { %1227 = vmatprep.subr.mxu0 %v804_v4  ;;  %1281 = vmatprep.subr.mxu1 %v804_v4  ;;  %v794_v19 = vld [vmem:[%s1835_s5 + $0x18] sm:$0xff]  ;;  %v792_v22 = vld [vmem:[%s1835_s5 + $0x8] sm:$0xff]  ;;  %v395_v23 = vld [vmem:[%s1547_s23 + $0x30] sm:$0xff] }
  0x15   : > { %1228 = vmatpush3.msra.mxu0 %v804_v4  ;;  %1297 = vmatpush3.msra.mxu1 %v804_v4  ;;  %v791_v24 = vld [vmem:[%s1835_s5] sm:$0xff]  ;;  %v394_v25 = vld [vmem:[%s1547_s23 + $0x28] sm:$0xff]  ;;  %v399_v27 = vld [vmem:[%s1547_s23 + $0x50] sm:$0xff] }
  0x16   : > { %1229 = vmatprep.subr.mxu0 %v803_v5  ;;  %1282 = vmatprep.subr.mxu1 %v803_v5  ;;  %v397_v26 = vld [vmem:[%s1547_s23 + $0x40] sm:$0xff]  ;;  %v396_v29 = vld [vmem:[%s1547_s23 + $0x38] sm:$0xff]  ;;  %v398_v30 = vld [vmem:[%s1547_s23 + $0x48] sm:$0xff] }
  0x17   : > { %1230 = vmatpush3.msra.mxu0 %v803_v5  ;;  %1298 = vmatpush3.msra.mxu1 %v803_v5  ;;  %v401_v28 = vld [vmem:[%s1547_s23 + $0x60] sm:$0xff]  ;;  %v1614_v31 = vld [vmem:[%s1547_s23 + $0x70] sm:$0xff]  ;;  %v404_v32 = vld [vmem:[%s1547_s23 + $0x78] sm:$0xff] }
  0x18   : > { %530 = vperm.xlu1 %1356, %v389_v7   ;;  %409 = vperm.xlu0 %1355, %v389_v7   ;;  %v400_v33 = vld [vmem:[%s1547_s23 + $0x58] sm:$0xff]  ;;  %v402_v34 = vld [vmem:[%s1547_s23 + $0x68] sm:$0xff]  ;;  %v405_v38 = vld [vmem:[%s1831_s1] sm:$0x7] }
  0x19   : > { %1231 = vmatprep.subr.mxu0 %v802_v6  ;;  %1283 = vmatprep.subr.mxu1 %v802_v6  ;;  %v1634_v39 = vrot.slane %v405_v38, %v489_v37  ;;  %v1640_v45 = vld [vmem:[%s1832_s2] ss:$0 sm:$0xff]  ;;  %v1643_v46 = vrot.slane %v405_v38, %v595_v40  ;;  %v1647_v51 = vrot.slane %v405_v38, %v695_v44 }
  0x1a   : > { %1232 = vmatpush3.msra.mxu0 %v802_v6  ;;  %1299 = vmatpush3.msra.mxu1 %v802_v6  ;;  %v1656_v58 = vld [vmem:[%s1833_s3] ss:$0 sm:$0xff] }
  0x1b   : > { %1233 = vmatprep.subr.mxu0 %v801_v8  ;;  %1284 = vmatprep.subr.mxu1 %v801_v8  ;;  %v1663_v63 = vld [vmem:[%s1834_s4] ss:$0 sm:$0xff] }
  0x1c   : > { %534 = vperm.xlu1 %1356, %v390_v9   ;;  %414 = vperm.xlu0 %1355, %v390_v9  }
  0x1d   : > { %1234 = vmatpush3.msra.mxu0 %v801_v8  ;;  %1300 = vmatpush3.msra.mxu1 %v801_v8 }
  0x1e   : > { %1235 = vmatprep.subr.mxu0 %v800_v10  ;;  %1285 = vmatprep.subr.mxu1 %v800_v10 }
  0x1f   : > { %1236 = vmatpush3.msra.mxu0 %v800_v10  ;;  %1301 = vmatpush3.msra.mxu1 %v800_v10 }
  0x20   : > { %1357 = vset.pattern.permute.xlu1 %v1423_v13  ;;  %419 = vperm.xlu0 %1355, %v1561_v11  }
  0x21   : > { %630 = vperm.xlu1 %1357, %v389_v7   ;;  %1237 = vmatprep.subr.mxu0 %v799_v12 }
  0x22   : > { %1238 = vmatpush3.msra.mxu0 %v799_v12  ;;  %1286 = vmatprep.subr.mxu1 %v799_v12 }
  0x23   : > { %1239 = vmatprep.subr.mxu0 %v798_v14  ;;  %1302 = vmatpush3.msra.mxu1 %v799_v12 }
  0x24   : > { %424 = vperm.xlu0 %1355, %v392_v15   ;;  %1240 = vmatpush3.msra.mxu0 %v798_v14 }
  0x25   : > { %634 = vperm.xlu1 %1357, %v390_v9   ;;  %1241 = vmatprep.subr.mxu0 %v797_v16 }
  0x26   : > { %1242 = vmatpush3.msra.mxu0 %v797_v16  ;;  %1287 = vmatprep.subr.mxu1 %v798_v14 }
  0x27   : > { %1243 = vmatprep.subr.mxu0 %v796_v17  ;;  %1303 = vmatpush3.msra.mxu1 %v798_v14 }
  0x28   : > { %1360 = vset.pattern.permute.xlu0 %v1423_v13  ;;  %1244 = vmatpush3.msra.mxu0 %v796_v17 }
  0x29   : > { %1358 = vset.pattern.permute.xlu1 %v1421_v1  ;;  %638 = vperm.xlu0 %1360, %v1561_v11  }
  0x2a   : > { %542 = vperm.xlu1 %1358, %v392_v15   ;;  %1245 = vmatprep.subr.mxu0 %v795_v18 }
  0x2b   : > { %1246 = vmatpush3.msra.mxu0 %v795_v18  ;;  %1288 = vmatprep.subr.mxu1 %v797_v16 }
  0x2c   : > { %1247 = vmatprep.subr.mxu0 %v794_v19  ;;  %1304 = vmatpush3.msra.mxu1 %v797_v16 }
  0x2d   : > { %646 = vperm.xlu0 %1360, %v393_v20   ;;  %1248 = vmatpush3.msra.mxu0 %v794_v19 }
  0x2e   : > { %1359 = vset.pattern.permute.xlu1 %v1422_v2  ;;  %1249 = vmatprep.subr.mxu0 %v793_v21 }
  0x2f   : > { %429 = vperm.xlu1 %1359, %v393_v20   ;;  %1250 = vmatpush3.msra.mxu0 %v793_v21 }
  0x30   : > { %1251 = vmatprep.subr.mxu0 %v792_v22  ;;  %1289 = vmatprep.subr.mxu1 %v796_v17 }
  0x31   : > { %654 = vperm.xlu0 %1360, %v395_v23   ;;  %1252 = vmatpush3.msra.mxu0 %v792_v22 }
  0x32   : > { %1253 = vmatprep.subr.mxu0 %v791_v24  ;;  %1305 = vmatpush3.msra.mxu1 %v796_v17 }
  0x33   : > { %434 = vperm.xlu1 %1359, %v394_v25   ;;  %1254 = vmatpush3.msra.mxu0 %v791_v24 }
  0x34   : > { %1290 = vmatprep.subr.mxu1 %v795_v18 }
  0x35   : > { %662 = vperm.xlu0 %1360, %v397_v26   ;;  %1306 = vmatpush3.msra.mxu1 %v795_v18 }
  0x36   : > { %1291 = vmatprep.subr.mxu1 %v794_v19 }
  0x37   : > { %1361 = vset.pattern.permute.xlu1 %v1423_v13  ;;  %1307 = vmatpush3.msra.mxu1 %v794_v19 }
  0x38   : > { %642 = vperm.xlu1 %1361, %v392_v15   ;;  %1292 = vmatprep.subr.mxu1 %v793_v21 }
  0x39   : > { %670 = vperm.xlu0 %1360, %v399_v27   ;;  %1308 = vmatpush3.msra.mxu1 %v793_v21 }
  0x3a   : > { %1293 = vmatprep.subr.mxu1 %v792_v22 }
  0x3b   : > { %1309 = vmatpush3.msra.mxu1 %v792_v22 }
  0x3c   : > { %1362 = vset.pattern.permute.xlu1 %v1421_v1  ;;  %1294 = vmatprep.subr.mxu1 %v791_v24 }
  0x3d   : > { %550 = vperm.xlu1 %1362, %v394_v25   ;;  %678 = vperm.xlu0 %1360, %v401_v28  }
  0x3e   : > { %1310 = vmatpush3.msra.mxu1 %v791_v24 }
  0x41   : > { %1363 = vset.pattern.permute.xlu1 %v1422_v2  ;;  %1376 = vset.pattern.permute.xlu0 %v1421_v1 }
  0x42   : > { %439 = vperm.xlu1 %1363, %v395_v23   ;;  %538 = vperm.xlu0 %1376, %v1561_v11  }
  0x46   : > { %444 = vperm.xlu1 %1363, %v396_v29   ;;  %546 = vperm.xlu0 %1376, %v393_v20  }
  0x4a   : > { %1364 = vset.pattern.permute.xlu1 %v1423_v13  ;;  %554 = vperm.xlu0 %1376, %v395_v23  }
  0x4b   : > { %650 = vperm.xlu1 %1364, %v394_v25  }
  0x4e   : > { %562 = vperm.xlu0 %1376, %v397_v26  }
  0x4f   : > { %1365 = vset.pattern.permute.xlu1 %v1421_v1 }
  0x50   : > { %558 = vperm.xlu1 %1365, %v396_v29  }
  0x52   : > { %570 = vperm.xlu0 %1376, %v399_v27  }
  0x54   : > { %1366 = vset.pattern.permute.xlu1 %v1422_v2 }
  0x55   : > { %449 = vperm.xlu1 %1366, %v397_v26  }
  0x56   : > { %578 = vperm.xlu0 %1376, %v401_v28  }
  0x59   : > { %454 = vperm.xlu1 %1366, %v398_v30  }
  0x5a   : > { %586 = vperm.xlu0 %1376, %v1614_v31  }
  0x5d   : > { %1367 = vset.pattern.permute.xlu1 %v1423_v13 }
  0x5e   : > { %658 = vperm.xlu1 %1367, %v396_v29   ;;  %1380 = vset.pattern.permute.xlu0 %v1423_v13 }
  0x5f   : > { %690 = vperm.xlu0 %1380, %v404_v32  }
  0x62   : > { %1368 = vset.pattern.permute.xlu1 %v1421_v1 }
  0x63   : > { %566 = vperm.xlu1 %1368, %v398_v30  }
  0x67   : > { %1369 = vset.pattern.permute.xlu1 %v1422_v2 }
  0x68   : > { %459 = vperm.xlu1 %1369, %v399_v27  }
  0x6c   : > { %464 = vperm.xlu1 %1369, %v400_v33  }
  0x70   : > { %1370 = vset.pattern.permute.xlu1 %v1423_v13 }
  0x71   : > { %666 = vperm.xlu1 %1370, %v398_v30  }
  0x75   : > { %1371 = vset.pattern.permute.xlu1 %v1421_v1 }
  0x76   : > { %574 = vperm.xlu1 %1371, %v400_v33  }
  0x7a   : > { %1372 = vset.pattern.permute.xlu1 %v1422_v2 }
  0x7b   : > { %469 = vperm.xlu1 %1372, %v401_v28  }
  0x7f   : > { %474 = vperm.xlu1 %1372, %v402_v34  }
  0x83   : > { %1373 = vset.pattern.permute.xlu1 %v1423_v13 }
  0x84   : > { %674 = vperm.xlu1 %1373, %v400_v33  }
  0x88   : > { %1374 = vset.pattern.permute.xlu1 %v1421_v1 }
  0x89   : > { %582 = vperm.xlu1 %1374, %v402_v34  }
  0x8d   : > { %1375 = vset.pattern.permute.xlu1 %v1422_v2 }
  0x8e   : > { %479 = vperm.xlu1 %1375, %v1614_v31  }
  0x92   : > { %484 = vperm.xlu1 %1375, %v404_v32  }
  0x93   : > { %v531_v41 = vpop.permute.xlu1 %530  ;;  %v410_v42 = vpop.permute.xlu0 %409 }
  0x94   : > { %v491_v43 = vmul.f32 %v1634_v39, %v410_v42  ;;  %v597_v52 = vmul.f32 %v1643_v46, %v531_v41 }
  0x96   : > { %1377 = vset.pattern.permute.xlu1 %v1423_v13  ;;  %v513_v49 = vadd.f32 %v1640_v45, %v491_v43 }
  0x97   : > { %682 = vperm.xlu1 %1377, %v402_v34   ;;  %v535_v47 = vpop.permute.xlu1 %534  ;;  %v415_v48 = vpop.permute.xlu0 %414 }
  0x98   : > { %v492_v50 = vmul.f32 %v1634_v39, %v415_v48  ;;  %v613_v56 = vadd.f32 %v597_v52, %v513_v49  ;;  %v598_v59 = vmul.f32 %v1643_v46, %v535_v47 }
  0x9a   : > { %v514_v55 = vadd.f32 %v1640_v45, %v492_v50 }
  0x9b   : > { %1378 = vset.pattern.permute.xlu1 %v1421_v1  ;;  %v420_v53 = vpop.permute.xlu0 %419 }
  0x9c   : > { %590 = vperm.xlu1 %1378, %v404_v32   ;;  %v631_v54 = vpop.permute.xlu1 %630  ;;  %v614_v0 = vadd.f32 %v598_v59, %v514_v55  ;;  %v493_v21 = vmul.f32 %v1634_v39, %v420_v53 }
  0x9d   : > { %v697_v57 = vmul.f32 %v1647_v51, %v631_v54 }
  0x9e   : > { %v515_v26 = vadd.f32 %v1640_v45, %v493_v21 }
  0x9f   : > { %v713_v60 = vadd.f32 %v697_v57, %v613_v56  ;;  %v425_v61 = vpop.permute.xlu0 %424 }
  0xa0   : > { %1379 = vset.pattern.permute.xlu1 %v1423_v13  ;;  %v635_v62 = vpop.permute.xlu1 %634  ;;  %v494_v16 = vmul.f32 %v1634_v39, %v425_v61 }
  0xa1   : > { %v698_v1 = vmul.f32 %v1647_v51, %v635_v62  ;;  %686 = vperm.xlu1 %1379, %v1614_v31   ;;  %v736_v2 = vmul.f32 %v1656_v58, %v713_v60 }
  0xa2   : > { %v516_v19 = vadd.f32 %v1640_v45, %v494_v16 }
  0xa3   : > { %v714_v3 = vadd.f32 %v698_v1, %v614_v0  ;;  %v759_v4 = vadd.f32 %v1663_v63, %v736_v2 }
  0xa4   : > { %v639_v5 = vpop.permute.xlu0 %638 }
  0xa5   : > { %v737_v6 = vmul.f32 %v1656_v58, %v714_v3  ;;  %v543_v7 = vpop.permute.xlu1 %542  ;;  %v775_v8 = vmax.f32 %v759_v4, 0.0  ;;  %v699_v30 = vmul.f32 %v1647_v51, %v639_v5 }
  0xa6   : > { %v600_v20 = vmul.f32 %v1643_v46, %v543_v7 }
  0xa7   : > { %1255 = vmatprep.mubr.f32.mxu0 %v775_v8  ;;  %v760_v9 = vadd.f32 %v1663_v63, %v737_v6 }
  0xa8   : > { %v647_v10 = vpop.permute.xlu0 %646  ;;  %v616_v25 = vadd.f32 %v600_v20, %v516_v19 }
  0xa9   : > { %v776_v11 = vmax.f32 %v760_v9, 0.0  ;;  %v701_v34 = vmul.f32 %v1647_v51, %v647_v10 }
  0xaa   : > { %v430_v12 = vpop.permute.xlu1 %429 }
  0xab   : > { %1256 = vmatmul.mubr.f32.vlgmr.msra.gmra.mxu0 %v776_v11  ;;  %v495_v31 = vmul.f32 %v1634_v39, %v430_v12 }
  0xac   : > { %v655_v13 = vpop.permute.xlu0 %654 }
  0xad   : > { %v517_v40 = vadd.f32 %v1640_v45, %v495_v31  ;;  %v703_v49 = vmul.f32 %v1647_v51, %v655_v13 }
  0xae   : > { %v435_v14 = vpop.permute.xlu1 %434 }
  0xaf   : > { %v496_v35 = vmul.f32 %v1634_v39, %v435_v14 }
  0xb0   : > { %v1671_v15 = vpop.permute.xlu0 %662 }
  0xb1   : > { %v518_v50 = vadd.f32 %v1640_v45, %v496_v35  ;;  %v705_v20 = vmul.f32 %v1647_v51, %v1671_v15 }
  0xb3   : > { %v643_v17 = vpop.permute.xlu1 %642 }
  0xb4   : > { %v1674_v18 = vpop.permute.xlu0 %670  ;;  %v700_v24 = vmul.f32 %v1647_v51, %v643_v17 }
  0xb6   : > { %v716_v27 = vadd.f32 %v700_v24, %v616_v25 }
  0xb8   : > { %v551_v22 = vpop.permute.xlu1 %550  ;;  %v1679_v23 = vpop.permute.xlu0 %678  ;;  %v739_v36 = vmul.f32 %v1656_v58, %v716_v27 }
  0xb9   : > { %v602_v44 = vmul.f32 %v1643_v46, %v551_v22 }
  0xba   : > { %v762_v53 = vadd.f32 %v1663_v63, %v739_v36 }
  0xbb   : > { %v618_v60 = vadd.f32 %v602_v44, %v518_v50  ;;  %v707_v44 = vmul.f32 %v1647_v51, %v1674_v18 }
  0xbc   : > { %v778_v3 = vmax.f32 %v762_v53, 0.0 }
  0xbd   : > { %v440_v28 = vpop.permute.xlu1 %439  ;;  %v539_v29 = vpop.permute.xlu0 %538 }
  0xbe   : > { %v599_v32 = vmul.f32 %v1643_v46, %v539_v29  ;;  %v497_v41 = vmul.f32 %v1634_v39, %v440_v28 }
  0xc0   : > { %v615_v33 = vadd.f32 %v599_v32, %v515_v26  ;;  %v519_v54 = vadd.f32 %v1640_v45, %v497_v41 }
  0xc1   : > { %v445_v37 = vpop.permute.xlu1 %444  ;;  %v547_v38 = vpop.permute.xlu0 %546 }
  0xc2   : > { %v715_v42 = vadd.f32 %v699_v30, %v615_v33  ;;  %v601_v43 = vmul.f32 %v1643_v46, %v547_v38  ;;  %v498_v22 = vmul.f32 %v1634_v39, %v445_v37 }
  0xc4   : > { %v617_v47 = vadd.f32 %v601_v43, %v517_v40  ;;  %v738_v48 = vmul.f32 %v1656_v58, %v715_v42  ;;  %v520_v28 = vadd.f32 %v1640_v45, %v498_v22 }
  0xc5   : > { %v555_v52 = vpop.permute.xlu0 %554 }
  0xc6   : > { %v717_v55 = vadd.f32 %v701_v34, %v617_v47  ;;  %v603_v56 = vmul.f32 %v1643_v46, %v555_v52  ;;  %v651_v57 = vpop.permute.xlu1 %650  ;;  %v761_v59 = vadd.f32 %v1663_v63, %v738_v48 }
  0xc7   : > { %v702_v61 = vmul.f32 %v1647_v51, %v651_v57 }
  0xc8   : > { %v619_v62 = vadd.f32 %v603_v56, %v519_v54  ;;  %v777_v0 = vmax.f32 %v761_v59, 0.0  ;;  %v740_v1 = vmul.f32 %v1656_v58, %v717_v55 }
  0xc9   : > { %v718_v2 = vadd.f32 %v702_v61, %v618_v60  ;;  %v563_v12 = vpop.permute.xlu0 %562 }
  0xca   : > { %v719_v4 = vadd.f32 %v703_v49, %v619_v62  ;;  %1258 = vmatprep.mubr.f32.mxu0 %v777_v0  ;;  %v763_v5 = vadd.f32 %v1663_v63, %v740_v1  ;;  %v605_v19 = vmul.f32 %v1643_v46, %v563_v12 }
  0xcb   : > { %v741_v6 = vmul.f32 %v1656_v58, %v718_v2  ;;  %v559_v7 = vpop.permute.xlu1 %558  ;;  %1259 = vmatmul.mubr.f32.gmra.mxu0 %v778_v3 }
  0xcc   : > { %v779_v8 = vmax.f32 %v763_v5, 0.0  ;;  %v742_v9 = vmul.f32 %v1656_v58, %v719_v4  ;;  %v604_v26 = vmul.f32 %v1643_v46, %v559_v7 }
  0xcd   : > { %v764_v10 = vadd.f32 %v1663_v63, %v741_v6  ;;  %v571_v38 = vpop.permute.xlu0 %570 }
  0xce   : > { %1261 = vmatprep.mubr.f32.mxu0 %v779_v8  ;;  %v765_v11 = vadd.f32 %v1663_v63, %v742_v9  ;;  %v620_v31 = vadd.f32 %v604_v26, %v520_v28  ;;  %v607_v43 = vmul.f32 %v1643_v46, %v571_v38 }
  0xcf   : > { %v780_v13 = vmax.f32 %v764_v10, 0.0  ;;  %v709_v10 = vmul.f32 %v1647_v51, %v1679_v23 }
  0xd0   : > { %v450_v14 = vpop.permute.xlu1 %449  ;;  %v781_v16 = vmax.f32 %v765_v11, 0.0 }
  0xd1   : > { %v499_v17 = vmul.f32 %v1634_v39, %v450_v14  ;;  %1262 = vmatmul.mubr.f32.gmra.mxu0 %v780_v13  ;;  %v579_v1 = vpop.permute.xlu0 %578 }
  0xd2   : > { %1264 = vmatprep.mubr.f32.mxu0 %v781_v16  ;;  %v609_v6 = vmul.f32 %v1643_v46, %v579_v1 }
  0xd3   : > { %v521_v21 = vadd.f32 %v1640_v45, %v499_v17 }
  0xd4   : > { %v455_v24 = vpop.permute.xlu1 %454 }
  0xd5   : > { %v621_v25 = vadd.f32 %v605_v19, %v521_v21  ;;  %v500_v48 = vmul.f32 %v1634_v39, %v455_v24 }
  0xd7   : > { %v721_v27 = vadd.f32 %v705_v20, %v621_v25  ;;  %v522_v54 = vadd.f32 %v1640_v45, %v500_v48 }
  0xd9   : > { %v659_v29 = vpop.permute.xlu1 %658  ;;  %v744_v30 = vmul.f32 %v1656_v58, %v721_v27 }
  0xda   : > { %v704_v32 = vmul.f32 %v1647_v51, %v659_v29 }
  0xdb   : > { %v767_v33 = vadd.f32 %v1663_v63, %v744_v30 }
  0xdc   : > { %v720_v15 = vadd.f32 %v704_v32, %v620_v31 }
  0xdd   : > { %v783_v34 = vmax.f32 %v767_v33, 0.0  ;;  %v587_v33 = vpop.permute.xlu0 %586 }
  0xde   : > { %v743_v35 = vmul.f32 %v1656_v58, %v720_v15  ;;  %v567_v36 = vpop.permute.xlu1 %566 }
  0xdf   : > { %1267 = vmatprep.mubr.f32.mxu1 %v783_v34  ;;  %v606_v52 = vmul.f32 %v1643_v46, %v567_v36 }
  0xe0   : > { %v766_v37 = vadd.f32 %v1663_v63, %v743_v35 }
  0xe1   : > { %v622_v56 = vadd.f32 %v606_v52, %v522_v54  ;;  %v611_v52 = vmul.f32 %v1643_v46, %v587_v33 }
  0xe2   : > { %v782_v40 = vmax.f32 %v766_v37, 0.0 }
  0xe3   : > { %v460_v41 = vpop.permute.xlu1 %459 }
  0xe4   : > { %v501_v42 = vmul.f32 %v1634_v39, %v460_v41  ;;  %1265 = vmatmul.mubr.f32.gmra.mxu0 %v782_v40  ;;  %v691_v40 = vpop.permute.xlu0 %690 }
  0xe6   : > { %v523_v47 = vadd.f32 %v1640_v45, %v501_v42 }
  0xe7   : > { %v465_v49 = vpop.permute.xlu1 %464 }
  0xe8   : > { %v623_v50 = vadd.f32 %v607_v43, %v523_v47  ;;  %v502_v8 = vmul.f32 %v1634_v39, %v465_v49  ;;  %v712_v47 = vmul.f32 %v1647_v51, %v691_v40 }
  0xea   : > { %v723_v53 = vadd.f32 %v707_v44, %v623_v50  ;;  %v524_v14 = vadd.f32 %v1640_v45, %v502_v8 }
  0xec   : > { %v667_v55 = vpop.permute.xlu1 %666  ;;  %v746_v59 = vmul.f32 %v1656_v58, %v723_v53 }
  0xed   : > { %v706_v57 = vmul.f32 %v1647_v51, %v667_v55 }
  0xee   : > { %v769_v62 = vadd.f32 %v1663_v63, %v746_v59 }
  0xef   : > { %v722_v60 = vadd.f32 %v706_v57, %v622_v56 }
  0xf0   : > { %v785_v4 = vmax.f32 %v769_v62, 0.0 }
  0xf1   : > { %v745_v18 = vmul.f32 %v1656_v58, %v722_v60  ;;  %v575_v61 = vpop.permute.xlu1 %574 }
  0xf2   : > { %v608_v12 = vmul.f32 %v1643_v46, %v575_v61 }
  0xf3   : > { %v768_v0 = vadd.f32 %v1663_v63, %v745_v18 }
  0xf4   : > { %v624_v17 = vadd.f32 %v608_v12, %v524_v14 }
  0xf5   : > { %v784_v2 = vmax.f32 %v768_v0, 0.0 }
  0xf6   : > { %v470_v3 = vpop.permute.xlu1 %469 }
  0xf7   : > { %v503_v5 = vmul.f32 %v1634_v39, %v470_v3  ;;  %1268 = vmatmul.mubr.f32.vlgmr.msra.gmra.mxu1 %v784_v2 }
  0xf8   : > { %1270 = vmatprep.mubr.f32.mxu1 %v785_v4 }
  0xf9   : > { %v525_v7 = vadd.f32 %v1640_v45, %v503_v5 }
  0xfa   : > { %v475_v9 = vpop.permute.xlu1 %474 }
  0xfb   : > { %v625_v11 = vadd.f32 %v609_v6, %v525_v7  ;;  %v504_v29 = vmul.f32 %v1634_v39, %v475_v9 }
  0xfd   : > { %v725_v13 = vadd.f32 %v709_v10, %v625_v11  ;;  %v526_v32 = vadd.f32 %v1640_v45, %v504_v29 }
  0xff   : > { %v675_v16 = vpop.permute.xlu1 %674  ;;  %v748_v20 = vmul.f32 %v1656_v58, %v725_v13 }
 0x100   : > { %v708_v19 = vmul.f32 %v1647_v51, %v675_v16 }
 0x101   : > { %v771_v25 = vadd.f32 %v1663_v63, %v748_v20 }
 0x102   : > { %v724_v21 = vadd.f32 %v708_v19, %v624_v17 }
 0x103   : > { %v787_v28 = vmax.f32 %v771_v25, 0.0 }
 0x104   : > { %v747_v22 = vmul.f32 %v1656_v58, %v724_v21  ;;  %v583_v24 = vpop.permute.xlu1 %582 }
 0x105   : > { %v610_v31 = vmul.f32 %v1643_v46, %v583_v24 }
 0x106   : > { %v770_v23 = vadd.f32 %v1663_v63, %v747_v22 }
 0x107   : > { %v626_v34 = vadd.f32 %v610_v31, %v526_v32 }
 0x108   : > { %v786_v26 = vmax.f32 %v770_v23, 0.0 }
 0x109   : > { %v480_v27 = vpop.permute.xlu1 %479 }
 0x10a   : > { %1271 = vmatmul.mubr.f32.gmra.mxu1 %v786_v26  ;;  %v505_v37 = vmul.f32 %v1634_v39, %v480_v27 }
 0x10b   : > { %1273 = vmatprep.mubr.f32.mxu1 %v787_v28 }
 0x10c   : > { %v527_v48 = vadd.f32 %v1640_v45, %v505_v37 }
 0x10d   : > { %v485_v30 = vpop.permute.xlu1 %484 }
 0x10e   : > { %v506_v36 = vmul.f32 %v1634_v39, %v485_v30  ;;  %v627_v55 = vadd.f32 %v611_v52, %v527_v48 }
 0x110   : > { %v528_v43 = vadd.f32 %v1640_v45, %v506_v36 }
 0x112   : > { %v683_v15 = vpop.permute.xlu1 %682 }
 0x113   : > { %v710_v35 = vmul.f32 %v1647_v51, %v683_v15 }
 0x115   : > { %v726_v38 = vadd.f32 %v710_v35, %v626_v34 }
 0x117   : > { %v749_v41 = vmul.f32 %v1656_v58, %v726_v38  ;;  %v591_v42 = vpop.permute.xlu1 %590 }
 0x118   : > { %v612_v44 = vmul.f32 %v1643_v46, %v591_v42  ;;  %v1767_v46 = vld [vmem:[%s1836_s6] ss:$0 sm:$0xff] }
 0x119   : > { %v772_v49 = vadd.f32 %v1663_v63, %v749_v41 }
 0x11a   : > { %v628_v50 = vadd.f32 %v612_v44, %v528_v43 }
 0x11b   : > { %v788_v53 = vmax.f32 %v772_v49, 0.0 }
 0x11c   : > { %v728_v39 = vadd.f32 %v712_v47, %v628_v50  ;;  %v687_v54 = vpop.permute.xlu1 %686 }
 0x11d   : > { %v711_v56 = vmul.f32 %v1647_v51, %v687_v54  ;;  %1274 = vmatmul.mubr.f32.gmra.mxu1 %v788_v53 }
 0x11e   : > { %v751_v57 = vmul.f32 %v1656_v58, %v728_v39 }
 0x11f   : > { %v727_v59 = vadd.f32 %v711_v56, %v627_v55 }
 0x120   : > { %v774_v45 = vadd.f32 %v1663_v63, %v751_v57 }
 0x121   : > { %v750_v60 = vmul.f32 %v1656_v58, %v727_v59 }
 0x122   : > { %v790_v62 = vmax.f32 %v774_v45, 0.0 }
 0x123   : > { %v773_v18 = vadd.f32 %v1663_v63, %v750_v60 }
 0x125   : > { %v789_v61 = vmax.f32 %v773_v18, 0.0 }
 0x127   : > { %1276 = vmatprep.mubr.f32.mxu1 %v789_v61 }
 0x128   : > { %1277 = vmatmul.mubr.f32.gmra.mxu1 %v790_v62 }
 0x16b   : > { %v1257_v51 = vpop.f32.mrf.mxu0 }
 0x16c   : > { %v886_v58 = vadd.f32 %v1257_v51, %v1767_v46 }
 0x16d   : > { %v880_v63 = vpop.f32.mrf.mxu0 }
 0x16e   : > { %960 = vst [vmem:[%s1774_s28 + $0x8] sm:$0xff] %v886_v58  ;;  %v881_v0 = vadd.f32 %v1767_v46, %v880_v63  ;;  %v997_v1 = vmul.f32 %v886_v58, %v886_v58 }
 0x170   : > { %959 = vst [vmem:[%s1774_s28] sm:$0xff] %v881_v0  ;;  %v975_v2 = vadd.f32 %v886_v58, %v881_v0  ;;  %v996_v3 = vmul.f32 %v881_v0, %v881_v0 }
 0x172   : > { %v1012_v4 = vadd.f32 %v997_v1, %v996_v3 }
 0x18b   : > { %v1260_v5 = vpop.f32.mrf.mxu0 }
 0x18c   : > { %v896_v6 = vadd.f32 %v1260_v5, %v1767_v46 }
 0x18d   : > { %v890_v7 = vpop.f32.mrf.mxu0 }
 0x18e   : > { %962 = vst [vmem:[%s1774_s28 + $0x18] sm:$0xff] %v896_v6  ;;  %v891_v8 = vadd.f32 %v1767_v46, %v890_v7  ;;  %v999_v12 = vmul.f32 %v896_v6, %v896_v6 }
 0x190   : > { %961 = vst [vmem:[%s1774_s28 + $0x10] sm:$0xff] %v891_v8  ;;  %v976_v9 = vadd.f32 %v975_v2, %v891_v8  ;;  %v998_v10 = vmul.f32 %v891_v8, %v891_v8 }
 0x191   : > { %v1263_v11 = vpop.f32.mrf.mxu0 }
 0x192   : > { %v1013_v13 = vadd.f32 %v1012_v4, %v998_v10  ;;  %v906_v14 = vadd.f32 %v1263_v11, %v1767_v46  ;;  %v977_v16 = vadd.f32 %v976_v9, %v896_v6 }
 0x193   : > { %v900_v17 = vpop.f32.mrf.mxu0 }
 0x194   : > { %964 = vst [vmem:[%s1774_s28 + $0x28] sm:$0xff] %v906_v14  ;;  %v901_v19 = vadd.f32 %v1767_v46, %v900_v17  ;;  %v1014_v20 = vadd.f32 %v1013_v13, %v999_v12  ;;  %v1001_v24 = vmul.f32 %v906_v14, %v906_v14 }
 0x196   : > { %963 = vst [vmem:[%s1774_s28 + $0x20] sm:$0xff] %v901_v19  ;;  %v978_v21 = vadd.f32 %v977_v16, %v901_v19  ;;  %v1000_v22 = vmul.f32 %v901_v19, %v901_v19 }
 0x198   : > { %v1015_v25 = vadd.f32 %v1014_v20, %v1000_v22  ;;  %v979_v23 = vadd.f32 %v978_v21, %v906_v14 }
 0x19a   : > { %v1016_v26 = vadd.f32 %v1015_v25, %v1001_v24 }
 0x1a4   : > { %v1266_v27 = vpop.f32.mrf.mxu0 }
 0x1a5   : > { %v916_v28 = vadd.f32 %v1266_v27, %v1767_v46 }
 0x1a6   : > { %v910_v29 = vpop.f32.mrf.mxu0 }
 0x1a7   : > { %966 = vst [vmem:[%s1774_s28 + $0x38] sm:$0xff] %v916_v28  ;;  %v911_v30 = vadd.f32 %v1767_v46, %v910_v29  ;;  %v1003_v42 = vmul.f32 %v916_v28, %v916_v28 }
 0x1a9   : > { %965 = vst [vmem:[%s1774_s28 + $0x30] sm:$0xff] %v911_v30  ;;  %v1002_v38 = vmul.f32 %v911_v30, %v911_v30  ;;  %v980_v40 = vadd.f32 %v979_v23, %v911_v30 }
 0x1ab   : > { %v1017_v41 = vadd.f32 %v1016_v26, %v1002_v38  ;;  %v981_v43 = vadd.f32 %v980_v40, %v916_v28 }
 0x1ad   : > { %v1018_v48 = vadd.f32 %v1017_v41, %v1003_v42 }
 0x1b7   : > { %v1269_v31 = vpop.f32.mrf.mxu1 }
 0x1b8   : > { %v926_v32 = vadd.f32 %v1269_v31, %v1767_v46 }
 0x1b9   : > { %v920_v33 = vpop.f32.mrf.mxu1 }
 0x1ba   : > { %968 = vst [vmem:[%s1774_s28 + $0x48] sm:$0xff] %v926_v32  ;;  %v921_v15 = vadd.f32 %v1767_v46, %v920_v33  ;;  %v1005_v53 = vmul.f32 %v926_v32, %v926_v32 }
 0x1bc   : > { %967 = vst [vmem:[%s1774_s28 + $0x40] sm:$0xff] %v921_v15  ;;  %v1004_v44 = vmul.f32 %v921_v15, %v921_v15  ;;  %v982_v47 = vadd.f32 %v981_v43, %v921_v15 }
 0x1be   : > { %v1019_v49 = vadd.f32 %v1018_v48, %v1004_v44  ;;  %v983_v39 = vadd.f32 %v982_v47, %v926_v32 }
 0x1c0   : > { %v1020_v59 = vadd.f32 %v1019_v49, %v1005_v53 }
 0x1ca   : > { %v1272_v34 = vpop.f32.mrf.mxu1 }
 0x1cb   : > { %v936_v35 = vadd.f32 %v1272_v34, %v1767_v46 }
 0x1cc   : > { %v930_v36 = vpop.f32.mrf.mxu1 }
 0x1cd   : > { %970 = vst [vmem:[%s1774_s28 + $0x58] sm:$0xff] %v936_v35  ;;  %v931_v37 = vadd.f32 %v1767_v46, %v930_v36  ;;  %v1007_v45 = vmul.f32 %v936_v35, %v936_v35 }
 0x1cf   : > { %969 = vst [vmem:[%s1774_s28 + $0x50] sm:$0xff] %v931_v37  ;;  %v1006_v54 = vmul.f32 %v931_v37, %v931_v37  ;;  %v984_v57 = vadd.f32 %v983_v39, %v931_v37 }
 0x1d1   : > { %v1021_v60 = vadd.f32 %v1020_v59, %v1006_v54  ;;  %v985_v18 = vadd.f32 %v984_v57, %v936_v35 }
 0x1d3   : > { %v1022_v51 = vadd.f32 %v1021_v60, %v1007_v45 }
 0x1dd   : > { %v1275_v50 = vpop.f32.mrf.mxu1 }
 0x1de   : > { %v946_v52 = vadd.f32 %v1275_v50, %v1767_v46 }
 0x1df   : > { %v940_v55 = vpop.f32.mrf.mxu1 }
 0x1e0   : > { %972 = vst [vmem:[%s1774_s28 + $0x68] sm:$0xff] %v946_v52  ;;  %v941_v56 = vadd.f32 %v1767_v46, %v940_v55  ;;  %v1009_v2 = vmul.f32 %v946_v52, %v946_v52 }
 0x1e2   : > { %971 = vst [vmem:[%s1774_s28 + $0x60] sm:$0xff] %v941_v56  ;;  %v1008_v61 = vmul.f32 %v941_v56, %v941_v56  ;;  %v986_v62 = vadd.f32 %v985_v18, %v941_v56 }
 0x1e4   : > { %v1023_v63 = vadd.f32 %v1022_v51, %v1008_v61  ;;  %v987_v4 = vadd.f32 %v986_v62, %v946_v52 }
 0x1e6   : > { %v1024_v7 = vadd.f32 %v1023_v63, %v1009_v2 }
 0x1e8   : > { %v1278_v58 = vpop.f32.mrf.mxu1 }
 0x1e9   : > { %v956_v0 = vadd.f32 %v1278_v58, %v1767_v46 }
 0x1ea   : > { %v950_v1 = vpop.f32.mrf.mxu1 }
 0x1eb   : > { %974 = vst [vmem:[%s1774_s28 + $0x78] sm:$0xff] %v956_v0  ;;  %v951_v3 = vadd.f32 %v1767_v46, %v950_v1  ;;  %v1011_v8 = vmul.f32 %v956_v0, %v956_v0 }
 0x1ed   : > { %973 = vst [vmem:[%s1774_s28 + $0x70] sm:$0xff] %v951_v3  ;;  %v988_v5 = vadd.f32 %v987_v4, %v951_v3  ;;  %v1010_v6 = vmul.f32 %v951_v3, %v951_v3 }
 0x1ef   : > { %v989_v9 = vadd.f32 %v988_v5, %v956_v0  ;;  %v1025_v10 = vadd.f32 %v1024_v7, %v1010_v6 }
 0x1f1   : > { %v990_v11 = vrot.slane %v989_v9, 4  ;;  %v1026_v12 = vadd.f32 %v1025_v10, %v1011_v8 }
 0x1f3   : > { %v991_v13 = vadd.f32 %v990_v11, %v989_v9  ;;  %v1027_v14 = vrot.slane %v1026_v12, 4 }
 0x1f5   : > { %v992_v16 = vrot.slane %v991_v13, 2  ;;  %v1028_v17 = vadd.f32 %v1027_v14, %v1026_v12 }
 0x1f7   : > { %v993_v19 = vadd.f32 %v992_v16, %v991_v13  ;;  %v1029_v20 = vrot.slane %v1028_v17, 2 }
 0x1f9   : > { %v994_v21 = vrot.slane %v993_v19, 1  ;;  %v1030_v22 = vadd.f32 %v1029_v20, %v1028_v17  ;;  %1036 = sbr.rel (%p1188_p7) target bundleno = 512 (0x200), region = 52 }
 0x1fb   : > { %v995_v24 = vadd.f32 %v994_v21, %v993_v19  ;;  %v1031_v46 = vrot.slane %v1030_v22, 1 }
 0x1fd   : > { %v1032_v25 = vadd.f32 %v1031_v46, %v1030_v22 }
 0x1fe   : > { %v1424_v23 = vmov 0.0  }
 0x1ff   : > { %1037 = vst [vmem:[%s1534_s29] sm:$0x1] %v1424_v23  ;;  %1038 = vst [vmem:[%s1539_s18] sm:$0x1] %v1424_v23 }
 0x200 PF:  {}
 0x206   : > { %v1039_v26 = vld [vmem:[%s1534_s29] sm:$0x1] }
 0x207   : > { %v1042_v27 = vld [vmem:[%s1539_s18] sm:$0x1]  ;;  %v1040_v28 = vadd.f32 %v1039_v26, %v995_v24 }
 0x208   : > { %v1043_v29 = vadd.f32 %v1042_v27, %v1032_v25 }
 0x209   : > { %1041 = vst [vmem:[%s1534_s29] sm:$0x1] %v1040_v28 }
 0x20a   : > { %1044 = vst [vmem:[%s1539_s18] sm:$0x1] %v1043_v29 }
 0x20b PF: > { %s20_s13 = sadd.s32 1, %s1419_s13   ;;  %s1840_s30 = smov %s1411_s11 }
 0x20c   : > { %p17_p8 = scmp.ge.s32.totalorder %s20_s13, 18   ;;  %s1841_s10 = smov %s1415_s12 }
 0x20d   : > { %s1842_s11 = smov %s1845_s14  ;;  %s1843_s12 = smov %s1849_s15 }
 0x20e   :  { %19 = sbr.rel (!%p17_p8) target bundleno = 3 (0x3), region = 106 }

// kernel: pointnet_encoder.8
= control target key start
LH: loop header
LB: loop body
LE: loop exit
PB: predicated region body
PF: predicated region fallthrough
CT: control target
= control target key end

     0   :  { %s1868_s27 = smov 0   ;;  %s1870_s28 = smov 0   ;;  %s2714_s0 = inlined_call_operand.vmem [shape: f32[2048,256], index: 0, kind: input, shape index: {}]   ;;  %s2715_s1 = inlined_call_operand.vmem [shape: f32[1,256], index: 1, kind: input, shape index: {}]   ;;  %s2716_s2 = inlined_call_operand.vmem [shape: f32[1,256], index: 2, kind: input, shape index: {}]   ;;  %s2717_s3 = inlined_call_operand.vmem [shape: f32[256,512], index: 3, kind: input, shape index: {}]   ;;  %s2718_s4 = inlined_call_operand.vmem [shape: f32[1,512], index: 4, kind: input, shape index: {}]   ;;  %s2719_s5 = inlined_call_operand.vmem [shape: f32[16,1,512], index: 5, kind: output, shape index: {0}]   ;;  %s2720_s6 = inlined_call_operand.vmem [shape: f32[16,1,512], index: 6, kind: output, shape index: {1}]   ;;  %s2721_s7 = inlined_call_operand.vmem [shape: f32[2,1,512], index: 7, kind: output, shape index: {2}]   ;;  %s2722_s8 = inlined_call_operand.vmem [shape: f32[2,1,512], index: 8, kind: output, shape index: {3}]  }
   0x1   :  { %s1872_s29 = smov 0   ;;  %s1874_s30 = smov 0  }
   0x2   :  { %s1876_s9 = smov 0  }
   0x3 LB: > { %s28_s10 = sadd.s32 1, %s1811_s29  ;;  %s31_s11 = sadd.s32 1, %s1815_s30  ;;  %s1819_s9 = sphi %s1876_s9, %s19_s9   ;;  %s1815_s30 = sphi %s1874_s30, %s2729_s30   ;;  %s1811_s29 = sphi %s1872_s29, %s2728_s29   ;;  %s1807_s28 = sphi %s1870_s28, %s2727_s28   ;;  %s1803_s27 = sphi %s1868_s27, %s2726_s27  }
   0x4   : > { %p29_p0 = scmp.ge.s32.totalorder %s28_s10, 8  ;;  %p1724_p1 = scmp.ge.s32.totalorder %s1819_s9, 1 }
   0x5   : > { %p299_p2 = scmp.lt.s32.totalorder %s1819_s9, 17 }
   0x6   : > { %s2731_s10 = smov (%p29_p0, %s28_s10), 0  ;;  %s2733_s11 = smov (!%p29_p0, %s31_s11), %s1815_s30 }
   0x7   : > { %p300_p3 = pnand %p1724_p1, %p299_p2  ;;  %p33_p4 = scmp.ge.s32.totalorder %s2733_s11, 2 }
   0x8   : > { %p378_p5 = scmp.lt.s32.totalorder (!%p300_p3), %s1807_s28, 1  ;;  %s1725_s14 = sshll.u32 (!%p300_p3), %s1807_s28, 3 }
   0x9   : > { %s2735_s11 = smov (%p33_p4, %s2733_s11), 0  ;;  %303 = sbr.rel (%p300_p3) target bundleno = 415 (0x19f), region = 40 }
   0xa   : > { %s2108_s13 = sadd.s32 (!%p300_p3), %s1803_s27, %s1725_s14  ;;  %p1735_p8 = scmp.ne.s32.totalorder (!%p300_p3), %s1803_s27, 0 }
   0xb   : > { %p364_p7 = scmp.lt.s32.totalorder (!%p300_p3), %s2108_s13, 15 }
   0xe   : > { %v599_v0 = vld [vmem:[%s2717_s3 + $0x1e8] sm:$0xff]  ;;  %v601_v1 = vld [vmem:[%s2717_s3 + $0x1f8] sm:$0xff]  ;;  %v598_v2 = vld [vmem:[%s2717_s3 + $0x1e0] sm:$0xff]  ;;  %s379_s24 = scalar_select %p378_p5, %s1807_s28, 1 }
   0xf   : > { %688 = vmatprep.subr.mxu0 %v599_v0  ;;  %849 = vmatprep.subr.mxu1 %v601_v1  ;;  %v600_v3 = vld [vmem:[%s2717_s3 + $0x1f0] sm:$0xff]  ;;  %v595_v4 = vld [vmem:[%s2717_s3 + $0x1c8] sm:$0xff]  ;;  %v597_v5 = vld [vmem:[%s2717_s3 + $0x1d8] sm:$0xff] }
  0x10   : > { %689 = vmatpush1.msra.mxu0 %v598_v2  ;;  %850 = vmatpush1.msra.mxu1 %v600_v3  ;;  %v594_v6 = vld [vmem:[%s2717_s3 + $0x1c0] sm:$0xff]  ;;  %v596_v7 = vld [vmem:[%s2717_s3 + $0x1d0] sm:$0xff]  ;;  %v591_v8 = vld [vmem:[%s2717_s3 + $0x1a8] sm:$0xff]  ;;  %s1733_s22 = sshll.u32 %s379_s24, 2 }
  0x11   : > { %690 = vmatprep.subr.mxu0 %v595_v4  ;;  %851 = vmatprep.subr.mxu1 %v597_v5  ;;  %v593_v9 = vld [vmem:[%s2717_s3 + $0x1b8] sm:$0xff]  ;;  %v590_v10 = vld [vmem:[%s2717_s3 + $0x1a0] sm:$0xff]  ;;  %v592_v11 = vld [vmem:[%s2717_s3 + $0x1b0] sm:$0xff]  ;;  %s1949_s15 = scalar_lea.vmem %s2721_s7, %s1733_s22  ;;  %s1954_s18 = scalar_lea.vmem %s2722_s8, %s1733_s22 }
  0x12   : > { %691 = vmatpush1.msra.mxu0 %v594_v6  ;;  %852 = vmatpush1.msra.mxu1 %v596_v7  ;;  %v587_v12 = vld [vmem:[%s2717_s3 + $0x188] sm:$0xff]  ;;  %v589_v13 = vld [vmem:[%s2717_s3 + $0x198] sm:$0xff]  ;;  %v586_v14 = vld [vmem:[%s2717_s3 + $0x180] sm:$0xff]  ;;  %s1726_s22 = sshll.u32 %s2108_s13, 4  ;;  %s2739_s13 = smov (!%p364_p7, %s2108_s13), 15 }
  0x13   : > { %692 = vmatprep.subr.mxu0 %v591_v8  ;;  %853 = vmatprep.subr.mxu1 %v593_v9  ;;  %v588_v15 = vld [vmem:[%s2717_s3 + $0x190] sm:$0xff]  ;;  %v583_v16 = vld [vmem:[%s2717_s3 + $0x168] sm:$0xff]  ;;  %v585_v17 = vld [vmem:[%s2717_s3 + $0x178] sm:$0xff]  ;;  %p2149_p6 = scmp.lt.s32.totalorder %s1726_s22, 255  ;;  %s1730_s23 = sshll.u32 %s2739_s13, 2 }
  0x14   : > { %693 = vmatpush1.msra.mxu0 %v590_v10  ;;  %854 = vmatpush1.msra.mxu1 %v592_v11  ;;  %v582_v18 = vld [vmem:[%s2717_s3 + $0x160] sm:$0xff]  ;;  %v584_v19 = vld [vmem:[%s2717_s3 + $0x170] sm:$0xff]  ;;  %v579_v20 = vld [vmem:[%s2717_s3 + $0x148] sm:$0xff]  ;;  %s375_s12 = scalar_lea.vmem %s2720_s6, %s1730_s23 }
  0x15   : > { %694 = vmatprep.subr.mxu0 %v587_v12  ;;  %855 = vmatprep.subr.mxu1 %v589_v13  ;;  %v581_v21 = vld [vmem:[%s2717_s3 + $0x158] sm:$0xff]  ;;  %v578_v22 = vld [vmem:[%s2717_s3 + $0x140] sm:$0xff]  ;;  %v580_v23 = vld [vmem:[%s2717_s3 + $0x150] sm:$0xff]  ;;  %s2737_s22 = smov (!%p2149_p6, %s1726_s22), 255 }
  0x16   : > { %695 = vmatpush1.msra.mxu0 %v586_v14  ;;  %856 = vmatpush1.msra.mxu1 %v588_v15  ;;  %v575_v24 = vld [vmem:[%s2717_s3 + $0x128] sm:$0xff]  ;;  %v577_v25 = vld [vmem:[%s2717_s3 + $0x138] sm:$0xff]  ;;  %v574_v26 = vld [vmem:[%s2717_s3 + $0x120] sm:$0xff]  ;;  %v420_v14 = vlaneseq  ;;  %s1738_s26 = sshll.u32 %s2737_s22, 4 }
  0x17   : > { %696 = vmatprep.subr.mxu0 %v583_v16  ;;  %857 = vmatprep.subr.mxu1 %v585_v17  ;;  %v576_v27 = vld [vmem:[%s2717_s3 + $0x130] sm:$0xff]  ;;  %v571_v28 = vld [vmem:[%s2717_s3 + $0x108] sm:$0xff]  ;;  %v573_v29 = vld [vmem:[%s2717_s3 + $0x118] sm:$0xff]  ;;  %s2238_s19 = scalar_lea.vmem %s2714_s0, %s1738_s26  ;;  %s367_s26 = scalar_lea.vmem %s2719_s5, %s1730_s23 }
  0x18   : > { %697 = vmatpush1.msra.mxu0 %v582_v18  ;;  %858 = vmatpush1.msra.mxu1 %v584_v19  ;;  %v570_v30 = vld [vmem:[%s2717_s3 + $0x100] sm:$0xff]  ;;  %v572_v31 = vld [vmem:[%s2717_s3 + $0x110] sm:$0xff]  ;;  %v567_v32 = vld [vmem:[%s2717_s3 + $0xe8] sm:$0xff]  ;;  %vm2664_vm0 = vcmp.lt.s32.totalorder %v420_v14, 512 }
  0x19   : > { %698 = vmatprep.subr.mxu0 %v579_v20  ;;  %859 = vmatprep.subr.mxu1 %v581_v21  ;;  %v569_v33 = vld [vmem:[%s2717_s3 + $0xf8] sm:$0xff]  ;;  %v566_v34 = vld [vmem:[%s2717_s3 + $0xe0] sm:$0xff]  ;;  %v568_v35 = vld [vmem:[%s2717_s3 + $0xf0] sm:$0xff] }
  0x1a   : > { %699 = vmatpush1.msra.mxu0 %v578_v22  ;;  %860 = vmatpush1.msra.mxu1 %v580_v23  ;;  %v563_v36 = vld [vmem:[%s2717_s3 + $0xc8] sm:$0xff]  ;;  %v565_v37 = vld [vmem:[%s2717_s3 + $0xd8] sm:$0xff]  ;;  %v562_v38 = vld [vmem:[%s2717_s3 + $0xc0] sm:$0xff]  ;;  %v2190_v23 = vshrl.u32 %v420_v14, 7 }
  0x1b   : > { %700 = vmatprep.subr.mxu0 %v575_v24  ;;  %861 = vmatprep.subr.mxu1 %v577_v25  ;;  %v564_v39 = vld [vmem:[%s2717_s3 + $0xd0] sm:$0xff]  ;;  %v559_v40 = vld [vmem:[%s2717_s3 + $0xa8] sm:$0xff]  ;;  %v561_v41 = vld [vmem:[%s2717_s3 + $0xb8] sm:$0xff] }
  0x1c   : > { %701 = vmatpush1.msra.mxu0 %v574_v26  ;;  %862 = vmatpush1.msra.mxu1 %v576_v27  ;;  %v558_v42 = vld [vmem:[%s2717_s3 + $0xa0] sm:$0xff]  ;;  %v560_v43 = vld [vmem:[%s2717_s3 + $0xb0] sm:$0xff]  ;;  %v555_v44 = vld [vmem:[%s2717_s3 + $0x88] sm:$0xff] }
  0x1d   : > { %702 = vmatprep.subr.mxu0 %v571_v28  ;;  %863 = vmatprep.subr.mxu1 %v573_v29  ;;  %v557_v45 = vld [vmem:[%s2717_s3 + $0x98] sm:$0xff]  ;;  %v554_v46 = vld [vmem:[%s2717_s3 + $0x80] sm:$0xff]  ;;  %v556_v47 = vld [vmem:[%s2717_s3 + $0x90] sm:$0xff] }
  0x1e   : > { %703 = vmatpush1.msra.mxu0 %v570_v30  ;;  %864 = vmatpush1.msra.mxu1 %v572_v31  ;;  %v551_v48 = vld [vmem:[%s2717_s3 + $0x68] sm:$0xff]  ;;  %v553_v49 = vld [vmem:[%s2717_s3 + $0x78] sm:$0xff]  ;;  %v550_v50 = vld [vmem:[%s2717_s3 + $0x60] sm:$0xff] }
  0x1f   : > { %704 = vmatprep.subr.mxu0 %v567_v32  ;;  %865 = vmatprep.subr.mxu1 %v569_v33  ;;  %v552_v51 = vld [vmem:[%s2717_s3 + $0x70] sm:$0xff]  ;;  %v547_v52 = vld [vmem:[%s2717_s3 + $0x48] sm:$0xff]  ;;  %v549_v53 = vld [vmem:[%s2717_s3 + $0x58] sm:$0xff]  ;;  %v2218_v32 = vsub.s32 1, %v2190_v23 }
  0x20   : > { %705 = vmatpush1.msra.mxu0 %v566_v34  ;;  %866 = vmatpush1.msra.mxu1 %v568_v35  ;;  %v546_v54 = vld [vmem:[%s2717_s3 + $0x40] sm:$0xff]  ;;  %v548_v55 = vld [vmem:[%s2717_s3 + $0x50] sm:$0xff]  ;;  %v543_v56 = vld [vmem:[%s2717_s3 + $0x28] sm:$0xff] }
  0x21   : > { %706 = vmatprep.subr.mxu0 %v563_v36  ;;  %867 = vmatprep.subr.mxu1 %v565_v37  ;;  %v545_v57 = vld [vmem:[%s2717_s3 + $0x38] sm:$0xff]  ;;  %v542_v58 = vld [vmem:[%s2717_s3 + $0x20] sm:$0xff]  ;;  %v544_v59 = vld [vmem:[%s2717_s3 + $0x30] sm:$0xff] }
  0x22   : > { %707 = vmatpush1.msra.mxu0 %v562_v38  ;;  %868 = vmatpush1.msra.mxu1 %v564_v39  ;;  %v539_v60 = vld [vmem:[%s2717_s3 + $0x8] sm:$0xff]  ;;  %v541_v61 = vld [vmem:[%s2717_s3 + $0x18] sm:$0xff]  ;;  %v538_v62 = vld [vmem:[%s2717_s3] sm:$0xff]  ;;  %v2241_v38 = vsub.s32 0, %v2190_v23 }
  0x23   : > { %708 = vmatprep.subr.mxu0 %v559_v40  ;;  %869 = vmatprep.subr.mxu1 %v561_v41  ;;  %v540_v63 = vld [vmem:[%s2717_s3 + $0x10] sm:$0xff]  ;;  %v663_v0 = vld [vmem:[%s2717_s3 + $0x3e8] sm:$0xff]  ;;  %v665_v1 = vld [vmem:[%s2717_s3 + $0x3f8] sm:$0xff] }
  0x24   : > { %709 = vmatpush1.msra.mxu0 %v558_v42  ;;  %870 = vmatpush1.msra.mxu1 %v560_v43  ;;  %v662_v2 = vld [vmem:[%s2717_s3 + $0x3e0] sm:$0xff]  ;;  %v664_v3 = vld [vmem:[%s2717_s3 + $0x3f0] sm:$0xff]  ;;  %v659_v4 = vld [vmem:[%s2717_s3 + $0x3c8] sm:$0xff] }
  0x25   : > { %710 = vmatprep.subr.mxu0 %v555_v44  ;;  %871 = vmatprep.subr.mxu1 %v557_v45  ;;  %v661_v5 = vld [vmem:[%s2717_s3 + $0x3d8] sm:$0xff]  ;;  %v658_v6 = vld [vmem:[%s2717_s3 + $0x3c0] sm:$0xff]  ;;  %v660_v7 = vld [vmem:[%s2717_s3 + $0x3d0] sm:$0xff] }
  0x26   : > { %711 = vmatpush1.msra.mxu0 %v554_v46  ;;  %872 = vmatpush1.msra.mxu1 %v556_v47  ;;  %v655_v8 = vld [vmem:[%s2717_s3 + $0x3a8] sm:$0xff]  ;;  %v657_v9 = vld [vmem:[%s2717_s3 + $0x3b8] sm:$0xff]  ;;  %v654_v10 = vld [vmem:[%s2717_s3 + $0x3a0] sm:$0xff] }
  0x27   : > { %712 = vmatprep.subr.mxu0 %v551_v48  ;;  %873 = vmatprep.subr.mxu1 %v553_v49  ;;  %v656_v11 = vld [vmem:[%s2717_s3 + $0x3b0] sm:$0xff]  ;;  %v651_v12 = vld [vmem:[%s2717_s3 + $0x388] sm:$0xff]  ;;  %v653_v13 = vld [vmem:[%s2717_s3 + $0x398] sm:$0xff] }
  0x28   : > { %713 = vmatpush1.msra.mxu0 %v550_v50  ;;  %874 = vmatpush1.msra.mxu1 %v552_v51  ;;  %v650_v15 = vld [vmem:[%s2717_s3 + $0x380] sm:$0xff]  ;;  %v652_v16 = vld [vmem:[%s2717_s3 + $0x390] sm:$0xff]  ;;  %v647_v17 = vld [vmem:[%s2717_s3 + $0x368] sm:$0xff] }
  0x29   : > { %714 = vmatprep.subr.mxu0 %v547_v52  ;;  %875 = vmatprep.subr.mxu1 %v549_v53  ;;  %v649_v18 = vld [vmem:[%s2717_s3 + $0x378] sm:$0xff]  ;;  %v646_v19 = vld [vmem:[%s2717_s3 + $0x360] sm:$0xff]  ;;  %v648_v20 = vld [vmem:[%s2717_s3 + $0x370] sm:$0xff] }
  0x2a   : > { %715 = vmatpush1.msra.mxu0 %v546_v54  ;;  %876 = vmatpush1.msra.mxu1 %v548_v55  ;;  %v643_v21 = vld [vmem:[%s2717_s3 + $0x348] sm:$0xff]  ;;  %v645_v22 = vld [vmem:[%s2717_s3 + $0x358] sm:$0xff]  ;;  %v642_v24 = vld [vmem:[%s2717_s3 + $0x340] sm:$0xff] }
  0x2b   : > { %716 = vmatprep.subr.mxu0 %v543_v56  ;;  %877 = vmatprep.subr.mxu1 %v545_v57  ;;  %v644_v25 = vld [vmem:[%s2717_s3 + $0x350] sm:$0xff]  ;;  %v639_v26 = vld [vmem:[%s2717_s3 + $0x328] sm:$0xff]  ;;  %v641_v27 = vld [vmem:[%s2717_s3 + $0x338] sm:$0xff] }
  0x2c   : > { %717 = vmatpush1.msra.mxu0 %v542_v58  ;;  %878 = vmatpush1.msra.mxu1 %v544_v59  ;;  %v638_v28 = vld [vmem:[%s2717_s3 + $0x320] sm:$0xff]  ;;  %v640_v29 = vld [vmem:[%s2717_s3 + $0x330] sm:$0xff]  ;;  %v635_v30 = vld [vmem:[%s2717_s3 + $0x308] sm:$0xff] }
  0x2d   : > { %718 = vmatprep.subr.mxu0 %v539_v60  ;;  %879 = vmatprep.subr.mxu1 %v541_v61  ;;  %v637_v31 = vld [vmem:[%s2717_s3 + $0x318] sm:$0xff]  ;;  %v634_v33 = vld [vmem:[%s2717_s3 + $0x300] sm:$0xff]  ;;  %v636_v34 = vld [vmem:[%s2717_s3 + $0x310] sm:$0xff] }
  0x2e   : > { %719 = vmatpush1.msra.mxu0 %v538_v62  ;;  %880 = vmatpush1.msra.mxu1 %v540_v63  ;;  %v418_v35 = vld [vmem:[%s2715_s1] sm:$0x3]  ;;  %v631_v36 = vld [vmem:[%s2717_s3 + $0x2e8] sm:$0xff]  ;;  %v633_v37 = vld [vmem:[%s2717_s3 + $0x2f8] sm:$0xff] }
  0x2f   : > { %720 = vmatprep.subr.mxu0 %v663_v0  ;;  %881 = vmatprep.subr.mxu1 %v665_v1  ;;  %v630_v39 = vld [vmem:[%s2717_s3 + $0x2e0] sm:$0xff]  ;;  %v632_v40 = vld [vmem:[%s2717_s3 + $0x2f0] sm:$0xff]  ;;  %v627_v41 = vld [vmem:[%s2717_s3 + $0x2c8] sm:$0xff]  ;;  %v2259_v44 = vrot.slane %v418_v35, %v2218_v32  ;;  %v2275_v50 = vrot.slane %v418_v35, %v2241_v38 }
  0x30   : > { %721 = vmatpush2.msra.mxu0 %v662_v2  ;;  %882 = vmatpush2.msra.mxu1 %v664_v3  ;;  %v629_v42 = vld [vmem:[%s2717_s3 + $0x2d8] sm:$0xff]  ;;  %v626_v43 = vld [vmem:[%s2717_s3 + $0x2c0] sm:$0xff]  ;;  %v628_v45 = vld [vmem:[%s2717_s3 + $0x2d0] sm:$0xff] }
  0x31   : > { %722 = vmatprep.subr.mxu0 %v659_v4  ;;  %883 = vmatprep.subr.mxu1 %v661_v5  ;;  %v387_v46 = vld [vmem:[%s2238_s19 + $0x8] sm:$0xff]  ;;  %v462_v47 = vld [vmem:[%s2716_s2] sm:$0x3]  ;;  %v625_v49 = vld [vmem:[%s2717_s3 + $0x2b8] sm:$0xff] }
  0x32   : > { %723 = vmatpush2.msra.mxu0 %v658_v6  ;;  %884 = vmatpush2.msra.mxu1 %v660_v7  ;;  %v623_v48 = vld [vmem:[%s2717_s3 + $0x2a8] sm:$0xff]  ;;  %v622_v51 = vld [vmem:[%s2717_s3 + $0x2a0] sm:$0xff]  ;;  %v624_v52 = vld [vmem:[%s2717_s3 + $0x2b0] sm:$0xff]  ;;  %v431_v56 = vmul.f32 %v2259_v44, %v387_v46  ;;  %v2292_v57 = vrot.slane %v462_v47, %v2218_v32  ;;  %v2308_v63 = vrot.slane %v462_v47, %v2241_v38 }
  0x33   : > { %724 = vmatprep.subr.mxu0 %v655_v8  ;;  %885 = vmatprep.subr.mxu1 %v657_v9  ;;  %v386_v53 = vld [vmem:[%s2238_s19] sm:$0xff]  ;;  %v619_v54 = vld [vmem:[%s2717_s3 + $0x288] sm:$0xff]  ;;  %v621_v55 = vld [vmem:[%s2717_s3 + $0x298] sm:$0xff] }
  0x34   : > { %725 = vmatpush2.msra.mxu0 %v654_v10  ;;  %886 = vmatpush2.msra.mxu1 %v656_v11  ;;  %v389_v58 = vld [vmem:[%s2238_s19 + $0x18] sm:$0xff]  ;;  %v618_v59 = vld [vmem:[%s2717_s3 + $0x280] sm:$0xff]  ;;  %v620_v60 = vld [vmem:[%s2717_s3 + $0x290] sm:$0xff]  ;;  %v430_v0 = vmul.f32 %v2275_v50, %v386_v53  ;;  %v475_v7 = vadd.f32 %v2292_v57, %v431_v56 }
  0x35   : > { %726 = vmatprep.subr.mxu0 %v651_v12  ;;  %887 = vmatprep.subr.mxu1 %v653_v13  ;;  %v615_v61 = vld [vmem:[%s2717_s3 + $0x268] sm:$0xff]  ;;  %v617_v62 = vld [vmem:[%s2717_s3 + $0x278] sm:$0xff]  ;;  %v614_v1 = vld [vmem:[%s2717_s3 + $0x260] sm:$0xff]  ;;  %v433_v3 = vmul.f32 %v2259_v44, %v389_v58 }
  0x36   : > { %727 = vmatpush2.msra.mxu0 %v650_v15  ;;  %888 = vmatpush2.msra.mxu1 %v652_v16  ;;  %v616_v2 = vld [vmem:[%s2717_s3 + $0x270] sm:$0xff]  ;;  %v611_v5 = vld [vmem:[%s2717_s3 + $0x248] sm:$0xff]  ;;  %v613_v6 = vld [vmem:[%s2717_s3 + $0x258] sm:$0xff]  ;;  %v474_v13 = vadd.f32 %v2308_v63, %v430_v0 }
  0x37   : > { %728 = vmatprep.subr.mxu0 %v647_v17  ;;  %889 = vmatprep.subr.mxu1 %v649_v18  ;;  %v388_v4 = vld [vmem:[%s2238_s19 + $0x10] sm:$0xff]  ;;  %v391_v8 = vld [vmem:[%s2238_s19 + $0x28] sm:$0xff]  ;;  %v610_v9 = vld [vmem:[%s2717_s3 + $0x240] sm:$0xff]  ;;  %v477_v18 = vadd.f32 %v2292_v57, %v433_v3 }
  0x38   : > { %729 = vmatpush2.msra.mxu0 %v646_v19  ;;  %890 = vmatpush2.msra.mxu1 %v648_v20  ;;  %v612_v10 = vld [vmem:[%s2717_s3 + $0x250] sm:$0xff]  ;;  %v607_v11 = vld [vmem:[%s2717_s3 + $0x228] sm:$0xff]  ;;  %v609_v12 = vld [vmem:[%s2717_s3 + $0x238] sm:$0xff]  ;;  %v432_v15 = vmul.f32 %v2275_v50, %v388_v4  ;;  %v435_v19 = vmul.f32 %v2259_v44, %v391_v8 }
  0x39   : > { %730 = vmatprep.subr.mxu0 %v643_v21  ;;  %891 = vmatprep.subr.mxu1 %v645_v22  ;;  %v606_v16 = vld [vmem:[%s2717_s3 + $0x220] sm:$0xff]  ;;  %v608_v17 = vld [vmem:[%s2717_s3 + $0x230] sm:$0xff]  ;;  %v603_v21 = vld [vmem:[%s2717_s3 + $0x208] sm:$0xff] }
  0x3a   : > { %731 = vmatpush2.msra.mxu0 %v642_v24  ;;  %892 = vmatpush2.msra.mxu1 %v644_v25  ;;  %v390_v20 = vld [vmem:[%s2238_s19 + $0x20] sm:$0xff]  ;;  %v605_v22 = vld [vmem:[%s2717_s3 + $0x218] sm:$0xff]  ;;  %v507_v24 = vmax.f32 %v475_v7, 0.0  ;;  %v392_v35 = vld [vmem:[%s2238_s19 + $0x30] sm:$0xff] }
  0x3b   : > { %732 = vmatprep.subr.mxu0 %v639_v26  ;;  %893 = vmatprep.subr.mxu1 %v641_v27  ;;  %v393_v25 = vld [vmem:[%s2238_s19 + $0x38] sm:$0xff]  ;;  %v602_v26 = vld [vmem:[%s2717_s3 + $0x200] sm:$0xff]  ;;  %v604_v27 = vld [vmem:[%s2717_s3 + $0x210] sm:$0xff] }
  0x3c   : > { %733 = vmatpush2.msra.mxu0 %v638_v28  ;;  %894 = vmatpush2.msra.mxu1 %v640_v29  ;;  %v506_v28 = vmax.f32 %v474_v13, 0.0  ;;  %v476_v29 = vadd.f32 %v2308_v63, %v432_v15  ;;  %v397_v46 = vld [vmem:[%s2238_s19 + $0x58] sm:$0xff]  ;;  %v398_v0 = vld [vmem:[%s2238_s19 + $0x60] sm:$0xff]  ;;  %v400_v8 = vld [vmem:[%s2238_s19 + $0x70] sm:$0xff] }
  0x3d   : > { %734 = vmatprep.subr.mxu0 %v635_v30  ;;  %895 = vmatprep.subr.mxu1 %v637_v31  ;;  %v434_v30 = vmul.f32 %v2275_v50, %v390_v20  ;;  %v509_v31 = vmax.f32 %v477_v18, 0.0  ;;  %v441_v53 = vmul.f32 %v2259_v44, %v397_v46  ;;  %v442_v4 = vmul.f32 %v2275_v50, %v398_v0  ;;  %v405_v18 = vld [vmem:[%s2238_s19 + $0x98] sm:$0xff]  ;;  %v411_v46 = vld [vmem:[%s2238_s19 + $0xc8] sm:$0xff]  ;;  %v412_v0 = vld [vmem:[%s2238_s19 + $0xd0] sm:$0xff] }
  0x3e   : > { %735 = vmatpush2.msra.mxu0 %v634_v33  ;;  %896 = vmatpush2.msra.mxu1 %v636_v34  ;;  %v479_v33 = vadd.f32 %v2292_v57, %v435_v19  ;;  %v437_v34 = vmul.f32 %v2259_v44, %v393_v25  ;;  %v449_v25 = vmul.f32 %v2259_v44, %v405_v18 }
  0x3f   : > { %736 = vmatprep.subr.mxu0 %v631_v36  ;;  %897 = vmatprep.subr.mxu1 %v633_v37  ;;  %v395_v36 = vld [vmem:[%s2238_s19 + $0x48] sm:$0xff]  ;;  %v508_v37 = vmax.f32 %v476_v29, 0.0 }
  0x40   : > { %737 = vmatpush2.msra.mxu0 %v630_v39  ;;  %898 = vmatpush2.msra.mxu1 %v632_v40  ;;  %v478_v39 = vadd.f32 %v2308_v63, %v434_v30  ;;  %v436_v40 = vmul.f32 %v2275_v50, %v392_v35  ;;  %v406_v35 = vld [vmem:[%s2238_s19 + $0xa0] sm:$0xff] }
  0x41   : > { %738 = vmatprep.subr.mxu0 %v627_v41  ;;  %899 = vmatprep.subr.mxu1 %v629_v42  ;;  %v511_v41 = vmax.f32 %v479_v33, 0.0  ;;  %v481_v42 = vadd.f32 %v2292_v57, %v437_v34  ;;  %v493_v33 = vadd.f32 %v2292_v57, %v449_v25 }
  0x42   : > { %739 = vmatpush2.msra.mxu0 %v626_v43  ;;  %900 = vmatpush2.msra.mxu1 %v628_v45  ;;  %v439_v43 = vmul.f32 %v2259_v44, %v395_v36  ;;  %v394_v45 = vld [vmem:[%s2238_s19 + $0x40] sm:$0xff]  ;;  %v510_v47 = vmax.f32 %v478_v39, 0.0  ;;  %v409_v36 = vld [vmem:[%s2238_s19 + $0xb8] sm:$0xff] }
  0x43   : > { %740 = vmatprep.subr.mxu0 %v623_v48  ;;  %901 = vmatprep.subr.mxu1 %v625_v49  ;;  %v480_v48 = vadd.f32 %v2308_v63, %v436_v40  ;;  %v438_v49 = vmul.f32 %v2275_v50, %v394_v45  ;;  %v450_v40 = vmul.f32 %v2275_v50, %v406_v35  ;;  %v408_v45 = vld [vmem:[%s2238_s19 + $0xb0] sm:$0xff] }
  0x44   : > { %741 = vmatpush2.msra.mxu0 %v622_v51  ;;  %902 = vmatpush2.msra.mxu1 %v624_v52  ;;  %v513_v51 = vmax.f32 %v481_v42, 0.0  ;;  %v483_v52 = vadd.f32 %v2292_v57, %v439_v43  ;;  %v453_v43 = vmul.f32 %v2259_v44, %v409_v36 }
  0x45   : > { %742 = vmatprep.subr.mxu0 %v619_v54  ;;  %903 = vmatprep.subr.mxu1 %v621_v55  ;;  %v396_v54 = vld [vmem:[%s2238_s19 + $0x50] sm:$0xff]  ;;  %v399_v55 = vld [vmem:[%s2238_s19 + $0x68] sm:$0xff]  ;;  %v512_v56 = vmax.f32 %v480_v48, 0.0  ;;  %v482_v58 = vadd.f32 %v2308_v63, %v438_v49  ;;  %v494_v48 = vadd.f32 %v2308_v63, %v450_v40  ;;  %v452_v49 = vmul.f32 %v2275_v50, %v408_v45 }
  0x46   : > { %743 = vmatpush2.msra.mxu0 %v618_v59  ;;  %904 = vmatpush2.msra.mxu1 %v620_v60  ;;  %v440_v59 = vmul.f32 %v2275_v50, %v396_v54  ;;  %v515_v60 = vmax.f32 %v483_v52, 0.0  ;;  %v497_v52 = vadd.f32 %v2292_v57, %v453_v43  ;;  %v410_v54 = vld [vmem:[%s2238_s19 + $0xc0] sm:$0xff] }
  0x47   : > { %744 = vmatprep.subr.mxu0 %v615_v61  ;;  %905 = vmatprep.subr.mxu1 %v617_v62  ;;  %v485_v61 = vadd.f32 %v2292_v57, %v441_v53  ;;  %v443_v62 = vmul.f32 %v2259_v44, %v399_v55  ;;  %v455_v53 = vmul.f32 %v2259_v44, %v411_v46  ;;  %v413_v55 = vld [vmem:[%s2238_s19 + $0xd8] sm:$0xff] }
  0x48   : > { %745 = vmatpush2.msra.mxu0 %v614_v1  ;;  %906 = vmatpush2.msra.mxu1 %v616_v2  ;;  %v401_v1 = vld [vmem:[%s2238_s19 + $0x78] sm:$0xff]  ;;  %v514_v2 = vmax.f32 %v482_v58, 0.0  ;;  %v484_v3 = vadd.f32 %v2308_v63, %v440_v59  ;;  %v496_v58 = vadd.f32 %v2308_v63, %v452_v49  ;;  %v454_v59 = vmul.f32 %v2275_v50, %v410_v54 }
  0x49   : > { %746 = vmatprep.subr.mxu0 %v611_v5  ;;  %907 = vmatprep.subr.mxu1 %v613_v6  ;;  %v517_v5 = vmax.f32 %v485_v61, 0.0  ;;  %v487_v6 = vadd.f32 %v2292_v57, %v443_v62  ;;  %v445_v7 = vmul.f32 %v2259_v44, %v401_v1  ;;  %v499_v61 = vadd.f32 %v2292_v57, %v455_v53  ;;  %v415_v1 = vld [vmem:[%s2238_s19 + $0xe8] sm:$0xff] }
  0x4a   : > { %747 = vmatpush2.msra.mxu0 %v610_v9  ;;  %908 = vmatpush2.msra.mxu1 %v612_v10  ;;  %v403_v9 = vld [vmem:[%s2238_s19 + $0x88] sm:$0xff]  ;;  %v516_v10 = vmax.f32 %v484_v3, 0.0  ;;  %v457_v62 = vmul.f32 %v2259_v44, %v413_v55  ;;  %v498_v3 = vadd.f32 %v2308_v63, %v454_v59 }
  0x4b   : > { %748 = vmatprep.subr.mxu0 %v607_v11  ;;  %909 = vmatprep.subr.mxu1 %v609_v12  ;;  %v486_v11 = vadd.f32 %v2308_v63, %v442_v4  ;;  %v444_v12 = vmul.f32 %v2275_v50, %v400_v8  ;;  %v519_v13 = vmax.f32 %v487_v6, 0.0  ;;  %v489_v15 = vadd.f32 %v2292_v57, %v445_v7  ;;  %v414_v8 = vld [vmem:[%s2238_s19 + $0xe0] sm:$0xff] }
  0x4c   : > { %749 = vmatpush2.msra.mxu0 %v606_v16  ;;  %910 = vmatpush2.msra.mxu1 %v608_v17  ;;  %v447_v16 = vmul.f32 %v2259_v44, %v403_v9  ;;  %v402_v17 = vld [vmem:[%s2238_s19 + $0x80] sm:$0xff]  ;;  %v456_v4 = vmul.f32 %v2275_v50, %v412_v0  ;;  %v501_v6 = vadd.f32 %v2292_v57, %v457_v62  ;;  %v417_v9 = vld [vmem:[%s2238_s19 + $0xf8] sm:$0xff] }
  0x4d   : > { %750 = vmatprep.subr.mxu0 %v603_v21  ;;  %911 = vmatprep.subr.mxu1 %v605_v22  ;;  %v518_v19 = vmax.f32 %v486_v11, 0.0  ;;  %v488_v20 = vadd.f32 %v2308_v63, %v444_v12  ;;  %v446_v21 = vmul.f32 %v2275_v50, %v402_v17  ;;  %v521_v22 = vmax.f32 %v489_v15, 0.0  ;;  %v416_v17 = vld [vmem:[%s2238_s19 + $0xf0] sm:$0xff] }
  0x4e   : > { %751 = vmatpush2.msra.mxu0 %v602_v26  ;;  %752 = vmatprep.mubr.f32.mxu0 %v507_v24  ;;  %v404_v26 = vld [vmem:[%s2238_s19 + $0x90] sm:$0xff]  ;;  %v459_v7 = vmul.f32 %v2259_v44, %v415_v1  ;;  %v500_v11 = vadd.f32 %v2308_v63, %v456_v4  ;;  %v458_v12 = vmul.f32 %v2275_v50, %v414_v8 }
  0x4f   : > { %912 = vmatpush2.msra.mxu1 %v604_v27  ;;  %913 = vmatprep.mubr.f32.mxu1 %v507_v24  ;;  %v491_v24 = vadd.f32 %v2292_v57, %v447_v16  ;;  %v407_v27 = vld [vmem:[%s2238_s19 + $0xa8] sm:$0xff]  ;;  %v490_v29 = vadd.f32 %v2308_v63, %v446_v21  ;;  %v448_v30 = vmul.f32 %v2275_v50, %v404_v26 }
  0x50   : > { %753 = vmatmul.mubr.f32.vlgmr.msra.gmra.mxu0 %v506_v28  ;;  %914 = vmatmul.mubr.f32.vlgmr.msra.gmra.mxu1 %v506_v28  ;;  %v520_v28 = vmax.f32 %v488_v20, 0.0  ;;  %v451_v34 = vmul.f32 %v2259_v44, %v407_v27  ;;  %v503_v15 = vadd.f32 %v2292_v57, %v459_v7  ;;  %v461_v16 = vmul.f32 %v2259_v44, %v417_v9 }
  0x51   : > { %758 = vmatprep.mubr.f32.mxu0 %v509_v31  ;;  %919 = vmatprep.mubr.f32.mxu1 %v509_v31  ;;  %v523_v31 = vmax.f32 %v491_v24, 0.0  ;;  %v492_v39 = vadd.f32 %v2308_v63, %v448_v30  ;;  %v532_v18 = vmax.f32 %v500_v11, 0.0  ;;  %v460_v20 = vmul.f32 %v2275_v50, %v416_v17 }
  0x52   : > { %v495_v42 = vadd.f32 %v2292_v57, %v451_v34  ;;  %v535_v21 = vmax.f32 %v503_v15, 0.0  ;;  %v678_v50 = vsub.s32 2, %v2190_v23  ;;  %v682_v27 = vsub.s32 3, %v2190_v23 }
  0x53   : > { %v504_v25 = vadd.f32 %v2308_v63, %v460_v20 }
  0x54   : > { %759 = vmatmul.mubr.f32.gmra.mxu0 %v508_v37  ;;  %920 = vmatmul.mubr.f32.gmra.mxu1 %v508_v37  ;;  %v522_v37 = vmax.f32 %v490_v29, 0.0 }
  0x55   : > { %764 = vmatprep.mubr.f32.mxu0 %v511_v41  ;;  %925 = vmatprep.mubr.f32.mxu1 %v511_v41  ;;  %v525_v41 = vmax.f32 %v493_v33, 0.0  ;;  %v536_v26 = vmax.f32 %v504_v25, 0.0 }
  0x58   : > { %765 = vmatmul.mubr.f32.gmra.mxu0 %v510_v47  ;;  %926 = vmatmul.mubr.f32.gmra.mxu1 %v510_v47  ;;  %v524_v47 = vmax.f32 %v492_v39, 0.0 }
  0x59   : > { %770 = vmatprep.mubr.f32.mxu0 %v513_v51  ;;  %931 = vmatprep.mubr.f32.mxu1 %v513_v51  ;;  %v527_v51 = vmax.f32 %v495_v42, 0.0 }
  0x5c   : > { %771 = vmatmul.mubr.f32.gmra.mxu0 %v512_v56  ;;  %932 = vmatmul.mubr.f32.gmra.mxu1 %v512_v56  ;;  %v526_v56 = vmax.f32 %v494_v48, 0.0 }
  0x5d   : > { %776 = vmatprep.mubr.f32.mxu0 %v515_v60  ;;  %937 = vmatprep.mubr.f32.mxu1 %v515_v60  ;;  %v529_v60 = vmax.f32 %v497_v52, 0.0 }
  0x60   : > { %777 = vmatmul.mubr.f32.gmra.mxu0 %v514_v2  ;;  %938 = vmatmul.mubr.f32.gmra.mxu1 %v514_v2  ;;  %v528_v2 = vmax.f32 %v496_v58, 0.0 }
  0x61   : > { %782 = vmatprep.mubr.f32.mxu0 %v517_v5  ;;  %943 = vmatprep.mubr.f32.mxu1 %v517_v5  ;;  %v531_v5 = vmax.f32 %v499_v61, 0.0 }
  0x64   : > { %783 = vmatmul.mubr.f32.gmra.mxu0 %v516_v10  ;;  %944 = vmatmul.mubr.f32.gmra.mxu1 %v516_v10  ;;  %v530_v10 = vmax.f32 %v498_v3, 0.0 }
  0x65   : > { %788 = vmatprep.mubr.f32.mxu0 %v519_v13  ;;  %949 = vmatprep.mubr.f32.mxu1 %v519_v13  ;;  %v533_v13 = vmax.f32 %v501_v6, 0.0 }
  0x68   : > { %789 = vmatmul.mubr.f32.gmra.mxu0 %v518_v19  ;;  %950 = vmatmul.mubr.f32.gmra.mxu1 %v518_v19  ;;  %v502_v19 = vadd.f32 %v2308_v63, %v458_v12 }
  0x69   : > { %794 = vmatprep.mubr.f32.mxu0 %v521_v22  ;;  %955 = vmatprep.mubr.f32.mxu1 %v521_v22  ;;  %v505_v22 = vadd.f32 %v2292_v57, %v461_v16  ;;  %v666_v57 = vld [vmem:[%s2718_s4] sm:$0xf] }
  0x6a   : > { %v534_v24 = vmax.f32 %v502_v19, 0.0  ;;  %v2450_v29 = vrot.slane %v666_v57, %v2241_v38  ;;  %v2452_v30 = vrot.slane %v666_v57, %v678_v50  ;;  %v2457_v35 = vrot.slane %v666_v57, %v682_v27 }
  0x6b   : > { %v537_v44 = vmax.f32 %v505_v22, 0.0 }
  0x6c   : > { %795 = vmatmul.mubr.f32.gmra.mxu0 %v520_v28  ;;  %956 = vmatmul.mubr.f32.gmra.mxu1 %v520_v28  ;;  %v1821_v28 = vmov 1966171168  }
  0x6d   : > { %800 = vmatprep.mubr.f32.mxu0 %v523_v31  ;;  %961 = vmatprep.mubr.f32.mxu1 %v523_v31  ;;  %v1101_v63 = vunpack.c.l.s4 %v1821_v28  ;;  %v2455_v31 = vrot.slane %v666_v57, %v2218_v32 }
  0x6f   : > { %v1102_v39 = vunpack.c.0.s8 %v1101_v63 }
  0x70   : > { %801 = vmatmul.mubr.f32.gmra.mxu0 %v522_v37  ;;  %962 = vmatmul.mubr.f32.gmra.mxu1 %v522_v37 }
  0x71   : > { %806 = vmatprep.mubr.f32.mxu0 %v525_v41  ;;  %967 = vmatprep.mubr.f32.mxu1 %v525_v41  ;;  %v2470_v49 = vsub.s32 %v1102_v39, %v2190_v23 }
  0x74   : > { %807 = vmatmul.mubr.f32.gmra.mxu0 %v524_v47  ;;  %968 = vmatmul.mubr.f32.gmra.mxu1 %v524_v47 }
  0x75   : > { %812 = vmatprep.mubr.f32.mxu0 %v527_v51  ;;  %973 = vmatprep.mubr.f32.mxu1 %v527_v51 }
  0x78   : > { %813 = vmatmul.mubr.f32.gmra.mxu0 %v526_v56  ;;  %974 = vmatmul.mubr.f32.gmra.mxu1 %v526_v56 }
  0x79   : > { %818 = vmatprep.mubr.f32.mxu0 %v529_v60  ;;  %979 = vmatprep.mubr.f32.mxu1 %v529_v60 }
  0x7c   : > { %819 = vmatmul.mubr.f32.gmra.mxu0 %v528_v2  ;;  %980 = vmatmul.mubr.f32.gmra.mxu1 %v528_v2 }
  0x7d   : > { %824 = vmatprep.mubr.f32.mxu0 %v531_v5  ;;  %985 = vmatprep.mubr.f32.mxu1 %v531_v5 }
  0x80   : > { %825 = vmatmul.mubr.f32.gmra.mxu0 %v530_v10  ;;  %986 = vmatmul.mubr.f32.gmra.mxu1 %v530_v10 }
  0x81   : > { %830 = vmatprep.mubr.f32.mxu0 %v533_v13  ;;  %991 = vmatprep.mubr.f32.mxu1 %v533_v13 }
  0x84   : > { %831 = vmatmul.mubr.f32.gmra.mxu0 %v532_v18  ;;  %992 = vmatmul.mubr.f32.gmra.mxu1 %v532_v18 }
  0x85   : > { %836 = vmatprep.mubr.f32.mxu0 %v535_v21  ;;  %997 = vmatprep.mubr.f32.mxu1 %v535_v21 }
  0x88   : > { %837 = vmatmul.mubr.f32.gmra.mxu0 %v534_v24  ;;  %998 = vmatmul.mubr.f32.gmra.mxu1 %v534_v24 }
  0x89   : > { %842 = vmatprep.mubr.f32.mxu0 %v537_v44  ;;  %1003 = vmatprep.mubr.f32.mxu1 %v537_v44 }
  0x8c   : > { %843 = vmatmul.mubr.f32.gmra.mxu0 %v536_v26  ;;  %1004 = vmatmul.mubr.f32.gmra.mxu1 %v536_v26 }
 0x110   : > { %v754_v33 = vpop.f32.mrf.mxu0  ;;  %v915_v34 = vpop.f32.mrf.mxu1 }
 0x111   : > { %v755_v40 = vadd.f32 %v754_v33, %v2450_v29  ;;  %v916_v41 = vadd.f32 %v915_v34, %v2452_v30 }
 0x112   : > { %v756_v36 = vpop.f32.mrf.mxu0  ;;  %v917_v37 = vpop.f32.mrf.mxu1 }
 0x113   : > { %v2462_v42 = vadd.f32 %v756_v36, %v2455_v31  ;;  %v2465_v38 = vadd.f32 %v917_v37, %v2457_v35  ;;  %v1326_v51 = vmul.f32 %v755_v40, %v755_v40  ;;  %v1328_v52 = vmul.f32 %v916_v41, %v916_v41 }
 0x114   : > { %v760_v43 = vpop.f32.mrf.mxu0  ;;  %v921_v32 = vpop.f32.mrf.mxu1 }
 0x115   : > { %v761_v45 = vadd.f32 %v760_v43, %v2450_v29  ;;  %v922_v46 = vadd.f32 %v921_v32, %v2452_v30  ;;  %v1327_v53 = vmul.f32 %v2462_v42, %v2462_v42  ;;  %v1329_v55 = vmul.f32 %v2465_v38, %v2465_v38 }
 0x116   : > { %v762_v47 = vpop.f32.mrf.mxu0  ;;  %v923_v48 = vpop.f32.mrf.mxu1 }
 0x117   : > { %v1330_v54 = vmul.f32 %v761_v45, %v761_v45  ;;  %v1010_v56 = vmax.f32 %v755_v40, %v761_v45  ;;  %v1128_v58 = vmin.f32 %v755_v40, %v761_v45  ;;  %v1332_v59 = vmul.f32 %v922_v46, %v922_v46 }
 0x118   : > { %v766_v60 = vpop.f32.mrf.mxu0  ;;  %v927_v61 = vpop.f32.mrf.mxu1  ;;  %v1242_v62 = vadd.f32 %v761_v45, %v755_v40  ;;  %v763_v0 = vadd.f32 %v762_v47, %v2455_v31  ;;  %v924_v23 = vadd.f32 %v923_v48, %v2457_v35  ;;  %v1052_v3 = vmax.f32 %v916_v41, %v922_v46 }
 0x119   : > { %v767_v1 = vadd.f32 %v766_v60, %v2450_v29  ;;  %v1390_v2 = vadd.f32 %v1330_v54, %v1326_v51  ;;  %v1170_v4 = vmin.f32 %v916_v41, %v922_v46  ;;  %v1284_v5 = vadd.f32 %v922_v46, %v916_v41 }
 0x11a   : > { %v768_v6 = vpop.f32.mrf.mxu0  ;;  %v929_v7 = vpop.f32.mrf.mxu1  ;;  %v1432_v8 = vadd.f32 %v1332_v59, %v1328_v52  ;;  %v1031_v9 = vmax.f32 %v2462_v42, %v763_v0  ;;  %v1331_v10 = vmul.f32 %v763_v0, %v763_v0  ;;  %v928_v11 = vadd.f32 %v927_v61, %v2452_v30 }
 0x11b   : > { %v1149_v12 = vmin.f32 %v2462_v42, %v763_v0  ;;  %v1263_v13 = vadd.f32 %v763_v0, %v2462_v42  ;;  %v1073_v15 = vmax.f32 %v2465_v38, %v924_v23  ;;  %v1333_v16 = vmul.f32 %v924_v23, %v924_v23 }
 0x11c   : > { %v772_v17 = vpop.f32.mrf.mxu0  ;;  %v933_v18 = vpop.f32.mrf.mxu1  ;;  %v1411_v19 = vadd.f32 %v1331_v10, %v1327_v53  ;;  %v1191_v20 = vmin.f32 %v2465_v38, %v924_v23  ;;  %v1305_v21 = vadd.f32 %v924_v23, %v2465_v38  ;;  %v2486_v22 = vmax.f32 %v1010_v56, %v767_v1 }
 0x11d   : > { %v1453_v24 = vadd.f32 %v1333_v16, %v1329_v55  ;;  %v2488_v25 = vmin.f32 %v1128_v58, %v767_v1  ;;  %v1243_v44 = vadd.f32 %v1242_v62, %v767_v1  ;;  %v1334_v26 = vmul.f32 %v767_v1, %v767_v1 }
 0x11e   : > { %v774_v50 = vpop.f32.mrf.mxu0  ;;  %v935_v57 = vpop.f32.mrf.mxu1  ;;  %v2490_v27 = vmax.f32 %v1052_v3, %v928_v11  ;;  %v1336_v28 = vmul.f32 %v928_v11, %v928_v11  ;;  %v769_v63 = vadd.f32 %v768_v6, %v2455_v31  ;;  %v930_v33 = vadd.f32 %v929_v7, %v2457_v35 }
 0x11f   : > { %v1391_v34 = vadd.f32 %v1390_v2, %v1334_v26  ;;  %v1171_v36 = vmin.f32 %v1170_v4, %v928_v11  ;;  %v1285_v37 = vadd.f32 %v1284_v5, %v928_v11  ;;  %v773_v39 = vadd.f32 %v772_v17, %v2450_v29 }
 0x120   : > { %v778_v40 = vpop.f32.mrf.mxu0  ;;  %v939_v41 = vpop.f32.mrf.mxu1  ;;  %v1433_v42 = vadd.f32 %v1432_v8, %v1336_v28  ;;  %v1032_v38 = vmax.f32 %v1031_v9, %v769_v63  ;;  %v934_v43 = vadd.f32 %v933_v18, %v2452_v30  ;;  %v775_v32 = vadd.f32 %v774_v50, %v2455_v31 }
 0x121   : > { %v1150_v45 = vmin.f32 %v1149_v12, %v769_v63  ;;  %v1264_v46 = vadd.f32 %v1263_v13, %v769_v63  ;;  %v1335_v47 = vmul.f32 %v769_v63, %v769_v63  ;;  %v1074_v48 = vmax.f32 %v1073_v15, %v930_v33 }
 0x122   : > { %v780_v51 = vpop.f32.mrf.mxu0  ;;  %v941_v52 = vpop.f32.mrf.mxu1  ;;  %v1192_v53 = vmin.f32 %v1191_v20, %v930_v33  ;;  %v1306_v54 = vadd.f32 %v1305_v21, %v930_v33  ;;  %v1337_v55 = vmul.f32 %v930_v33, %v930_v33  ;;  %v1012_v56 = vmax.f32 %v2486_v22, %v773_v39 }
 0x123   : > { %v1412_v58 = vadd.f32 %v1411_v19, %v1335_v47  ;;  %v1130_v59 = vmin.f32 %v2488_v25, %v773_v39  ;;  %v1244_v60 = vadd.f32 %v1243_v44, %v773_v39  ;;  %v1338_v61 = vmul.f32 %v773_v39, %v773_v39 }
 0x124   : > { %v784_v62 = vpop.f32.mrf.mxu0  ;;  %v945_v0 = vpop.f32.mrf.mxu1  ;;  %v1454_v23 = vadd.f32 %v1453_v24, %v1337_v55  ;;  %v1054_v1 = vmax.f32 %v2490_v27, %v934_v43  ;;  %v1172_v2 = vmin.f32 %v1171_v36, %v934_v43  ;;  %v1340_v3 = vmul.f32 %v934_v43, %v934_v43 }
 0x125   : > { %v1392_v4 = vadd.f32 %v1391_v34, %v1338_v61  ;;  %v1286_v5 = vadd.f32 %v1285_v37, %v934_v43  ;;  %v1033_v6 = vmax.f32 %v1032_v38, %v775_v32  ;;  %v1339_v7 = vmul.f32 %v775_v32, %v775_v32 }
 0x126   : > { %v786_v8 = vpop.f32.mrf.mxu0  ;;  %v947_v9 = vpop.f32.mrf.mxu1  ;;  %v1151_v10 = vmin.f32 %v1150_v45, %v775_v32  ;;  %v936_v11 = vadd.f32 %v935_v57, %v2457_v35  ;;  %v779_v12 = vadd.f32 %v778_v40, %v2450_v29  ;;  %v940_v13 = vadd.f32 %v939_v41, %v2452_v30 }
 0x127   : > { %v1434_v15 = vadd.f32 %v1433_v42, %v1340_v3  ;;  %v1265_v16 = vadd.f32 %v1264_v46, %v775_v32  ;;  %v1413_v17 = vadd.f32 %v1412_v58, %v1339_v7  ;;  %v781_v18 = vadd.f32 %v780_v51, %v2455_v31 }
 0x128   : > { %v790_v19 = vpop.f32.mrf.mxu0  ;;  %v951_v20 = vpop.f32.mrf.mxu1  ;;  %v1075_v21 = vmax.f32 %v1074_v48, %v936_v11  ;;  %v1341_v22 = vmul.f32 %v936_v11, %v936_v11  ;;  %v942_v24 = vadd.f32 %v941_v52, %v2457_v35  ;;  %v2506_v25 = vadd.f32 %v784_v62, %v2450_v29 }
 0x129   : > { %v1193_v44 = vmin.f32 %v1192_v53, %v936_v11  ;;  %v1307_v26 = vadd.f32 %v1306_v54, %v936_v11  ;;  %v1013_v50 = vmax.f32 %v1012_v56, %v779_v12  ;;  %v1342_v57 = vmul.f32 %v779_v12, %v779_v12 }
 0x12a   : > { %v792_v27 = vpop.f32.mrf.mxu0  ;;  %v2508_v28 = vpop.f32.mrf.mxu1  ;;  %v1455_v63 = vadd.f32 %v1454_v23, %v1341_v22  ;;  %v1131_v33 = vmin.f32 %v1130_v59, %v779_v12  ;;  %v1245_v34 = vadd.f32 %v1244_v60, %v779_v12  ;;  %v1055_v36 = vmax.f32 %v1054_v1, %v940_v13 }
 0x12b   : > { %v1393_v37 = vadd.f32 %v1392_v4, %v1342_v57  ;;  %v1173_v39 = vmin.f32 %v1172_v2, %v940_v13  ;;  %v1287_v40 = vadd.f32 %v1286_v5, %v940_v13  ;;  %v1344_v41 = vmul.f32 %v940_v13, %v940_v13 }
 0x12c   : > { %v796_v42 = vpop.f32.mrf.mxu0  ;;  %v957_v38 = vpop.f32.mrf.mxu1  ;;  %v1034_v43 = vmax.f32 %v1033_v6, %v781_v18  ;;  %v1152_v32 = vmin.f32 %v1151_v10, %v781_v18  ;;  %v1266_v45 = vadd.f32 %v1265_v16, %v781_v18  ;;  %v1343_v46 = vmul.f32 %v781_v18, %v781_v18 }
 0x12d   : > { %v1435_v47 = vadd.f32 %v1434_v15, %v1344_v41  ;;  %v2510_v48 = vmax.f32 %v1075_v21, %v942_v24  ;;  %v2512_v51 = vmin.f32 %v1193_v44, %v942_v24  ;;  %v1345_v52 = vmul.f32 %v942_v24, %v942_v24 }
 0x12e   : > { %v798_v53 = vpop.f32.mrf.mxu0  ;;  %v959_v54 = vpop.f32.mrf.mxu1  ;;  %v1414_v55 = vadd.f32 %v1413_v17, %v1343_v46  ;;  %v1308_v56 = vadd.f32 %v1307_v26, %v942_v24  ;;  %v1014_v58 = vmax.f32 %v1013_v50, %v2506_v25  ;;  %v1346_v59 = vmul.f32 %v2506_v25, %v2506_v25 }
 0x12f   : > { %v1132_v60 = vmin.f32 %v1131_v33, %v2506_v25  ;;  %v946_v61 = vadd.f32 %v945_v0, %v2452_v30  ;;  %v787_v62 = vadd.f32 %v786_v8, %v2455_v31  ;;  %v948_v23 = vadd.f32 %v947_v9, %v2457_v35 }
 0x130   : > { %v802_v1 = vpop.f32.mrf.mxu0  ;;  %v2521_v2 = vpop.f32.mrf.mxu1  ;;  %v1456_v3 = vadd.f32 %v1455_v63, %v1345_v52  ;;  %v1246_v4 = vadd.f32 %v1245_v34, %v2506_v25  ;;  %v1394_v5 = vadd.f32 %v1393_v37, %v1346_v59  ;;  %v791_v6 = vadd.f32 %v790_v19, %v2450_v29 }
 0x131   : > { %v1056_v7 = vmax.f32 %v1055_v36, %v946_v61  ;;  %v1348_v10 = vmul.f32 %v946_v61, %v946_v61  ;;  %v952_v11 = vadd.f32 %v951_v20, %v2452_v30  ;;  %v793_v12 = vadd.f32 %v792_v27, %v2455_v31 }
 0x132   : > { %v2527_v0 = vpop.f32.mrf.mxu0  ;;  %v2529_v8 = vpop.f32.mrf.mxu1  ;;  %v1174_v9 = vmin.f32 %v1173_v39, %v946_v61  ;;  %v1288_v13 = vadd.f32 %v1287_v40, %v946_v61  ;;  %v1035_v15 = vmax.f32 %v1034_v43, %v787_v62  ;;  %v1347_v16 = vmul.f32 %v787_v62, %v787_v62 }
 0x133   : > { %v1436_v17 = vadd.f32 %v1435_v47, %v1348_v10  ;;  %v1153_v18 = vmin.f32 %v1152_v32, %v787_v62  ;;  %v1267_v21 = vadd.f32 %v1266_v45, %v787_v62  ;;  %v1077_v22 = vmax.f32 %v2510_v48, %v948_v23 }
 0x134   : > { %v2532_v19 = vpop.f32.mrf.mxu0  ;;  %v1415_v24 = vadd.f32 %v1414_v55, %v1347_v16  ;;  %v1195_v20 = vmin.f32 %v2512_v51, %v948_v23  ;;  %v1309_v25 = vadd.f32 %v1308_v56, %v948_v23  ;;  %v1349_v44 = vmul.f32 %v948_v23, %v948_v23  ;;  %v2535_v26 = vpop.f32.mrf.mxu1 }
 0x135   : > { %v1015_v50 = vmax.f32 %v1014_v58, %v791_v6  ;;  %v1133_v57 = vmin.f32 %v1132_v60, %v791_v6  ;;  %v1247_v27 = vadd.f32 %v1246_v4, %v791_v6  ;;  %v1350_v63 = vmul.f32 %v791_v6, %v791_v6 }
 0x136   : > { %v810_v33 = vpop.f32.mrf.mxu0  ;;  %v1457_v34 = vadd.f32 %v1456_v3, %v1349_v44  ;;  %v1057_v36 = vmax.f32 %v1056_v7, %v952_v11  ;;  %v1175_v37 = vmin.f32 %v1174_v9, %v952_v11  ;;  %v1352_v39 = vmul.f32 %v952_v11, %v952_v11  ;;  %v2541_v51 = vpop.f32.mrf.mxu1 }
 0x137   : > { %v1395_v40 = vadd.f32 %v1394_v5, %v1350_v63  ;;  %v1289_v41 = vadd.f32 %v1288_v13, %v952_v11  ;;  %v1036_v43 = vmax.f32 %v1035_v15, %v793_v12  ;;  %v1351_v32 = vmul.f32 %v793_v12, %v793_v12 }
 0x138   : > { %v1154_v45 = vmin.f32 %v1153_v18, %v793_v12  ;;  %v954_v46 = vadd.f32 %v2508_v28, %v2457_v35  ;;  %v797_v47 = vadd.f32 %v796_v42, %v2450_v29  ;;  %v958_v48 = vadd.f32 %v957_v38, %v2452_v30  ;;  %v2543_v52 = vpop.f32.mrf.mxu0  ;;  %v2548_v10 = vpop.f32.mrf.mxu1 }
 0x139   : > { %v1437_v55 = vadd.f32 %v1436_v17, %v1352_v39  ;;  %v1268_v56 = vadd.f32 %v1267_v21, %v793_v12  ;;  %v1416_v58 = vadd.f32 %v1415_v24, %v1351_v32  ;;  %v799_v59 = vadd.f32 %v798_v53, %v2455_v31 }
 0x13a   : > { %v1078_v60 = vmax.f32 %v1077_v22, %v954_v46  ;;  %v1353_v61 = vmul.f32 %v954_v46, %v954_v46  ;;  %v960_v62 = vadd.f32 %v959_v54, %v2457_v35  ;;  %v803_v23 = vadd.f32 %v802_v1, %v2450_v29  ;;  %v2550_v11 = vpop.f32.mrf.mxu0 }
 0x13b   : > { %v1196_v28 = vmin.f32 %v1195_v20, %v954_v46  ;;  %v1310_v3 = vadd.f32 %v1309_v25, %v954_v46  ;;  %v1016_v42 = vmax.f32 %v1015_v50, %v797_v47  ;;  %v1354_v4 = vmul.f32 %v797_v47, %v797_v47  ;;  %v977_v50 = vpop.f32.mrf.mxu1 }
 0x13c   : > { %v1458_v38 = vadd.f32 %v1457_v34, %v1353_v61  ;;  %v1134_v5 = vmin.f32 %v1133_v57, %v797_v47  ;;  %v1248_v6 = vadd.f32 %v1247_v27, %v797_v47  ;;  %v1058_v7 = vmax.f32 %v1057_v36, %v958_v48  ;;  %v820_v57 = vpop.f32.mrf.mxu0 }
 0x13d   : > { %v1396_v12 = vadd.f32 %v1395_v40, %v1354_v4  ;;  %v1176_v53 = vmin.f32 %v1175_v37, %v958_v48  ;;  %v1290_v9 = vadd.f32 %v1289_v41, %v958_v48  ;;  %v1356_v13 = vmul.f32 %v958_v48, %v958_v48 }
 0x13e   : > { %v1037_v15 = vmax.f32 %v1036_v43, %v799_v59  ;;  %v1155_v54 = vmin.f32 %v1154_v45, %v799_v59  ;;  %v1269_v16 = vadd.f32 %v1268_v56, %v799_v59  ;;  %v1355_v1 = vmul.f32 %v799_v59, %v799_v59 }
 0x13f   : > { %v1438_v17 = vadd.f32 %v1437_v55, %v1356_v13  ;;  %v1079_v18 = vmax.f32 %v1078_v60, %v960_v62  ;;  %v1197_v21 = vmin.f32 %v1196_v28, %v960_v62  ;;  %v1357_v22 = vmul.f32 %v960_v62, %v960_v62  ;;  %v2563_v55 = vpop.f32.mrf.mxu1 }
 0x140   : > { %v1417_v24 = vadd.f32 %v1416_v58, %v1355_v1  ;;  %v1311_v20 = vadd.f32 %v1310_v3, %v960_v62  ;;  %v1017_v25 = vmax.f32 %v1016_v42, %v803_v23  ;;  %v1358_v44 = vmul.f32 %v803_v23, %v803_v23 }
 0x141   : > { %v1135_v27 = vmin.f32 %v1134_v5, %v803_v23  ;;  %v964_v63 = vadd.f32 %v2521_v2, %v2452_v30  ;;  %v805_v34 = vadd.f32 %v2527_v0, %v2455_v31  ;;  %v966_v36 = vadd.f32 %v2529_v8, %v2457_v35  ;;  %v2565_v8 = vpop.f32.mrf.mxu0 }
 0x142   : > { %v1459_v37 = vadd.f32 %v1458_v38, %v1357_v22  ;;  %v1249_v39 = vadd.f32 %v1248_v6, %v803_v23  ;;  %v1397_v40 = vadd.f32 %v1396_v12, %v1358_v44  ;;  %v809_v41 = vadd.f32 %v2532_v19, %v2450_v29  ;;  %v983_v6 = vpop.f32.mrf.mxu1 }
 0x143   : > { %v1059_v43 = vmax.f32 %v1058_v7, %v964_v63  ;;  %v1360_v32 = vmul.f32 %v964_v63, %v964_v63  ;;  %v970_v45 = vadd.f32 %v2535_v26, %v2452_v30  ;;  %v811_v46 = vadd.f32 %v810_v33, %v2455_v31  ;;  %v826_v7 = vpop.f32.mrf.mxu0 }
 0x144   : > { %v1177_v2 = vmin.f32 %v1176_v53, %v964_v63  ;;  %v1291_v47 = vadd.f32 %v1290_v9, %v964_v63  ;;  %v1038_v48 = vmax.f32 %v1037_v15, %v805_v34  ;;  %v1359_v0 = vmul.f32 %v805_v34, %v805_v34 }
 0x145   : > { %v1439_v56 = vadd.f32 %v1438_v17, %v1360_v32  ;;  %v1156_v58 = vmin.f32 %v1155_v54, %v805_v34  ;;  %v1270_v59 = vadd.f32 %v1269_v16, %v805_v34  ;;  %v1080_v60 = vmax.f32 %v1079_v18, %v966_v36 }
 0x146   : > { %v1418_v19 = vadd.f32 %v1417_v24, %v1359_v0  ;;  %v1198_v61 = vmin.f32 %v1197_v21, %v966_v36  ;;  %v1312_v62 = vadd.f32 %v1311_v20, %v966_v36  ;;  %v1361_v23 = vmul.f32 %v966_v36, %v966_v36 }
 0x147   : > { %v1018_v28 = vmax.f32 %v1017_v25, %v809_v41  ;;  %v1136_v26 = vmin.f32 %v1135_v27, %v809_v41  ;;  %v1250_v3 = vadd.f32 %v1249_v39, %v809_v41  ;;  %v1362_v33 = vmul.f32 %v809_v41, %v809_v41  ;;  %v987_v27 = vpop.f32.mrf.mxu1 }
 0x148   : > { %v1460_v42 = vadd.f32 %v1459_v37, %v1361_v23  ;;  %v1060_v4 = vmax.f32 %v1059_v43, %v970_v45  ;;  %v1178_v38 = vmin.f32 %v1177_v2, %v970_v45  ;;  %v1364_v5 = vmul.f32 %v970_v45, %v970_v45 }
 0x149   : > { %v1398_v12 = vadd.f32 %v1397_v40, %v1362_v33  ;;  %v1292_v53 = vadd.f32 %v1291_v47, %v970_v45  ;;  %v1039_v9 = vmax.f32 %v1038_v48, %v811_v46  ;;  %v1363_v13 = vmul.f32 %v811_v46, %v811_v46  ;;  %v989_v47 = vpop.f32.mrf.mxu1 }
 0x14a   : > { %v1157_v15 = vmin.f32 %v1156_v58, %v811_v46  ;;  %v972_v54 = vadd.f32 %v2541_v51, %v2457_v35  ;;  %v815_v16 = vadd.f32 %v2543_v52, %v2450_v29  ;;  %v976_v1 = vadd.f32 %v2548_v10, %v2452_v30  ;;  %v828_v51 = vpop.f32.mrf.mxu0 }
 0x14b   : > { %v1440_v17 = vadd.f32 %v1439_v56, %v1364_v5  ;;  %v1271_v18 = vadd.f32 %v1270_v59, %v811_v46  ;;  %v1419_v21 = vadd.f32 %v1418_v19, %v1363_v13  ;;  %v817_v22 = vadd.f32 %v2550_v11, %v2455_v31 }
 0x14c   : > { %v1081_v24 = vmax.f32 %v1080_v60, %v972_v54  ;;  %v1365_v20 = vmul.f32 %v972_v54, %v972_v54  ;;  %v978_v25 = vadd.f32 %v977_v50, %v2457_v35  ;;  %v821_v44 = vadd.f32 %v820_v57, %v2450_v29  ;;  %v832_v57 = vpop.f32.mrf.mxu0 }
 0x14d   : > { %v1199_v63 = vmin.f32 %v1198_v61, %v972_v54  ;;  %v1313_v34 = vadd.f32 %v1312_v62, %v972_v54  ;;  %v1019_v52 = vmax.f32 %v1018_v28, %v815_v16  ;;  %v1366_v36 = vmul.f32 %v815_v16, %v815_v16 }
 0x14e   : > { %v1461_v37 = vadd.f32 %v1460_v42, %v1365_v20  ;;  %v1137_v10 = vmin.f32 %v1136_v26, %v815_v16  ;;  %v1251_v39 = vadd.f32 %v1250_v3, %v815_v16  ;;  %v1061_v40 = vmax.f32 %v1060_v4, %v976_v1  ;;  %v834_v5 = vpop.f32.mrf.mxu0 }
 0x14f   : > { %v1399_v41 = vadd.f32 %v1398_v12, %v1366_v36  ;;  %v1179_v43 = vmin.f32 %v1178_v38, %v976_v1  ;;  %v1293_v32 = vadd.f32 %v1292_v53, %v976_v1  ;;  %v1368_v11 = vmul.f32 %v976_v1, %v976_v1  ;;  %v993_v38 = vpop.f32.mrf.mxu1 }
 0x150   : > { %v1040_v45 = vmax.f32 %v1039_v9, %v817_v22  ;;  %v1158_v46 = vmin.f32 %v1157_v15, %v817_v22  ;;  %v1272_v2 = vadd.f32 %v1271_v18, %v817_v22  ;;  %v1367_v50 = vmul.f32 %v817_v22, %v817_v22  ;;  %v838_v20 = vpop.f32.mrf.mxu0 }
 0x151   : > { %v1441_v48 = vadd.f32 %v1440_v17, %v1368_v11  ;;  %v1082_v0 = vmax.f32 %v1081_v24, %v978_v25  ;;  %v1200_v56 = vmin.f32 %v1199_v63, %v978_v25  ;;  %v1369_v58 = vmul.f32 %v978_v25, %v978_v25  ;;  %v995_v24 = vpop.f32.mrf.mxu1 }
 0x152   : > { %v1420_v59 = vadd.f32 %v1419_v21, %v1367_v50  ;;  %v1314_v60 = vadd.f32 %v1313_v34, %v978_v25  ;;  %v1020_v19 = vmax.f32 %v1019_v52, %v821_v44  ;;  %v1370_v61 = vmul.f32 %v821_v44, %v821_v44 }
 0x153   : > { %v1138_v62 = vmin.f32 %v1137_v10, %v821_v44  ;;  %v982_v23 = vadd.f32 %v2563_v55, %v2452_v30  ;;  %v823_v28 = vadd.f32 %v2565_v8, %v2455_v31  ;;  %v984_v26 = vadd.f32 %v983_v6, %v2457_v35 }
 0x154   : > { %v1462_v3 = vadd.f32 %v1461_v37, %v1369_v58  ;;  %v1252_v33 = vadd.f32 %v1251_v39, %v821_v44  ;;  %v1400_v42 = vadd.f32 %v1399_v41, %v1370_v61  ;;  %v827_v4 = vadd.f32 %v826_v7, %v2450_v29 }
 0x155   : > { %v1062_v12 = vmax.f32 %v1061_v40, %v982_v23  ;;  %v1372_v53 = vmul.f32 %v982_v23, %v982_v23  ;;  %v988_v9 = vadd.f32 %v987_v27, %v2452_v30  ;;  %v829_v13 = vadd.f32 %v828_v51, %v2455_v31 }
 0x156   : > { %v1180_v15 = vmin.f32 %v1179_v43, %v982_v23  ;;  %v1294_v55 = vadd.f32 %v1293_v32, %v982_v23  ;;  %v1041_v54 = vmax.f32 %v1040_v45, %v823_v28  ;;  %v1371_v16 = vmul.f32 %v823_v28, %v823_v28  ;;  %v999_v45 = vpop.f32.mrf.mxu1 }
 0x157   : > { %v1442_v8 = vadd.f32 %v1441_v48, %v1372_v53  ;;  %v1159_v1 = vmin.f32 %v1158_v46, %v823_v28  ;;  %v1273_v6 = vadd.f32 %v1272_v2, %v823_v28  ;;  %v1083_v17 = vmax.f32 %v1082_v0, %v984_v26  ;;  %v840_v46 = vpop.f32.mrf.mxu0 }
 0x158   : > { %v1421_v18 = vadd.f32 %v1420_v59, %v1371_v16  ;;  %v1201_v21 = vmin.f32 %v1200_v56, %v984_v26  ;;  %v1315_v22 = vadd.f32 %v1314_v60, %v984_v26  ;;  %v1373_v7 = vmul.f32 %v984_v26, %v984_v26 }
 0x159   : > { %v1021_v25 = vmax.f32 %v1020_v19, %v827_v4  ;;  %v1139_v44 = vmin.f32 %v1138_v62, %v827_v4  ;;  %v1253_v63 = vadd.f32 %v1252_v33, %v827_v4  ;;  %v1374_v27 = vmul.f32 %v827_v4, %v827_v4  ;;  %v844_v33 = vpop.f32.mrf.mxu0 }
 0x15a   : > { %v1463_v34 = vadd.f32 %v1462_v3, %v1373_v7  ;;  %v1063_v51 = vmax.f32 %v1062_v12, %v988_v9  ;;  %v1181_v52 = vmin.f32 %v1180_v15, %v988_v9  ;;  %v1376_v36 = vmul.f32 %v988_v9, %v988_v9  ;;  %v1001_v3 = vpop.f32.mrf.mxu1 }
 0x15b   : > { %v1401_v37 = vadd.f32 %v1400_v42, %v1374_v27  ;;  %v1295_v10 = vadd.f32 %v1294_v55, %v988_v9  ;;  %v1042_v39 = vmax.f32 %v1041_v54, %v829_v13  ;;  %v1375_v40 = vmul.f32 %v829_v13, %v829_v13 }
 0x15c   : > { %v1160_v41 = vmin.f32 %v1159_v1, %v829_v13  ;;  %v990_v43 = vadd.f32 %v989_v47, %v2457_v35  ;;  %v833_v32 = vadd.f32 %v832_v57, %v2450_v29  ;;  %v994_v11 = vadd.f32 %v993_v38, %v2452_v30 }
 0x15d   : > { %v1443_v2 = vadd.f32 %v1442_v8, %v1376_v36  ;;  %v1274_v50 = vadd.f32 %v1273_v6, %v829_v13  ;;  %v1422_v48 = vadd.f32 %v1421_v18, %v1375_v40  ;;  %v835_v0 = vadd.f32 %v834_v5, %v2455_v31  ;;  %v1005_v18 = vpop.f32.mrf.mxu1 }
 0x15e   : > { %v1084_v56 = vmax.f32 %v1083_v17, %v990_v43  ;;  %v1377_v58 = vmul.f32 %v990_v43, %v990_v43  ;;  %v996_v59 = vadd.f32 %v995_v24, %v2457_v35  ;;  %v839_v60 = vadd.f32 %v838_v20, %v2450_v29 }
 0x15f   : > { %v1202_v19 = vmin.f32 %v1201_v21, %v990_v43  ;;  %v1316_v61 = vadd.f32 %v1315_v22, %v990_v43  ;;  %v1022_v47 = vmax.f32 %v1021_v25, %v833_v32  ;;  %v1378_v62 = vmul.f32 %v833_v32, %v833_v32  ;;  %v846_v21 = vpop.f32.mrf.mxu0 }
 0x160   : > { %v1464_v57 = vadd.f32 %v1463_v34, %v1377_v58  ;;  %v1140_v23 = vmin.f32 %v1139_v44, %v833_v32  ;;  %v1254_v28 = vadd.f32 %v1253_v63, %v833_v32  ;;  %v1064_v26 = vmax.f32 %v1063_v51, %v994_v11 }
 0x161   : > { %v1402_v42 = vadd.f32 %v1401_v37, %v1378_v62  ;;  %v1182_v4 = vmin.f32 %v1181_v52, %v994_v11  ;;  %v1296_v38 = vadd.f32 %v1295_v10, %v994_v11  ;;  %v1380_v5 = vmul.f32 %v994_v11, %v994_v11 }
 0x162   : > { %v1043_v12 = vmax.f32 %v1042_v39, %v835_v0  ;;  %v1161_v53 = vmin.f32 %v1160_v41, %v835_v0  ;;  %v1275_v9 = vadd.f32 %v1274_v50, %v835_v0  ;;  %v1379_v13 = vmul.f32 %v835_v0, %v835_v0 }
 0x163   : > { %v1444_v15 = vadd.f32 %v1443_v2, %v1380_v5  ;;  %v1085_v55 = vmax.f32 %v1084_v56, %v996_v59  ;;  %v1203_v54 = vmin.f32 %v1202_v19, %v996_v59  ;;  %v1381_v16 = vmul.f32 %v996_v59, %v996_v59 }
 0x164   : > { %v2591_v8 = vadd.f32 %v1422_v48, %v1379_v13  ;;  %v1317_v1 = vadd.f32 %v1316_v61, %v996_v59  ;;  %v1023_v6 = vmax.f32 %v1022_v47, %v839_v60  ;;  %v1382_v17 = vmul.f32 %v839_v60, %v839_v60 }
 0x165   : > { %v1141_v22 = vmin.f32 %v1140_v23, %v839_v60  ;;  %v1000_v7 = vadd.f32 %v999_v45, %v2452_v30  ;;  %v841_v24 = vadd.f32 %v840_v46, %v2455_v31  ;;  %v1002_v20 = vadd.f32 %v1001_v3, %v2457_v35 }
 0x166   : > { %v1465_v25 = vadd.f32 %v1464_v57, %v1381_v16  ;;  %v1255_v44 = vadd.f32 %v1254_v28, %v839_v60  ;;  %v1403_v63 = vadd.f32 %v1402_v42, %v1382_v17  ;;  %v845_v27 = vadd.f32 %v844_v33, %v2450_v29 }
 0x167   : > { %v1065_v34 = vmax.f32 %v1064_v26, %v1000_v7  ;;  %v1384_v51 = vmul.f32 %v1000_v7, %v1000_v7  ;;  %v1006_v52 = vadd.f32 %v1005_v18, %v2452_v30  ;;  %v2599_v36 = vadd.f32 %v846_v21, %v2455_v31 }
 0x168   : > { %v1183_v37 = vmin.f32 %v1182_v4, %v1000_v7  ;;  %v1297_v10 = vadd.f32 %v1296_v38, %v1000_v7  ;;  %v2601_v39 = vmax.f32 %v1043_v12, %v841_v24  ;;  %v2603_v40 = vmin.f32 %v1161_v53, %v841_v24 }
 0x169   : > { %v1445_v41 = vadd.f32 %v1444_v15, %v1384_v51  ;;  %v2605_v43 = vadd.f32 %v1275_v9, %v841_v24  ;;  %v1383_v32 = vmul.f32 %v841_v24, %v841_v24  ;;  %v2607_v11 = vmax.f32 %v1085_v55, %v1002_v20 }
 0x16a   : > { %v2609_v29 = vmin.f32 %v1203_v54, %v1002_v20  ;;  %v2611_v45 = vadd.f32 %v1317_v1, %v1002_v20  ;;  %v1024_v30 = vmax.f32 %v1023_v6, %v845_v27  ;;  %v1142_v46 = vmin.f32 %v1141_v22, %v845_v27 }
 0x16b   : > { %v1256_v31 = vadd.f32 %v1255_v44, %v845_v27  ;;  %v1386_v2 = vmul.f32 %v845_v27, %v845_v27  ;;  %v1066_v50 = vmax.f32 %v1065_v34, %v1006_v52  ;;  %v1184_v48 = vmin.f32 %v1183_v37, %v1006_v52 }
 0x16c   : > { %v1385_v0 = vmul.f32 %v1002_v20, %v1002_v20  ;;  %v1025_v56 = vrot.slane %v1024_v30, 4  ;;  %v1143_v58 = vrot.slane %v1142_v46, 4  ;;  %v1298_v59 = vadd.f32 %v1297_v10, %v1006_v52 }
 0x16d   : > { %v1257_v60 = vrot.slane %v1256_v31, 4  ;;  %v1404_v19 = vadd.f32 %v1403_v63, %v1386_v2  ;;  %v1067_v61 = vrot.slane %v1066_v50, 4  ;;  %v1185_v47 = vrot.slane %v1184_v48, 4 }
 0x16e   : > { %v1026_v62 = vmax.f32 %v1024_v30, %v1025_v56  ;;  %v1144_v57 = vmin.f32 %v1142_v46, %v1143_v58  ;;  %v1299_v23 = vrot.slane %v1298_v59, 4  ;;  %v1388_v28 = vmul.f32 %v1006_v52, %v1006_v52 }
 0x16f   : > { %v1258_v26 = vadd.f32 %v1257_v60, %v1256_v31  ;;  %v1405_v3 = vrot.slane %v1404_v19, 4  ;;  %v1068_v33 = vmax.f32 %v1066_v50, %v1067_v61  ;;  %v1186_v42 = vmin.f32 %v1184_v48, %v1185_v47 }
 0x170   : > { %v1027_v4 = vrot.slane %v1026_v62, 2  ;;  %v1145_v38 = vrot.slane %v1144_v57, 2  ;;  %v1300_v5 = vadd.f32 %v1299_v23, %v1298_v59  ;;  %v1446_v12 = vadd.f32 %v1445_v41, %v1388_v28  ;;  %v1007_v41 = vpop.f32.mrf.mxu1 }
 0x171   : > { %v1259_v53 = vrot.slane %v1258_v26, 2  ;;  %v1406_v9 = vadd.f32 %v1405_v3, %v1404_v19  ;;  %v1069_v13 = vrot.slane %v1068_v33, 2  ;;  %v1187_v15 = vrot.slane %v1186_v42, 2 }
 0x172   : > { %v1028_v55 = vmax.f32 %v1026_v62, %v1027_v4  ;;  %v1146_v54 = vmin.f32 %v1144_v57, %v1145_v38  ;;  %v1301_v16 = vrot.slane %v1300_v5, 2  ;;  %v1447_v1 = vrot.slane %v1446_v12, 4 }
 0x173   : > { %v1260_v6 = vadd.f32 %v1259_v53, %v1258_v26  ;;  %v1407_v17 = vrot.slane %v1406_v9, 2  ;;  %v1070_v18 = vmax.f32 %v1068_v33, %v1069_v13  ;;  %v2613_v21 = vmin.f32 %v1186_v42, %v1187_v15 }
 0x174   : > { %v1029_v22 = vrot.slane %v1028_v55, 1  ;;  %v1147_v7 = vrot.slane %v1146_v54, 1  ;;  %v1302_v24 = vadd.f32 %v1301_v16, %v1300_v5  ;;  %v1448_v20 = vadd.f32 %v1447_v1, %v1446_v12 }
 0x175   : > { %v1424_v44 = vadd.f32 %v2591_v8, %v1383_v32  ;;  %v1466_v63 = vadd.f32 %v1465_v25, %v1385_v0  ;;  %v1261_v27 = vrot.slane %v1260_v6, 1  ;;  %v1408_v34 = vadd.f32 %v1407_v17, %v1406_v9 }
 0x176   : > { %v1071_v51 = vrot.slane %v1070_v18, 1  ;;  %v1189_v52 = vrot.slane %v2613_v21, 1  ;;  %v1303_v37 = vrot.slane %v1302_v24, 1  ;;  %v1449_v10 = vrot.slane %v1448_v20, 2 }
 0x177   : > { %v2617_v30 = vmax.f32 %v1028_v55, %v1029_v22  ;;  %v2619_v46 = vmin.f32 %v1146_v54, %v1147_v7  ;;  %v2621_v31 = vadd.f32 %v1261_v27, %v1260_v6  ;;  %v1409_v2 = vrot.slane %v1408_v34, 1 }
 0x178   : > { %v2623_v50 = vadd.f32 %v1303_v37, %v1302_v24  ;;  %v1450_v48 = vadd.f32 %v1449_v10, %v1448_v20  ;;  %v1045_v8 = vmax.f32 %v2601_v39, %v2599_v36  ;;  %v1163_v25 = vmin.f32 %v2603_v40, %v2599_v36 }
 0x179   : > { %v2629_v32 = vadd.f32 %v1409_v2, %v1408_v34  ;;  %v1277_v0 = vadd.f32 %v2605_v43, %v2599_v36  ;;  %v1387_v56 = vmul.f32 %v2599_v36, %v2599_v36  ;;  %v1008_v58 = vadd.f32 %v1007_v41, %v2457_v35 }
 0x17a   : > { %v2636_v59 = vmax.f32 %v1070_v18, %v1071_v51  ;;  %v1451_v60 = vrot.slane %v1450_v48, 1  ;;  %v1046_v19 = vrot.slane %v1045_v8, 4  ;;  %v1164_v61 = vrot.slane %v1163_v25, 4 }
 0x17b   : > { %v1278_v47 = vrot.slane %v1277_v0, 4  ;;  %v1425_v39 = vadd.f32 %v1424_v44, %v1387_v56  ;;  %v1087_v62 = vmax.f32 %v2607_v11, %v1008_v58  ;;  %v1205_v40 = vmin.f32 %v2609_v29, %v1008_v58 }
 0x17c   : > { %v2640_v57 = vadd.f32 %v1451_v60, %v1450_v48  ;;  %v1047_v23 = vmax.f32 %v1045_v8, %v1046_v19  ;;  %v1165_v43 = vmin.f32 %v1163_v25, %v1164_v61  ;;  %v1319_v28 = vadd.f32 %v2611_v45, %v1008_v58 }
 0x17d   : > { %v1279_v36 = vadd.f32 %v1278_v47, %v1277_v0  ;;  %v1426_v26 = vrot.slane %v1425_v39, 4  ;;  %v1088_v35 = vrot.slane %v1087_v62, 4  ;;  %v1206_v3 = vrot.slane %v1205_v40, 4 }
 0x17e   : > { %v1048_v33 = vrot.slane %v1047_v23, 2  ;;  %v1166_v42 = vrot.slane %v1165_v43, 2  ;;  %v1320_v4 = vrot.slane %v1319_v28, 4  ;;  %v1389_v38 = vmul.f32 %v1008_v58, %v1008_v58 }
 0x17f   : > { %v1280_v5 = vrot.slane %v1279_v36, 2  ;;  %v1427_v12 = vadd.f32 %v1426_v26, %v1425_v39  ;;  %v1089_v53 = vmax.f32 %v1087_v62, %v1088_v35  ;;  %v1207_v11 = vmin.f32 %v1205_v40, %v1206_v3 }
 0x180   : > { %v1049_v29 = vmax.f32 %v1047_v23, %v1048_v33  ;;  %v1167_v9 = vmin.f32 %v1165_v43, %v1166_v42  ;;  %v1321_v13 = vadd.f32 %v1320_v4, %v1319_v28  ;;  %v1467_v15 = vadd.f32 %v1466_v63, %v1389_v38 }
 0x181   : > { %v1281_v55 = vadd.f32 %v1280_v5, %v1279_v36  ;;  %v1428_v54 = vrot.slane %v1427_v12, 2  ;;  %v1090_v45 = vrot.slane %v1089_v53, 2  ;;  %v1208_v16 = vrot.slane %v1207_v11, 2 }
 0x182   : > { %v1050_v1 = vrot.slane %v1049_v29, 1  ;;  %v1168_v6 = vrot.slane %v1167_v9, 1  ;;  %v1322_v17 = vrot.slane %v1321_v13, 2  ;;  %v1468_v18 = vrot.slane %v1467_v15, 4 }
 0x183   : > { %v1282_v22 = vrot.slane %v1281_v55, 1  ;;  %v1429_v7 = vadd.f32 %v1428_v54, %v1427_v12  ;;  %v1091_v24 = vmax.f32 %v1089_v53, %v1090_v45  ;;  %v1209_v20 = vmin.f32 %v1207_v11, %v1208_v16 }
 0x184   : > { %v1051_v44 = vmax.f32 %v1049_v29, %v1050_v1  ;;  %v1169_v27 = vmin.f32 %v1167_v9, %v1168_v6  ;;  %v1323_v34 = vadd.f32 %v1322_v17, %v1321_v13  ;;  %v1469_v51 = vadd.f32 %v1468_v18, %v1467_v15 }
 0x185   : > { %v1283_v63 = vadd.f32 %v1282_v22, %v1281_v55  ;;  %v1430_v37 = vrot.slane %v1429_v7, 1  ;;  %v1092_v10 = vrot.slane %v1091_v24, 1  ;;  %v1210_v41 = vrot.slane %v1209_v20, 1 }
 0x186   : > { %v1098_v2 = vcombine.low %v2617_v30, %v1051_v44  ;;  %v1216_v48 = vcombine.low %v2619_v46, %v1169_v27  ;;  %v1324_v8 = vrot.slane %v1323_v34, 1  ;;  %v1470_v25 = vrot.slane %v1469_v51, 2 }
 0x187   : > { %v1190_v0 = vmin.f32 %v2613_v21, %v1189_v52  ;;  %v1431_v56 = vadd.f32 %v1430_v37, %v1429_v7  ;;  %v1093_v58 = vmax.f32 %v1091_v24, %v1092_v10  ;;  %v1211_v60 = vmin.f32 %v1209_v20, %v1210_v41 }
 0x188   : > { %v1325_v19 = vadd.f32 %v1324_v8, %v1323_v34  ;;  %v1471_v61 = vadd.f32 %v1470_v25, %v1469_v51  ;;  %v1106_v47 = vrot.slane %v1098_v2, %v2470_v49  ;;  %v1224_v39 = vrot.slane %v1216_v48, %v2470_v49 }
 0x189   : > { %v1099_v30 = vcombine.low %v2636_v59, %v1093_v58  ;;  %v1217_v46 = vcombine.low %v1190_v0, %v1211_v60 }
 0x18a   : > { %v1472_v62 = vrot.slane %v1471_v61, 1 }
 0x18b   : > { %v1113_v40 = vrot.slane %v1099_v30, %v2470_v49  ;;  %v1231_v21 = vrot.slane %v1217_v46, %v2470_v49 }
 0x18c   : > { %v1473_v52 = vadd.f32 %v1472_v62, %v1471_v61 }
 0x18d   : > { %v1114_v23 = vcombine.low %v1106_v47, %v1113_v40  ;;  %v1232_v43 = vcombine.low %v1224_v39, %v1231_v21  ;;  %1477 = sbr.rel (%p1735_p8) target bundleno = 404 (0x194), region = 44 }
 0x18f   : > { %v1121_v28 = vrot.slane %v1114_v23, %v2470_v49  ;;  %v1239_v36 = vrot.slane %v1232_v43, %v2470_v49 }
 0x191   : > { %1127 = vst.msk [vmem:[%s367_s26] sm:$0xf] %vm2664_vm0, %v1121_v28  ;;  %1241 = vst.msk [vmem:[%s375_s12] sm:$0xf] %vm2664_vm0, %v1239_v36 }
 0x192   : > { %v1822_v26 = vmov 0.0  }
 0x193   : > { %1478 = vst.msk [vmem:[%s1949_s15] sm:$0xf] %vm2664_vm0, %v1822_v26  ;;  %1479 = vst.msk [vmem:[%s1954_s18] sm:$0xf] %vm2664_vm0, %v1822_v26 }
 0x194 PF: > { %v1485_v14 = vcombine.low %v2621_v31, %v1283_v63  ;;  %v1486_v35 = vcombine.low %v2623_v50, %v1325_v19  ;;  %v1517_v3 = vcombine.low %v2629_v32, %v1431_v56  ;;  %v1518_v33 = vcombine.low %v2640_v57, %v1473_v52 }
 0x196   : > { %v1493_v42 = vrot.slane %v1485_v14, %v2470_v49  ;;  %v1500_v4 = vrot.slane %v1486_v35, %v2470_v49  ;;  %v1525_v38 = vrot.slane %v1517_v3, %v2470_v49  ;;  %v1532_v5 = vrot.slane %v1518_v33, %v2470_v49 }
 0x198   : > { %v1501_v12 = vcombine.low %v1493_v42, %v1500_v4  ;;  %v1533_v53 = vcombine.low %v1525_v38, %v1532_v5 }
 0x19a   : > { %v1480_v11 = vld [vmem:[%s1949_s15] sm:$0xf]  ;;  %v1508_v29 = vrot.slane %v1501_v12, %v2470_v49  ;;  %v1540_v50 = vrot.slane %v1533_v53, %v2470_v49 }
 0x19b   : > { %v1512_v31 = vld [vmem:[%s1954_s18] sm:$0xf] }
 0x19c   : > { %v1510_v9 = vadd.f32 %v1508_v29, %v1480_v11  ;;  %v1542_v32 = vadd.f32 %v1540_v50, %v1512_v31 }
 0x19e   : > { %1511 = vst.msk [vmem:[%s1949_s15] sm:$0xf] %vm2664_vm0, %v1510_v9  ;;  %1543 = vst.msk [vmem:[%s1954_s18] sm:$0xf] %vm2664_vm0, %v1542_v32 }
 0x19f PF: > { %s19_s9 = sadd.s32 1, %s1819_s9   ;;  %s2726_s27 = smov %s1811_s29 }
 0x1a0   : > { %p16_p9 = scmp.ge.s32.totalorder %s19_s9, 18   ;;  %s2727_s28 = smov %s1815_s30 }
 0x1a1   : > { %s2728_s29 = smov %s2731_s10  ;;  %s2729_s30 = smov %s2735_s11 }
 0x1a2   :  { %18 = sbr.rel (!%p16_p9) target bundleno = 3 (0x3), region = 110 }

// kernel: pointnet_encoder.9
= control target key start
LH: loop header
LB: loop body
LE: loop exit
PB: predicated region body
PF: predicated region fallthrough
CT: control target
= control target key end

     0   :  { %vm608_vm0 = vcmask 1043456   ;;  %s2688_s1 = inlined_call_operand.vmem [shape: f32[512,512], index: 1, kind: input, shape index: {}]   ;;  %s2689_s0 = inlined_call_operand.vmem [shape: f32[4,512], index: 0, kind: input, shape index: {}]   ;;  %s2690_s5 = inlined_call_operand.vmem [shape: f32[512,256], index: 5, kind: input, shape index: {}]   ;;  %s2691_s2 = inlined_call_operand.vmem [shape: f32[1,512], index: 2, kind: input, shape index: {}]   ;;  %s2692_s3 = inlined_call_operand.vmem [shape: f32[1,512], index: 3, kind: input, shape index: {}]   ;;  %s2693_s4 = inlined_call_operand.vmem [shape: f32[1,512], index: 4, kind: input, shape index: {}]   ;;  %s2694_s9 = inlined_call_operand.vmem [shape: f32[256,128], index: 9, kind: input, shape index: {}]   ;;  %s2695_s6 = inlined_call_operand.vmem [shape: f32[1,256], index: 6, kind: input, shape index: {}]   ;;  %s2696_s7 = inlined_call_operand.vmem [shape: f32[1,256], index: 7, kind: input, shape index: {}]   ;;  %s2697_s8 = inlined_call_operand.vmem [shape: f32[1,256], index: 8, kind: input, shape index: {}]   ;;  %s2698_s10 = inlined_call_operand.vmem [shape: f32[1,128], index: 10, kind: input, shape index: {}]   ;;  %s2699_s11 = inlined_call_operand.vmem [shape: f32[4,128], index: 11, kind: output, shape index: {}]  }
   0x1   :  { %v101_v0 = vld [vmem:[%s2688_s1 + $0x1e8] sm:$0xff]  ;;  %v100_v2 = vld [vmem:[%s2688_s1 + $0x1e0] sm:$0xff] }
   0x2   :  { %v229_v1 = vld [vmem:[%s2688_s1 + $0x5e8] sm:$0xff]  ;;  %324 = vmatprep.subr.mxu0 %v101_v0  ;;  %v228_v3 = vld [vmem:[%s2688_s1 + $0x5e0] sm:$0xff] }
   0x3   :  { %395 = vmatprep.subr.mxu1 %v229_v1  ;;  %v97_v4 = vld [vmem:[%s2688_s1 + $0x1c8] sm:$0xff]  ;;  %325 = vmatpush1.msra.mxu0 %v100_v2  ;;  %v96_v6 = vld [vmem:[%s2688_s1 + $0x1c0] sm:$0xff] }
   0x4   :  { %v225_v5 = vld [vmem:[%s2688_s1 + $0x5c8] sm:$0xff]  ;;  %396 = vmatpush1.msra.mxu1 %v228_v3  ;;  %v224_v7 = vld [vmem:[%s2688_s1 + $0x5c0] sm:$0xff]  ;;  %326 = vmatprep.subr.mxu0 %v97_v4 }
   0x5   :  { %v93_v8 = vld [vmem:[%s2688_s1 + $0x1a8] sm:$0xff]  ;;  %397 = vmatprep.subr.mxu1 %v225_v5  ;;  %v92_v10 = vld [vmem:[%s2688_s1 + $0x1a0] sm:$0xff]  ;;  %327 = vmatpush1.msra.mxu0 %v96_v6 }
   0x6   :  { %v221_v9 = vld [vmem:[%s2688_s1 + $0x5a8] sm:$0xff]  ;;  %v220_v11 = vld [vmem:[%s2688_s1 + $0x5a0] sm:$0xff]  ;;  %398 = vmatpush1.msra.mxu1 %v224_v7  ;;  %328 = vmatprep.subr.mxu0 %v93_v8 }
   0x7   :  { %v89_v12 = vld [vmem:[%s2688_s1 + $0x188] sm:$0xff]  ;;  %399 = vmatprep.subr.mxu1 %v221_v9  ;;  %v88_v14 = vld [vmem:[%s2688_s1 + $0x180] sm:$0xff]  ;;  %329 = vmatpush1.msra.mxu0 %v92_v10 }
   0x8   :  { %v217_v13 = vld [vmem:[%s2688_s1 + $0x588] sm:$0xff]  ;;  %v216_v15 = vld [vmem:[%s2688_s1 + $0x580] sm:$0xff]  ;;  %400 = vmatpush1.msra.mxu1 %v220_v11  ;;  %330 = vmatprep.subr.mxu0 %v89_v12 }
   0x9   :  { %v85_v16 = vld [vmem:[%s2688_s1 + $0x168] sm:$0xff]  ;;  %401 = vmatprep.subr.mxu1 %v217_v13  ;;  %v84_v18 = vld [vmem:[%s2688_s1 + $0x160] sm:$0xff]  ;;  %331 = vmatpush1.msra.mxu0 %v88_v14 }
   0xa   :  { %v213_v17 = vld [vmem:[%s2688_s1 + $0x568] sm:$0xff]  ;;  %v212_v19 = vld [vmem:[%s2688_s1 + $0x560] sm:$0xff]  ;;  %402 = vmatpush1.msra.mxu1 %v216_v15  ;;  %332 = vmatprep.subr.mxu0 %v85_v16 }
   0xb   :  { %v81_v20 = vld [vmem:[%s2688_s1 + $0x148] sm:$0xff]  ;;  %403 = vmatprep.subr.mxu1 %v213_v17  ;;  %v80_v22 = vld [vmem:[%s2688_s1 + $0x140] sm:$0xff]  ;;  %333 = vmatpush1.msra.mxu0 %v84_v18 }
   0xc   :  { %v209_v21 = vld [vmem:[%s2688_s1 + $0x548] sm:$0xff]  ;;  %v208_v23 = vld [vmem:[%s2688_s1 + $0x540] sm:$0xff]  ;;  %404 = vmatpush1.msra.mxu1 %v212_v19  ;;  %334 = vmatprep.subr.mxu0 %v81_v20 }
   0xd   :  { %v77_v24 = vld [vmem:[%s2688_s1 + $0x128] sm:$0xff]  ;;  %405 = vmatprep.subr.mxu1 %v209_v21  ;;  %v76_v26 = vld [vmem:[%s2688_s1 + $0x120] sm:$0xff]  ;;  %335 = vmatpush1.msra.mxu0 %v80_v22 }
   0xe   :  { %v205_v25 = vld [vmem:[%s2688_s1 + $0x528] sm:$0xff]  ;;  %v204_v27 = vld [vmem:[%s2688_s1 + $0x520] sm:$0xff]  ;;  %406 = vmatpush1.msra.mxu1 %v208_v23  ;;  %336 = vmatprep.subr.mxu0 %v77_v24 }
   0xf   :  { %v73_v28 = vld [vmem:[%s2688_s1 + $0x108] sm:$0xff]  ;;  %407 = vmatprep.subr.mxu1 %v205_v25  ;;  %v72_v30 = vld [vmem:[%s2688_s1 + $0x100] sm:$0xff]  ;;  %337 = vmatpush1.msra.mxu0 %v76_v26 }
  0x10   :  { %v201_v29 = vld [vmem:[%s2688_s1 + $0x508] sm:$0xff]  ;;  %v200_v31 = vld [vmem:[%s2688_s1 + $0x500] sm:$0xff]  ;;  %408 = vmatpush1.msra.mxu1 %v204_v27  ;;  %338 = vmatprep.subr.mxu0 %v73_v28 }
  0x11   :  { %v69_v32 = vld [vmem:[%s2688_s1 + $0xe8] sm:$0xff]  ;;  %409 = vmatprep.subr.mxu1 %v201_v29  ;;  %v68_v34 = vld [vmem:[%s2688_s1 + $0xe0] sm:$0xff]  ;;  %339 = vmatpush1.msra.mxu0 %v72_v30 }
  0x12   :  { %v197_v33 = vld [vmem:[%s2688_s1 + $0x4e8] sm:$0xff]  ;;  %v196_v35 = vld [vmem:[%s2688_s1 + $0x4e0] sm:$0xff]  ;;  %410 = vmatpush1.msra.mxu1 %v200_v31  ;;  %340 = vmatprep.subr.mxu0 %v69_v32 }
  0x13   :  { %v65_v36 = vld [vmem:[%s2688_s1 + $0xc8] sm:$0xff]  ;;  %411 = vmatprep.subr.mxu1 %v197_v33  ;;  %v64_v38 = vld [vmem:[%s2688_s1 + $0xc0] sm:$0xff]  ;;  %341 = vmatpush1.msra.mxu0 %v68_v34 }
  0x14   :  { %v193_v37 = vld [vmem:[%s2688_s1 + $0x4c8] sm:$0xff]  ;;  %v192_v39 = vld [vmem:[%s2688_s1 + $0x4c0] sm:$0xff]  ;;  %412 = vmatpush1.msra.mxu1 %v196_v35  ;;  %342 = vmatprep.subr.mxu0 %v65_v36 }
  0x15   :  { %v61_v40 = vld [vmem:[%s2688_s1 + $0xa8] sm:$0xff]  ;;  %413 = vmatprep.subr.mxu1 %v193_v37  ;;  %v60_v42 = vld [vmem:[%s2688_s1 + $0xa0] sm:$0xff]  ;;  %343 = vmatpush1.msra.mxu0 %v64_v38 }
  0x16   :  { %v189_v41 = vld [vmem:[%s2688_s1 + $0x4a8] sm:$0xff]  ;;  %v188_v43 = vld [vmem:[%s2688_s1 + $0x4a0] sm:$0xff]  ;;  %414 = vmatpush1.msra.mxu1 %v192_v39  ;;  %344 = vmatprep.subr.mxu0 %v61_v40 }
  0x17   :  { %v57_v44 = vld [vmem:[%s2688_s1 + $0x88] sm:$0xff]  ;;  %415 = vmatprep.subr.mxu1 %v189_v41  ;;  %v56_v46 = vld [vmem:[%s2688_s1 + $0x80] sm:$0xff]  ;;  %345 = vmatpush1.msra.mxu0 %v60_v42 }
  0x18   :  { %v185_v45 = vld [vmem:[%s2688_s1 + $0x488] sm:$0xff]  ;;  %v184_v47 = vld [vmem:[%s2688_s1 + $0x480] sm:$0xff]  ;;  %416 = vmatpush1.msra.mxu1 %v188_v43  ;;  %346 = vmatprep.subr.mxu0 %v57_v44 }
  0x19   :  { %v53_v48 = vld [vmem:[%s2688_s1 + $0x68] sm:$0xff]  ;;  %417 = vmatprep.subr.mxu1 %v185_v45  ;;  %v52_v50 = vld [vmem:[%s2688_s1 + $0x60] sm:$0xff]  ;;  %347 = vmatpush1.msra.mxu0 %v56_v46 }
  0x1a   :  { %v181_v49 = vld [vmem:[%s2688_s1 + $0x468] sm:$0xff]  ;;  %v180_v51 = vld [vmem:[%s2688_s1 + $0x460] sm:$0xff]  ;;  %418 = vmatpush1.msra.mxu1 %v184_v47  ;;  %348 = vmatprep.subr.mxu0 %v53_v48 }
  0x1b   :  { %v49_v52 = vld [vmem:[%s2688_s1 + $0x48] sm:$0xff]  ;;  %419 = vmatprep.subr.mxu1 %v181_v49  ;;  %v48_v54 = vld [vmem:[%s2688_s1 + $0x40] sm:$0xff]  ;;  %349 = vmatpush1.msra.mxu0 %v52_v50 }
  0x1c   :  { %v177_v53 = vld [vmem:[%s2688_s1 + $0x448] sm:$0xff]  ;;  %v176_v55 = vld [vmem:[%s2688_s1 + $0x440] sm:$0xff]  ;;  %420 = vmatpush1.msra.mxu1 %v180_v51  ;;  %350 = vmatprep.subr.mxu0 %v49_v52 }
  0x1d   :  { %v45_v56 = vld [vmem:[%s2688_s1 + $0x28] sm:$0xff]  ;;  %421 = vmatprep.subr.mxu1 %v177_v53  ;;  %v44_v58 = vld [vmem:[%s2688_s1 + $0x20] sm:$0xff]  ;;  %351 = vmatpush1.msra.mxu0 %v48_v54 }
  0x1e   :  { %v173_v57 = vld [vmem:[%s2688_s1 + $0x428] sm:$0xff]  ;;  %v172_v59 = vld [vmem:[%s2688_s1 + $0x420] sm:$0xff]  ;;  %422 = vmatpush1.msra.mxu1 %v176_v55  ;;  %352 = vmatprep.subr.mxu0 %v45_v56 }
  0x1f   :  { %v41_v60 = vld [vmem:[%s2688_s1 + $0x8] sm:$0xff]  ;;  %423 = vmatprep.subr.mxu1 %v173_v57  ;;  %v40_v62 = vld [vmem:[%s2688_s1] sm:$0xff]  ;;  %353 = vmatpush1.msra.mxu0 %v44_v58 }
  0x20   :  { %v169_v61 = vld [vmem:[%s2688_s1 + $0x408] sm:$0xff]  ;;  %v168_v63 = vld [vmem:[%s2688_s1 + $0x400] sm:$0xff]  ;;  %424 = vmatpush1.msra.mxu1 %v172_v59  ;;  %354 = vmatprep.subr.mxu0 %v41_v60 }
  0x21   :  { %v165_v0 = vld [vmem:[%s2688_s1 + $0x3e8] sm:$0xff]  ;;  %425 = vmatprep.subr.mxu1 %v169_v61  ;;  %v164_v2 = vld [vmem:[%s2688_s1 + $0x3e0] sm:$0xff]  ;;  %355 = vmatpush1.msra.mxu0 %v40_v62 }
  0x22   :  { %v293_v1 = vld [vmem:[%s2688_s1 + $0x7e8] sm:$0xff]  ;;  %v292_v3 = vld [vmem:[%s2688_s1 + $0x7e0] sm:$0xff]  ;;  %426 = vmatpush1.msra.mxu1 %v168_v63  ;;  %356 = vmatprep.subr.mxu0 %v165_v0 }
  0x23   :  { %v161_v4 = vld [vmem:[%s2688_s1 + $0x3c8] sm:$0xff]  ;;  %427 = vmatprep.subr.mxu1 %v293_v1  ;;  %v160_v6 = vld [vmem:[%s2688_s1 + $0x3c0] sm:$0xff]  ;;  %357 = vmatpush2.msra.mxu0 %v164_v2 }
  0x24   :  { %v289_v5 = vld [vmem:[%s2688_s1 + $0x7c8] sm:$0xff]  ;;  %v288_v7 = vld [vmem:[%s2688_s1 + $0x7c0] sm:$0xff]  ;;  %428 = vmatpush2.msra.mxu1 %v292_v3  ;;  %358 = vmatprep.subr.mxu0 %v161_v4  ;;  %v103_v4 = vld [vmem:[%s2688_s1 + $0x1f8] sm:$0xff] }
  0x25   :  { %v157_v8 = vld [vmem:[%s2688_s1 + $0x3a8] sm:$0xff]  ;;  %429 = vmatprep.subr.mxu1 %v289_v5  ;;  %v156_v10 = vld [vmem:[%s2688_s1 + $0x3a0] sm:$0xff]  ;;  %359 = vmatpush2.msra.mxu0 %v160_v6  ;;  %v231_v5 = vld [vmem:[%s2688_s1 + $0x5f8] sm:$0xff] }
  0x26   :  { %v285_v9 = vld [vmem:[%s2688_s1 + $0x7a8] sm:$0xff]  ;;  %v284_v11 = vld [vmem:[%s2688_s1 + $0x7a0] sm:$0xff]  ;;  %430 = vmatpush2.msra.mxu1 %v288_v7  ;;  %360 = vmatprep.subr.mxu0 %v157_v8  ;;  %v102_v6 = vld [vmem:[%s2688_s1 + $0x1f0] sm:$0xff] }
  0x27   :  { %v153_v12 = vld [vmem:[%s2688_s1 + $0x388] sm:$0xff]  ;;  %431 = vmatprep.subr.mxu1 %v285_v9  ;;  %v152_v14 = vld [vmem:[%s2688_s1 + $0x380] sm:$0xff]  ;;  %361 = vmatpush2.msra.mxu0 %v156_v10  ;;  %v230_v7 = vld [vmem:[%s2688_s1 + $0x5f0] sm:$0xff] }
  0x28   :  { %v281_v13 = vld [vmem:[%s2688_s1 + $0x788] sm:$0xff]  ;;  %v280_v15 = vld [vmem:[%s2688_s1 + $0x780] sm:$0xff]  ;;  %432 = vmatpush2.msra.mxu1 %v284_v11  ;;  %362 = vmatprep.subr.mxu0 %v153_v12  ;;  %v99_v8 = vld [vmem:[%s2688_s1 + $0x1d8] sm:$0xff] }
  0x29   :  { %v149_v16 = vld [vmem:[%s2688_s1 + $0x368] sm:$0xff]  ;;  %433 = vmatprep.subr.mxu1 %v281_v13  ;;  %v148_v18 = vld [vmem:[%s2688_s1 + $0x360] sm:$0xff]  ;;  %363 = vmatpush2.msra.mxu0 %v152_v14  ;;  %v227_v9 = vld [vmem:[%s2688_s1 + $0x5d8] sm:$0xff] }
  0x2a   :  { %v277_v17 = vld [vmem:[%s2688_s1 + $0x768] sm:$0xff]  ;;  %v276_v19 = vld [vmem:[%s2688_s1 + $0x760] sm:$0xff]  ;;  %434 = vmatpush2.msra.mxu1 %v280_v15  ;;  %364 = vmatprep.subr.mxu0 %v149_v16  ;;  %v98_v10 = vld [vmem:[%s2688_s1 + $0x1d0] sm:$0xff] }
  0x2b   :  { %v145_v20 = vld [vmem:[%s2688_s1 + $0x348] sm:$0xff]  ;;  %435 = vmatprep.subr.mxu1 %v277_v17  ;;  %v144_v22 = vld [vmem:[%s2688_s1 + $0x340] sm:$0xff]  ;;  %365 = vmatpush2.msra.mxu0 %v148_v18  ;;  %v226_v11 = vld [vmem:[%s2688_s1 + $0x5d0] sm:$0xff] }
  0x2c   :  { %v273_v21 = vld [vmem:[%s2688_s1 + $0x748] sm:$0xff]  ;;  %v272_v23 = vld [vmem:[%s2688_s1 + $0x740] sm:$0xff]  ;;  %436 = vmatpush2.msra.mxu1 %v276_v19  ;;  %366 = vmatprep.subr.mxu0 %v145_v20  ;;  %v95_v12 = vld [vmem:[%s2688_s1 + $0x1b8] sm:$0xff] }
  0x2d   :  { %v141_v24 = vld [vmem:[%s2688_s1 + $0x328] sm:$0xff]  ;;  %437 = vmatprep.subr.mxu1 %v273_v21  ;;  %v140_v26 = vld [vmem:[%s2688_s1 + $0x320] sm:$0xff]  ;;  %367 = vmatpush2.msra.mxu0 %v144_v22  ;;  %v223_v13 = vld [vmem:[%s2688_s1 + $0x5b8] sm:$0xff] }
  0x2e   :  { %v269_v25 = vld [vmem:[%s2688_s1 + $0x728] sm:$0xff]  ;;  %v268_v27 = vld [vmem:[%s2688_s1 + $0x720] sm:$0xff]  ;;  %438 = vmatpush2.msra.mxu1 %v272_v23  ;;  %368 = vmatprep.subr.mxu0 %v141_v24  ;;  %v94_v14 = vld [vmem:[%s2688_s1 + $0x1b0] sm:$0xff] }
  0x2f   :  { %v137_v28 = vld [vmem:[%s2688_s1 + $0x308] sm:$0xff]  ;;  %439 = vmatprep.subr.mxu1 %v269_v25  ;;  %v136_v30 = vld [vmem:[%s2688_s1 + $0x300] sm:$0xff]  ;;  %369 = vmatpush2.msra.mxu0 %v140_v26  ;;  %v222_v15 = vld [vmem:[%s2688_s1 + $0x5b0] sm:$0xff] }
  0x30   :  { %v265_v29 = vld [vmem:[%s2688_s1 + $0x708] sm:$0xff]  ;;  %v264_v31 = vld [vmem:[%s2688_s1 + $0x700] sm:$0xff]  ;;  %440 = vmatpush2.msra.mxu1 %v268_v27  ;;  %370 = vmatprep.subr.mxu0 %v137_v28  ;;  %v91_v16 = vld [vmem:[%s2688_s1 + $0x198] sm:$0xff] }
  0x31   :  { %v133_v32 = vld [vmem:[%s2688_s1 + $0x2e8] sm:$0xff]  ;;  %441 = vmatprep.subr.mxu1 %v265_v29  ;;  %v132_v34 = vld [vmem:[%s2688_s1 + $0x2e0] sm:$0xff]  ;;  %371 = vmatpush2.msra.mxu0 %v136_v30  ;;  %v219_v17 = vld [vmem:[%s2688_s1 + $0x598] sm:$0xff] }
  0x32   :  { %v261_v33 = vld [vmem:[%s2688_s1 + $0x6e8] sm:$0xff]  ;;  %v260_v35 = vld [vmem:[%s2688_s1 + $0x6e0] sm:$0xff]  ;;  %442 = vmatpush2.msra.mxu1 %v264_v31  ;;  %372 = vmatprep.subr.mxu0 %v133_v32  ;;  %v90_v18 = vld [vmem:[%s2688_s1 + $0x190] sm:$0xff] }
  0x33   :  { %v129_v36 = vld [vmem:[%s2688_s1 + $0x2c8] sm:$0xff]  ;;  %443 = vmatprep.subr.mxu1 %v261_v33  ;;  %v128_v38 = vld [vmem:[%s2688_s1 + $0x2c0] sm:$0xff]  ;;  %373 = vmatpush2.msra.mxu0 %v132_v34  ;;  %v218_v19 = vld [vmem:[%s2688_s1 + $0x590] sm:$0xff] }
  0x34   :  { %v257_v37 = vld [vmem:[%s2688_s1 + $0x6c8] sm:$0xff]  ;;  %v256_v39 = vld [vmem:[%s2688_s1 + $0x6c0] sm:$0xff]  ;;  %444 = vmatpush2.msra.mxu1 %v260_v35  ;;  %374 = vmatprep.subr.mxu0 %v129_v36  ;;  %v87_v20 = vld [vmem:[%s2688_s1 + $0x178] sm:$0xff] }
  0x35   :  { %v125_v40 = vld [vmem:[%s2688_s1 + $0x2a8] sm:$0xff]  ;;  %445 = vmatprep.subr.mxu1 %v257_v37  ;;  %v124_v42 = vld [vmem:[%s2688_s1 + $0x2a0] sm:$0xff]  ;;  %375 = vmatpush2.msra.mxu0 %v128_v38  ;;  %v215_v21 = vld [vmem:[%s2688_s1 + $0x578] sm:$0xff] }
  0x36   :  { %v253_v41 = vld [vmem:[%s2688_s1 + $0x6a8] sm:$0xff]  ;;  %v252_v43 = vld [vmem:[%s2688_s1 + $0x6a0] sm:$0xff]  ;;  %446 = vmatpush2.msra.mxu1 %v256_v39  ;;  %376 = vmatprep.subr.mxu0 %v125_v40  ;;  %v86_v22 = vld [vmem:[%s2688_s1 + $0x170] sm:$0xff] }
  0x37   :  { %v121_v44 = vld [vmem:[%s2688_s1 + $0x288] sm:$0xff]  ;;  %447 = vmatprep.subr.mxu1 %v253_v41  ;;  %v120_v46 = vld [vmem:[%s2688_s1 + $0x280] sm:$0xff]  ;;  %377 = vmatpush2.msra.mxu0 %v124_v42  ;;  %v214_v23 = vld [vmem:[%s2688_s1 + $0x570] sm:$0xff] }
  0x38   :  { %v249_v45 = vld [vmem:[%s2688_s1 + $0x688] sm:$0xff]  ;;  %v248_v47 = vld [vmem:[%s2688_s1 + $0x680] sm:$0xff]  ;;  %448 = vmatpush2.msra.mxu1 %v252_v43  ;;  %378 = vmatprep.subr.mxu0 %v121_v44  ;;  %v83_v24 = vld [vmem:[%s2688_s1 + $0x158] sm:$0xff] }
  0x39   :  { %v117_v48 = vld [vmem:[%s2688_s1 + $0x268] sm:$0xff]  ;;  %449 = vmatprep.subr.mxu1 %v249_v45  ;;  %v116_v50 = vld [vmem:[%s2688_s1 + $0x260] sm:$0xff]  ;;  %379 = vmatpush2.msra.mxu0 %v120_v46  ;;  %v211_v25 = vld [vmem:[%s2688_s1 + $0x558] sm:$0xff] }
  0x3a   :  { %v245_v49 = vld [vmem:[%s2688_s1 + $0x668] sm:$0xff]  ;;  %v244_v51 = vld [vmem:[%s2688_s1 + $0x660] sm:$0xff]  ;;  %450 = vmatpush2.msra.mxu1 %v248_v47  ;;  %380 = vmatprep.subr.mxu0 %v117_v48  ;;  %v82_v26 = vld [vmem:[%s2688_s1 + $0x150] sm:$0xff] }
  0x3b   :  { %v113_v52 = vld [vmem:[%s2688_s1 + $0x248] sm:$0xff]  ;;  %451 = vmatprep.subr.mxu1 %v245_v49  ;;  %v112_v54 = vld [vmem:[%s2688_s1 + $0x240] sm:$0xff]  ;;  %381 = vmatpush2.msra.mxu0 %v116_v50  ;;  %v210_v27 = vld [vmem:[%s2688_s1 + $0x550] sm:$0xff] }
  0x3c   :  { %v241_v53 = vld [vmem:[%s2688_s1 + $0x648] sm:$0xff]  ;;  %v240_v55 = vld [vmem:[%s2688_s1 + $0x640] sm:$0xff]  ;;  %452 = vmatpush2.msra.mxu1 %v244_v51  ;;  %382 = vmatprep.subr.mxu0 %v113_v52  ;;  %v79_v28 = vld [vmem:[%s2688_s1 + $0x138] sm:$0xff] }
  0x3d   :  { %v1691_v56 = vld [vmem:[%s2689_s0] sm:$0xff]  ;;  %v109_v57 = vld [vmem:[%s2688_s1 + $0x228] sm:$0xff]  ;;  %453 = vmatprep.subr.mxu1 %v241_v53  ;;  %383 = vmatpush2.msra.mxu0 %v112_v54  ;;  %v207_v29 = vld [vmem:[%s2688_s1 + $0x538] sm:$0xff] }
  0x3e   :  { %v237_v58 = vld [vmem:[%s2688_s1 + $0x628] sm:$0xff]  ;;  %v108_v59 = vld [vmem:[%s2688_s1 + $0x220] sm:$0xff]  ;;  %454 = vmatpush2.msra.mxu1 %v240_v55  ;;  %v1718_v0 = vcombine.high %v1691_v56, %v1691_v56  ;;  %384 = vmatprep.subr.mxu0 %v109_v57  ;;  %v78_v30 = vld [vmem:[%s2688_s1 + $0x130] sm:$0xff] }
  0x3f   :  { %v236_v60 = vld [vmem:[%s2688_s1 + $0x620] sm:$0xff]  ;;  %v1708_v61 = vld [vmem:[%s2689_s0 + $0x8] sm:$0xff]  ;;  %455 = vmatprep.subr.mxu1 %v237_v58  ;;  %385 = vmatpush2.msra.mxu0 %v108_v59  ;;  %v206_v31 = vld [vmem:[%s2688_s1 + $0x530] sm:$0xff] }
  0x40   :  { %v105_v62 = vld [vmem:[%s2688_s1 + $0x208] sm:$0xff]  ;;  %v104_v1 = vld [vmem:[%s2688_s1 + $0x200] sm:$0xff]  ;;  %456 = vmatpush2.msra.mxu1 %v236_v60  ;;  %v1728_v3 = vcombine.high %v1708_v61, %v1708_v61  ;;  %388 = vmatprep.mubr.f32.mxu0 %v1718_v0  ;;  %v75_v32 = vld [vmem:[%s2688_s1 + $0x118] sm:$0xff] }
  0x41   :  { %v233_v63 = vld [vmem:[%s2688_s1 + $0x608] sm:$0xff]  ;;  %v232_v2 = vld [vmem:[%s2688_s1 + $0x600] sm:$0xff]  ;;  %386 = vmatprep.subr.mxu0 %v105_v62  ;;  %v203_v33 = vld [vmem:[%s2688_s1 + $0x518] sm:$0xff] }
  0x42   :  { %457 = vmatprep.subr.mxu1 %v233_v63  ;;  %387 = vmatpush2.msra.mxu0 %v104_v1  ;;  %v74_v34 = vld [vmem:[%s2688_s1 + $0x110] sm:$0xff]  ;;  %v71_v36 = vld [vmem:[%s2688_s1 + $0xf8] sm:$0xff] }
  0x43   :  { %458 = vmatpush2.msra.mxu1 %v232_v2  ;;  %389 = vmatmul.mubr.f32.vlgmr.msra.gmra.mxu0 %v1691_v56  ;;  %v202_v35 = vld [vmem:[%s2688_s1 + $0x510] sm:$0xff]  ;;  %v199_v37 = vld [vmem:[%s2688_s1 + $0x4f8] sm:$0xff] }
  0x44   :  { %459 = vmatprep.mubr.f32.mxu1 %v1728_v3  ;;  %466 = vmatprep.subr.mxu0 %v103_v4  ;;  %v70_v38 = vld [vmem:[%s2688_s1 + $0xf0] sm:$0xff]  ;;  %v67_v40 = vld [vmem:[%s2688_s1 + $0xd8] sm:$0xff] }
  0x45   :  { %537 = vmatprep.subr.mxu1 %v231_v5  ;;  %460 = vmatmul.mubr.f32.vlgmr.msra.gmra.mxu1 %v1708_v61  ;;  %v198_v39 = vld [vmem:[%s2688_s1 + $0x4f0] sm:$0xff]  ;;  %v195_v41 = vld [vmem:[%s2688_s1 + $0x4d8] sm:$0xff] }
  0x46   :  { %467 = vmatpush1.msra.mxu0 %v102_v6  ;;  %538 = vmatpush1.msra.mxu1 %v230_v7  ;;  %v66_v42 = vld [vmem:[%s2688_s1 + $0xd0] sm:$0xff]  ;;  %v63_v44 = vld [vmem:[%s2688_s1 + $0xb8] sm:$0xff] }
  0x47   :  { %468 = vmatprep.subr.mxu0 %v99_v8  ;;  %539 = vmatprep.subr.mxu1 %v227_v9  ;;  %v194_v43 = vld [vmem:[%s2688_s1 + $0x4d0] sm:$0xff]  ;;  %v191_v45 = vld [vmem:[%s2688_s1 + $0x4b8] sm:$0xff] }
  0x48   :  { %469 = vmatpush1.msra.mxu0 %v98_v10  ;;  %540 = vmatpush1.msra.mxu1 %v226_v11  ;;  %v62_v46 = vld [vmem:[%s2688_s1 + $0xb0] sm:$0xff]  ;;  %v59_v48 = vld [vmem:[%s2688_s1 + $0x98] sm:$0xff] }
  0x49   :  { %470 = vmatprep.subr.mxu0 %v95_v12  ;;  %541 = vmatprep.subr.mxu1 %v223_v13  ;;  %v190_v47 = vld [vmem:[%s2688_s1 + $0x4b0] sm:$0xff]  ;;  %v187_v49 = vld [vmem:[%s2688_s1 + $0x498] sm:$0xff] }
  0x4a   :  { %471 = vmatpush1.msra.mxu0 %v94_v14  ;;  %542 = vmatpush1.msra.mxu1 %v222_v15  ;;  %v58_v50 = vld [vmem:[%s2688_s1 + $0x90] sm:$0xff]  ;;  %v55_v52 = vld [vmem:[%s2688_s1 + $0x78] sm:$0xff] }
  0x4b   :  { %472 = vmatprep.subr.mxu0 %v91_v16  ;;  %543 = vmatprep.subr.mxu1 %v219_v17  ;;  %v186_v51 = vld [vmem:[%s2688_s1 + $0x490] sm:$0xff]  ;;  %v183_v53 = vld [vmem:[%s2688_s1 + $0x478] sm:$0xff] }
  0x4c   :  { %473 = vmatpush1.msra.mxu0 %v90_v18  ;;  %544 = vmatpush1.msra.mxu1 %v218_v19  ;;  %v54_v54 = vld [vmem:[%s2688_s1 + $0x70] sm:$0xff]  ;;  %v51_v57 = vld [vmem:[%s2688_s1 + $0x58] sm:$0xff] }
  0x4d   :  { %474 = vmatprep.subr.mxu0 %v87_v20  ;;  %545 = vmatprep.subr.mxu1 %v215_v21  ;;  %v182_v55 = vld [vmem:[%s2688_s1 + $0x470] sm:$0xff]  ;;  %v179_v58 = vld [vmem:[%s2688_s1 + $0x458] sm:$0xff] }
  0x4e   :  { %475 = vmatpush1.msra.mxu0 %v86_v22  ;;  %546 = vmatpush1.msra.mxu1 %v214_v23  ;;  %v50_v59 = vld [vmem:[%s2688_s1 + $0x50] sm:$0xff]  ;;  %v47_v62 = vld [vmem:[%s2688_s1 + $0x38] sm:$0xff] }
  0x4f   :  { %476 = vmatprep.subr.mxu0 %v83_v24  ;;  %547 = vmatprep.subr.mxu1 %v211_v25  ;;  %v178_v60 = vld [vmem:[%s2688_s1 + $0x450] sm:$0xff]  ;;  %v175_v63 = vld [vmem:[%s2688_s1 + $0x438] sm:$0xff] }
  0x50   :  { %477 = vmatpush1.msra.mxu0 %v82_v26  ;;  %548 = vmatpush1.msra.mxu1 %v210_v27  ;;  %v46_v1 = vld [vmem:[%s2688_s1 + $0x30] sm:$0xff]  ;;  %v43_v4 = vld [vmem:[%s2688_s1 + $0x18] sm:$0xff] }
  0x51   :  { %478 = vmatprep.subr.mxu0 %v79_v28  ;;  %549 = vmatprep.subr.mxu1 %v207_v29  ;;  %v174_v2 = vld [vmem:[%s2688_s1 + $0x430] sm:$0xff]  ;;  %v171_v5 = vld [vmem:[%s2688_s1 + $0x418] sm:$0xff] }
  0x52   :  { %479 = vmatpush1.msra.mxu0 %v78_v30  ;;  %550 = vmatpush1.msra.mxu1 %v206_v31  ;;  %v42_v6 = vld [vmem:[%s2688_s1 + $0x10] sm:$0xff]  ;;  %v167_v8 = vld [vmem:[%s2688_s1 + $0x3f8] sm:$0xff] }
  0x53   :  { %480 = vmatprep.subr.mxu0 %v75_v32  ;;  %551 = vmatprep.subr.mxu1 %v203_v33  ;;  %v170_v7 = vld [vmem:[%s2688_s1 + $0x410] sm:$0xff]  ;;  %v295_v9 = vld [vmem:[%s2688_s1 + $0x7f8] sm:$0xff] }
  0x54   :  { %481 = vmatpush1.msra.mxu0 %v74_v34  ;;  %552 = vmatpush1.msra.mxu1 %v202_v35  ;;  %v166_v10 = vld [vmem:[%s2688_s1 + $0x3f0] sm:$0xff]  ;;  %v163_v12 = vld [vmem:[%s2688_s1 + $0x3d8] sm:$0xff] }
  0x55   :  { %482 = vmatprep.subr.mxu0 %v71_v36  ;;  %553 = vmatprep.subr.mxu1 %v199_v37  ;;  %v294_v11 = vld [vmem:[%s2688_s1 + $0x7f0] sm:$0xff]  ;;  %v291_v13 = vld [vmem:[%s2688_s1 + $0x7d8] sm:$0xff] }
  0x56   :  { %483 = vmatpush1.msra.mxu0 %v70_v38  ;;  %554 = vmatpush1.msra.mxu1 %v198_v39  ;;  %v162_v14 = vld [vmem:[%s2688_s1 + $0x3d0] sm:$0xff]  ;;  %v159_v16 = vld [vmem:[%s2688_s1 + $0x3b8] sm:$0xff] }
  0x57   :  { %484 = vmatprep.subr.mxu0 %v67_v40  ;;  %555 = vmatprep.subr.mxu1 %v195_v41  ;;  %v290_v15 = vld [vmem:[%s2688_s1 + $0x7d0] sm:$0xff]  ;;  %v287_v17 = vld [vmem:[%s2688_s1 + $0x7b8] sm:$0xff] }
  0x58   :  { %485 = vmatpush1.msra.mxu0 %v66_v42  ;;  %556 = vmatpush1.msra.mxu1 %v194_v43  ;;  %v158_v18 = vld [vmem:[%s2688_s1 + $0x3b0] sm:$0xff]  ;;  %v155_v20 = vld [vmem:[%s2688_s1 + $0x398] sm:$0xff] }
  0x59   :  { %486 = vmatprep.subr.mxu0 %v63_v44  ;;  %557 = vmatprep.subr.mxu1 %v191_v45  ;;  %v286_v19 = vld [vmem:[%s2688_s1 + $0x7b0] sm:$0xff]  ;;  %v283_v21 = vld [vmem:[%s2688_s1 + $0x798] sm:$0xff] }
  0x5a   :  { %487 = vmatpush1.msra.mxu0 %v62_v46  ;;  %558 = vmatpush1.msra.mxu1 %v190_v47  ;;  %v154_v22 = vld [vmem:[%s2688_s1 + $0x390] sm:$0xff]  ;;  %v151_v24 = vld [vmem:[%s2688_s1 + $0x378] sm:$0xff] }
  0x5b   :  { %488 = vmatprep.subr.mxu0 %v59_v48  ;;  %559 = vmatprep.subr.mxu1 %v187_v49  ;;  %v282_v23 = vld [vmem:[%s2688_s1 + $0x790] sm:$0xff]  ;;  %v279_v25 = vld [vmem:[%s2688_s1 + $0x778] sm:$0xff] }
  0x5c   :  { %489 = vmatpush1.msra.mxu0 %v58_v50  ;;  %560 = vmatpush1.msra.mxu1 %v186_v51  ;;  %v150_v26 = vld [vmem:[%s2688_s1 + $0x370] sm:$0xff]  ;;  %v147_v28 = vld [vmem:[%s2688_s1 + $0x358] sm:$0xff] }
  0x5d   :  { %490 = vmatprep.subr.mxu0 %v55_v52  ;;  %561 = vmatprep.subr.mxu1 %v183_v53  ;;  %v278_v27 = vld [vmem:[%s2688_s1 + $0x770] sm:$0xff]  ;;  %v275_v29 = vld [vmem:[%s2688_s1 + $0x758] sm:$0xff] }
  0x5e   :  { %491 = vmatpush1.msra.mxu0 %v54_v54  ;;  %562 = vmatpush1.msra.mxu1 %v182_v55  ;;  %v146_v30 = vld [vmem:[%s2688_s1 + $0x350] sm:$0xff]  ;;  %v143_v32 = vld [vmem:[%s2688_s1 + $0x338] sm:$0xff] }
  0x5f   :  { %492 = vmatprep.subr.mxu0 %v51_v57  ;;  %563 = vmatprep.subr.mxu1 %v179_v58  ;;  %v274_v31 = vld [vmem:[%s2688_s1 + $0x750] sm:$0xff]  ;;  %v271_v33 = vld [vmem:[%s2688_s1 + $0x738] sm:$0xff] }
  0x60   :  { %493 = vmatpush1.msra.mxu0 %v50_v59  ;;  %564 = vmatpush1.msra.mxu1 %v178_v60  ;;  %v142_v34 = vld [vmem:[%s2688_s1 + $0x330] sm:$0xff]  ;;  %v139_v36 = vld [vmem:[%s2688_s1 + $0x318] sm:$0xff] }
  0x61   :  { %494 = vmatprep.subr.mxu0 %v47_v62  ;;  %565 = vmatprep.subr.mxu1 %v175_v63  ;;  %v270_v35 = vld [vmem:[%s2688_s1 + $0x730] sm:$0xff]  ;;  %v267_v37 = vld [vmem:[%s2688_s1 + $0x718] sm:$0xff] }
  0x62   :  { %495 = vmatpush1.msra.mxu0 %v46_v1  ;;  %566 = vmatpush1.msra.mxu1 %v174_v2  ;;  %v138_v38 = vld [vmem:[%s2688_s1 + $0x310] sm:$0xff]  ;;  %v135_v40 = vld [vmem:[%s2688_s1 + $0x2f8] sm:$0xff] }
  0x63   :  { %496 = vmatprep.subr.mxu0 %v43_v4  ;;  %567 = vmatprep.subr.mxu1 %v171_v5  ;;  %v266_v39 = vld [vmem:[%s2688_s1 + $0x710] sm:$0xff]  ;;  %v263_v41 = vld [vmem:[%s2688_s1 + $0x6f8] sm:$0xff] }
  0x64   :  { %497 = vmatpush1.msra.mxu0 %v42_v6  ;;  %568 = vmatpush1.msra.mxu1 %v170_v7  ;;  %v134_v42 = vld [vmem:[%s2688_s1 + $0x2f0] sm:$0xff]  ;;  %v131_v44 = vld [vmem:[%s2688_s1 + $0x2d8] sm:$0xff] }
  0x65   :  { %498 = vmatprep.subr.mxu0 %v167_v8  ;;  %569 = vmatprep.subr.mxu1 %v295_v9  ;;  %v262_v43 = vld [vmem:[%s2688_s1 + $0x6f0] sm:$0xff]  ;;  %v259_v45 = vld [vmem:[%s2688_s1 + $0x6d8] sm:$0xff] }
  0x66   :  { %499 = vmatpush2.msra.mxu0 %v166_v10  ;;  %570 = vmatpush2.msra.mxu1 %v294_v11  ;;  %v130_v46 = vld [vmem:[%s2688_s1 + $0x2d0] sm:$0xff]  ;;  %v127_v48 = vld [vmem:[%s2688_s1 + $0x2b8] sm:$0xff] }
  0x67   :  { %500 = vmatprep.subr.mxu0 %v163_v12  ;;  %571 = vmatprep.subr.mxu1 %v291_v13  ;;  %v258_v47 = vld [vmem:[%s2688_s1 + $0x6d0] sm:$0xff]  ;;  %v255_v49 = vld [vmem:[%s2688_s1 + $0x6b8] sm:$0xff] }
  0x68   :  { %501 = vmatpush2.msra.mxu0 %v162_v14  ;;  %572 = vmatpush2.msra.mxu1 %v290_v15  ;;  %v126_v50 = vld [vmem:[%s2688_s1 + $0x2b0] sm:$0xff]  ;;  %v123_v52 = vld [vmem:[%s2688_s1 + $0x298] sm:$0xff]  ;;  %v775_v14 = vld [vmem:[%s2690_s5 + $0xc8] sm:$0xff] }
  0x69   :  { %502 = vmatprep.subr.mxu0 %v159_v16  ;;  %573 = vmatprep.subr.mxu1 %v287_v17  ;;  %v254_v51 = vld [vmem:[%s2688_s1 + $0x6b0] sm:$0xff]  ;;  %v251_v53 = vld [vmem:[%s2688_s1 + $0x698] sm:$0xff]  ;;  %v774_v15 = vld [vmem:[%s2690_s5 + $0xc0] sm:$0xff] }
  0x6a   :  { %503 = vmatpush2.msra.mxu0 %v158_v18  ;;  %574 = vmatpush2.msra.mxu1 %v286_v19  ;;  %v122_v54 = vld [vmem:[%s2688_s1 + $0x290] sm:$0xff]  ;;  %v119_v57 = vld [vmem:[%s2688_s1 + $0x278] sm:$0xff]  ;;  %v771_v18 = vld [vmem:[%s2690_s5 + $0xa8] sm:$0xff] }
  0x6b   :  { %504 = vmatprep.subr.mxu0 %v155_v20  ;;  %575 = vmatprep.subr.mxu1 %v283_v21  ;;  %v250_v55 = vld [vmem:[%s2688_s1 + $0x690] sm:$0xff]  ;;  %v247_v58 = vld [vmem:[%s2688_s1 + $0x678] sm:$0xff]  ;;  %v770_v19 = vld [vmem:[%s2690_s5 + $0xa0] sm:$0xff] }
  0x6c   :  { %505 = vmatpush2.msra.mxu0 %v154_v22  ;;  %576 = vmatpush2.msra.mxu1 %v282_v23  ;;  %v118_v59 = vld [vmem:[%s2688_s1 + $0x270] sm:$0xff]  ;;  %v115_v62 = vld [vmem:[%s2688_s1 + $0x258] sm:$0xff]  ;;  %v767_v22 = vld [vmem:[%s2690_s5 + $0x88] sm:$0xff] }
  0x6d   :  { %506 = vmatprep.subr.mxu0 %v151_v24  ;;  %577 = vmatprep.subr.mxu1 %v279_v25  ;;  %v246_v60 = vld [vmem:[%s2688_s1 + $0x670] sm:$0xff]  ;;  %v243_v63 = vld [vmem:[%s2688_s1 + $0x658] sm:$0xff]  ;;  %v766_v23 = vld [vmem:[%s2690_s5 + $0x80] sm:$0xff] }
  0x6e   :  { %507 = vmatpush2.msra.mxu0 %v150_v26  ;;  %578 = vmatpush2.msra.mxu1 %v278_v27  ;;  %v114_v1 = vld [vmem:[%s2688_s1 + $0x250] sm:$0xff]  ;;  %v111_v4 = vld [vmem:[%s2688_s1 + $0x238] sm:$0xff]  ;;  %v763_v26 = vld [vmem:[%s2690_s5 + $0x68] sm:$0xff] }
  0x6f   :  { %508 = vmatprep.subr.mxu0 %v147_v28  ;;  %579 = vmatprep.subr.mxu1 %v275_v29  ;;  %v242_v2 = vld [vmem:[%s2688_s1 + $0x650] sm:$0xff]  ;;  %v239_v5 = vld [vmem:[%s2688_s1 + $0x638] sm:$0xff]  ;;  %v762_v27 = vld [vmem:[%s2690_s5 + $0x60] sm:$0xff] }
  0x70   :  { %509 = vmatpush2.msra.mxu0 %v146_v30  ;;  %580 = vmatpush2.msra.mxu1 %v274_v31  ;;  %v110_v6 = vld [vmem:[%s2688_s1 + $0x230] sm:$0xff]  ;;  %v107_v8 = vld [vmem:[%s2688_s1 + $0x218] sm:$0xff]  ;;  %v759_v30 = vld [vmem:[%s2690_s5 + $0x48] sm:$0xff] }
  0x71   :  { %510 = vmatprep.subr.mxu0 %v143_v32  ;;  %581 = vmatprep.subr.mxu1 %v271_v33  ;;  %v238_v7 = vld [vmem:[%s2688_s1 + $0x630] sm:$0xff]  ;;  %v235_v9 = vld [vmem:[%s2688_s1 + $0x618] sm:$0xff]  ;;  %v758_v31 = vld [vmem:[%s2690_s5 + $0x40] sm:$0xff] }
  0x72   :  { %511 = vmatpush2.msra.mxu0 %v142_v34  ;;  %582 = vmatpush2.msra.mxu1 %v270_v35  ;;  %v106_v10 = vld [vmem:[%s2688_s1 + $0x210] sm:$0xff]  ;;  %v781_v12 = vld [vmem:[%s2690_s5 + $0xf8] sm:$0xff]  ;;  %v755_v34 = vld [vmem:[%s2690_s5 + $0x28] sm:$0xff] }
  0x73   :  { %512 = vmatprep.subr.mxu0 %v139_v36  ;;  %583 = vmatprep.subr.mxu1 %v267_v37  ;;  %v234_v11 = vld [vmem:[%s2688_s1 + $0x610] sm:$0xff]  ;;  %v773_v16 = vld [vmem:[%s2690_s5 + $0xb8] sm:$0xff]  ;;  %v754_v35 = vld [vmem:[%s2690_s5 + $0x20] sm:$0xff] }
  0x74   :  { %513 = vmatpush2.msra.mxu0 %v138_v38  ;;  %584 = vmatpush2.msra.mxu1 %v266_v39  ;;  %v780_v13 = vld [vmem:[%s2690_s5 + $0xf0] sm:$0xff]  ;;  %v769_v20 = vld [vmem:[%s2690_s5 + $0x98] sm:$0xff]  ;;  %v751_v38 = vld [vmem:[%s2690_s5 + $0x8] sm:$0xff] }
  0x75   :  { %514 = vmatprep.subr.mxu0 %v135_v40  ;;  %585 = vmatprep.subr.mxu1 %v263_v41  ;;  %v772_v17 = vld [vmem:[%s2690_s5 + $0xb0] sm:$0xff]  ;;  %v765_v24 = vld [vmem:[%s2690_s5 + $0x78] sm:$0xff]  ;;  %v750_v39 = vld [vmem:[%s2690_s5] sm:$0xff] }
  0x76   :  { %515 = vmatpush2.msra.mxu0 %v134_v42  ;;  %586 = vmatpush2.msra.mxu1 %v262_v43  ;;  %v768_v21 = vld [vmem:[%s2690_s5 + $0x90] sm:$0xff]  ;;  %v761_v28 = vld [vmem:[%s2690_s5 + $0x58] sm:$0xff]  ;;  %v811_v42 = vld [vmem:[%s2690_s5 + $0x1e8] sm:$0xff] }
  0x77   :  { %516 = vmatprep.subr.mxu0 %v131_v44  ;;  %587 = vmatprep.subr.mxu1 %v259_v45  ;;  %v764_v25 = vld [vmem:[%s2690_s5 + $0x70] sm:$0xff]  ;;  %v757_v32 = vld [vmem:[%s2690_s5 + $0x38] sm:$0xff]  ;;  %v810_v43 = vld [vmem:[%s2690_s5 + $0x1e0] sm:$0xff] }
  0x78   :  { %517 = vmatpush2.msra.mxu0 %v130_v46  ;;  %588 = vmatpush2.msra.mxu1 %v258_v47  ;;  %v760_v29 = vld [vmem:[%s2690_s5 + $0x50] sm:$0xff]  ;;  %v753_v36 = vld [vmem:[%s2690_s5 + $0x18] sm:$0xff]  ;;  %v807_v46 = vld [vmem:[%s2690_s5 + $0x1c8] sm:$0xff] }
  0x79   :  { %518 = vmatprep.subr.mxu0 %v127_v48  ;;  %589 = vmatprep.subr.mxu1 %v255_v49  ;;  %v756_v33 = vld [vmem:[%s2690_s5 + $0x30] sm:$0xff]  ;;  %v813_v40 = vld [vmem:[%s2690_s5 + $0x1f8] sm:$0xff]  ;;  %v806_v47 = vld [vmem:[%s2690_s5 + $0x1c0] sm:$0xff] }
  0x7a   :  { %519 = vmatpush2.msra.mxu0 %v126_v50  ;;  %590 = vmatpush2.msra.mxu1 %v254_v51  ;;  %v752_v37 = vld [vmem:[%s2690_s5 + $0x10] sm:$0xff]  ;;  %v809_v44 = vld [vmem:[%s2690_s5 + $0x1d8] sm:$0xff]  ;;  %v803_v50 = vld [vmem:[%s2690_s5 + $0x1a8] sm:$0xff] }
  0x7b   :  { %520 = vmatprep.subr.mxu0 %v123_v52  ;;  %591 = vmatprep.subr.mxu1 %v251_v53  ;;  %v812_v41 = vld [vmem:[%s2690_s5 + $0x1f0] sm:$0xff]  ;;  %v805_v48 = vld [vmem:[%s2690_s5 + $0x1b8] sm:$0xff]  ;;  %v802_v51 = vld [vmem:[%s2690_s5 + $0x1a0] sm:$0xff] }
  0x7c   :  { %521 = vmatpush2.msra.mxu0 %v122_v54  ;;  %592 = vmatpush2.msra.mxu1 %v250_v55  ;;  %v808_v45 = vld [vmem:[%s2690_s5 + $0x1d0] sm:$0xff]  ;;  %v801_v52 = vld [vmem:[%s2690_s5 + $0x198] sm:$0xff]  ;;  %v799_v54 = vld [vmem:[%s2690_s5 + $0x188] sm:$0xff] }
  0x7d   :  { %522 = vmatprep.subr.mxu0 %v119_v57  ;;  %593 = vmatprep.subr.mxu1 %v247_v58  ;;  %v804_v49 = vld [vmem:[%s2690_s5 + $0x1b0] sm:$0xff]  ;;  %v798_v55 = vld [vmem:[%s2690_s5 + $0x180] sm:$0xff]  ;;  %v797_v57 = vld [vmem:[%s2690_s5 + $0x178] sm:$0xff] }
  0x7e   :  { %523 = vmatpush2.msra.mxu0 %v118_v59  ;;  %594 = vmatpush2.msra.mxu1 %v246_v60  ;;  %v800_v53 = vld [vmem:[%s2690_s5 + $0x190] sm:$0xff]  ;;  %v795_v59 = vld [vmem:[%s2690_s5 + $0x168] sm:$0xff]  ;;  %v794_v60 = vld [vmem:[%s2690_s5 + $0x160] sm:$0xff] }
  0x7f   :  { %524 = vmatprep.subr.mxu0 %v115_v62  ;;  %595 = vmatprep.subr.mxu1 %v243_v63  ;;  %v796_v58 = vld [vmem:[%s2690_s5 + $0x170] sm:$0xff]  ;;  %v793_v62 = vld [vmem:[%s2690_s5 + $0x158] sm:$0xff] }
  0x80   :  { %525 = vmatpush2.msra.mxu0 %v114_v1  ;;  %596 = vmatpush2.msra.mxu1 %v242_v2  ;;  %v792_v63 = vld [vmem:[%s2690_s5 + $0x150] sm:$0xff]  ;;  %v791_v1 = vld [vmem:[%s2690_s5 + $0x148] sm:$0xff]  ;;  %v790_v2 = vld [vmem:[%s2690_s5 + $0x140] sm:$0xff] }
  0x81   :  { %526 = vmatprep.subr.mxu0 %v111_v4  ;;  %597 = vmatprep.subr.mxu1 %v239_v5  ;;  %v789_v4 = vld [vmem:[%s2690_s5 + $0x138] sm:$0xff]  ;;  %v788_v5 = vld [vmem:[%s2690_s5 + $0x130] sm:$0xff] }
  0x82   :  { %527 = vmatpush2.msra.mxu0 %v110_v6  ;;  %598 = vmatpush2.msra.mxu1 %v238_v7  ;;  %v787_v6 = vld [vmem:[%s2690_s5 + $0x128] sm:$0xff]  ;;  %v786_v7 = vld [vmem:[%s2690_s5 + $0x120] sm:$0xff] }
  0x83   :  { %528 = vmatprep.subr.mxu0 %v107_v8  ;;  %599 = vmatprep.subr.mxu1 %v235_v9  ;;  %v785_v8 = vld [vmem:[%s2690_s5 + $0x118] sm:$0xff]  ;;  %v784_v9 = vld [vmem:[%s2690_s5 + $0x110] sm:$0xff] }
  0x84   :  { %529 = vmatpush2.msra.mxu0 %v106_v10  ;;  %530 = vmatprep.mubr.f32.mxu0 %v1718_v0  ;;  %v779_v0 = vld [vmem:[%s2690_s5 + $0xe8] sm:$0xff] }
  0x85   :  { %600 = vmatpush2.msra.mxu1 %v234_v11  ;;  %601 = vmatprep.mubr.f32.mxu1 %v1728_v3  ;;  %v776_v3 = vld [vmem:[%s2690_s5 + $0xd0] sm:$0xff]  ;;  %v783_v10 = vld [vmem:[%s2690_s5 + $0x108] sm:$0xff]  ;;  %v782_v11 = vld [vmem:[%s2690_s5 + $0x100] sm:$0xff] }
  0x86   :  { %531 = vmatmul.mubr.f32.vlgmr.msra.gmra.mxu0 %v1691_v56  ;;  %602 = vmatmul.mubr.f32.vlgmr.msra.gmra.mxu1 %v1708_v61  ;;  %v778_v56 = vld [vmem:[%s2690_s5 + $0xe0] sm:$0xff]  ;;  %v777_v61 = vld [vmem:[%s2690_s5 + $0xd8] sm:$0xff] }
  0x87   :  { %890 = vmatprep.subr.mxu0 %v781_v12  ;;  %v845_v12 = vld [vmem:[%s2690_s5 + $0x2f8] sm:$0xff] }
  0x88   :  { %891 = vmatpush1.msra.mxu0 %v780_v13  ;;  %961 = vmatprep.subr.mxu1 %v845_v12  ;;  %v844_v13 = vld [vmem:[%s2690_s5 + $0x2f0] sm:$0xff] }
  0x89   :  { %892 = vmatprep.subr.mxu0 %v779_v0  ;;  %962 = vmatpush1.msra.mxu1 %v844_v13  ;;  %v843_v0 = vld [vmem:[%s2690_s5 + $0x2e8] sm:$0xff]  ;;  %v850_v13 = vld [vmem:[%s2690_s5 + $0x320] sm:$0xff] }
  0x8a   :  { %893 = vmatpush1.msra.mxu0 %v778_v56  ;;  %963 = vmatprep.subr.mxu1 %v843_v0  ;;  %v842_v56 = vld [vmem:[%s2690_s5 + $0x2e0] sm:$0xff]  ;;  %v849_v0 = vld [vmem:[%s2690_s5 + $0x318] sm:$0xff] }
  0x8b   :  { %894 = vmatprep.subr.mxu0 %v777_v61  ;;  %964 = vmatpush1.msra.mxu1 %v842_v56  ;;  %v841_v61 = vld [vmem:[%s2690_s5 + $0x2d8] sm:$0xff] }
  0x8c   :  { %895 = vmatpush1.msra.mxu0 %v776_v3  ;;  %965 = vmatprep.subr.mxu1 %v841_v61  ;;  %v840_v3 = vld [vmem:[%s2690_s5 + $0x2d0] sm:$0xff] }
  0x8d   :  { %896 = vmatprep.subr.mxu0 %v775_v14  ;;  %966 = vmatpush1.msra.mxu1 %v840_v3  ;;  %v839_v14 = vld [vmem:[%s2690_s5 + $0x2c8] sm:$0xff]  ;;  %v848_v61 = vld [vmem:[%s2690_s5 + $0x310] sm:$0xff] }
  0x8e   :  { %897 = vmatpush1.msra.mxu0 %v774_v15  ;;  %967 = vmatprep.subr.mxu1 %v839_v14  ;;  %v838_v15 = vld [vmem:[%s2690_s5 + $0x2c0] sm:$0xff]  ;;  %v847_v14 = vld [vmem:[%s2690_s5 + $0x308] sm:$0xff] }
  0x8f   :  { %898 = vmatprep.subr.mxu0 %v773_v16  ;;  %968 = vmatpush1.msra.mxu1 %v838_v15  ;;  %v837_v16 = vld [vmem:[%s2690_s5 + $0x2b8] sm:$0xff] }
  0x90   :  { %899 = vmatpush1.msra.mxu0 %v772_v17  ;;  %969 = vmatprep.subr.mxu1 %v837_v16  ;;  %v836_v17 = vld [vmem:[%s2690_s5 + $0x2b0] sm:$0xff]  ;;  %v846_v16 = vld [vmem:[%s2690_s5 + $0x300] sm:$0xff] }
  0x91   :  { %900 = vmatprep.subr.mxu0 %v771_v18  ;;  %970 = vmatpush1.msra.mxu1 %v836_v17  ;;  %v835_v18 = vld [vmem:[%s2690_s5 + $0x2a8] sm:$0xff] }
  0x92   :  { %901 = vmatpush1.msra.mxu0 %v770_v19  ;;  %971 = vmatprep.subr.mxu1 %v835_v18  ;;  %v834_v19 = vld [vmem:[%s2690_s5 + $0x2a0] sm:$0xff] }
  0x93   :  { %902 = vmatprep.subr.mxu0 %v769_v20  ;;  %972 = vmatpush1.msra.mxu1 %v834_v19  ;;  %v833_v20 = vld [vmem:[%s2690_s5 + $0x298] sm:$0xff] }
  0x94   :  { %903 = vmatpush1.msra.mxu0 %v768_v21  ;;  %973 = vmatprep.subr.mxu1 %v833_v20  ;;  %v832_v21 = vld [vmem:[%s2690_s5 + $0x290] sm:$0xff] }
  0x95   :  { %904 = vmatprep.subr.mxu0 %v767_v22  ;;  %974 = vmatpush1.msra.mxu1 %v832_v21  ;;  %v831_v22 = vld [vmem:[%s2690_s5 + $0x288] sm:$0xff] }
  0x96   :  { %905 = vmatpush1.msra.mxu0 %v766_v23  ;;  %975 = vmatprep.subr.mxu1 %v831_v22  ;;  %v830_v23 = vld [vmem:[%s2690_s5 + $0x280] sm:$0xff] }
  0x97   :  { %906 = vmatprep.subr.mxu0 %v765_v24  ;;  %976 = vmatpush1.msra.mxu1 %v830_v23  ;;  %v829_v24 = vld [vmem:[%s2690_s5 + $0x278] sm:$0xff] }
  0x98   :  { %907 = vmatpush1.msra.mxu0 %v764_v25  ;;  %977 = vmatprep.subr.mxu1 %v829_v24  ;;  %v828_v25 = vld [vmem:[%s2690_s5 + $0x270] sm:$0xff] }
  0x99   :  { %908 = vmatprep.subr.mxu0 %v763_v26  ;;  %978 = vmatpush1.msra.mxu1 %v828_v25  ;;  %v827_v26 = vld [vmem:[%s2690_s5 + $0x268] sm:$0xff] }
  0x9a   :  { %909 = vmatpush1.msra.mxu0 %v762_v27  ;;  %979 = vmatprep.subr.mxu1 %v827_v26  ;;  %v826_v27 = vld [vmem:[%s2690_s5 + $0x260] sm:$0xff] }
  0x9b   :  { %910 = vmatprep.subr.mxu0 %v761_v28  ;;  %980 = vmatpush1.msra.mxu1 %v826_v27  ;;  %v825_v28 = vld [vmem:[%s2690_s5 + $0x258] sm:$0xff] }
  0x9c   :  { %911 = vmatpush1.msra.mxu0 %v760_v29  ;;  %981 = vmatprep.subr.mxu1 %v825_v28  ;;  %v824_v29 = vld [vmem:[%s2690_s5 + $0x250] sm:$0xff] }
  0x9d   :  { %912 = vmatprep.subr.mxu0 %v759_v30  ;;  %982 = vmatpush1.msra.mxu1 %v824_v29  ;;  %v823_v30 = vld [vmem:[%s2690_s5 + $0x248] sm:$0xff] }
  0x9e   :  { %913 = vmatpush1.msra.mxu0 %v758_v31  ;;  %983 = vmatprep.subr.mxu1 %v823_v30  ;;  %v822_v31 = vld [vmem:[%s2690_s5 + $0x240] sm:$0xff] }
  0x9f   :  { %914 = vmatprep.subr.mxu0 %v757_v32  ;;  %984 = vmatpush1.msra.mxu1 %v822_v31  ;;  %v821_v32 = vld [vmem:[%s2690_s5 + $0x238] sm:$0xff] }
  0xa0   :  { %915 = vmatpush1.msra.mxu0 %v756_v33  ;;  %985 = vmatprep.subr.mxu1 %v821_v32  ;;  %v820_v33 = vld [vmem:[%s2690_s5 + $0x230] sm:$0xff] }
  0xa1   :  { %916 = vmatprep.subr.mxu0 %v755_v34  ;;  %986 = vmatpush1.msra.mxu1 %v820_v33  ;;  %v819_v34 = vld [vmem:[%s2690_s5 + $0x228] sm:$0xff] }
  0xa2   :  { %917 = vmatpush1.msra.mxu0 %v754_v35  ;;  %987 = vmatprep.subr.mxu1 %v819_v34  ;;  %v818_v35 = vld [vmem:[%s2690_s5 + $0x220] sm:$0xff] }
  0xa3   :  { %918 = vmatprep.subr.mxu0 %v753_v36  ;;  %988 = vmatpush1.msra.mxu1 %v818_v35  ;;  %v817_v36 = vld [vmem:[%s2690_s5 + $0x218] sm:$0xff] }
  0xa4   :  { %919 = vmatpush1.msra.mxu0 %v752_v37  ;;  %989 = vmatprep.subr.mxu1 %v817_v36  ;;  %v816_v37 = vld [vmem:[%s2690_s5 + $0x210] sm:$0xff] }
  0xa5   :  { %920 = vmatprep.subr.mxu0 %v751_v38  ;;  %990 = vmatpush1.msra.mxu1 %v816_v37  ;;  %v815_v38 = vld [vmem:[%s2690_s5 + $0x208] sm:$0xff] }
  0xa6   :  { %921 = vmatpush1.msra.mxu0 %v750_v39  ;;  %991 = vmatprep.subr.mxu1 %v815_v38  ;;  %v814_v39 = vld [vmem:[%s2690_s5 + $0x200] sm:$0xff] }
  0xa7   :  { %922 = vmatprep.subr.mxu0 %v813_v40  ;;  %992 = vmatpush1.msra.mxu1 %v814_v39  ;;  %v877_v40 = vld [vmem:[%s2690_s5 + $0x3f8] sm:$0xff] }
  0xa8   :  { %923 = vmatpush2.msra.mxu0 %v812_v41  ;;  %993 = vmatprep.subr.mxu1 %v877_v40  ;;  %v876_v41 = vld [vmem:[%s2690_s5 + $0x3f0] sm:$0xff] }
  0xa9   :  { %924 = vmatprep.subr.mxu0 %v811_v42  ;;  %994 = vmatpush2.msra.mxu1 %v876_v41  ;;  %v875_v42 = vld [vmem:[%s2690_s5 + $0x3e8] sm:$0xff] }
  0xaa   :  { %925 = vmatpush2.msra.mxu0 %v810_v43  ;;  %995 = vmatprep.subr.mxu1 %v875_v42  ;;  %v874_v43 = vld [vmem:[%s2690_s5 + $0x3e0] sm:$0xff] }
  0xab   :  { %926 = vmatprep.subr.mxu0 %v809_v44  ;;  %996 = vmatpush2.msra.mxu1 %v874_v43  ;;  %v873_v44 = vld [vmem:[%s2690_s5 + $0x3d8] sm:$0xff] }
  0xac   :  { %927 = vmatpush2.msra.mxu0 %v808_v45  ;;  %997 = vmatprep.subr.mxu1 %v873_v44  ;;  %v872_v45 = vld [vmem:[%s2690_s5 + $0x3d0] sm:$0xff] }
  0xad   :  { %928 = vmatprep.subr.mxu0 %v807_v46  ;;  %998 = vmatpush2.msra.mxu1 %v872_v45  ;;  %v871_v46 = vld [vmem:[%s2690_s5 + $0x3c8] sm:$0xff] }
  0xae   :  { %929 = vmatpush2.msra.mxu0 %v806_v47  ;;  %999 = vmatprep.subr.mxu1 %v871_v46  ;;  %v870_v47 = vld [vmem:[%s2690_s5 + $0x3c0] sm:$0xff] }
  0xaf   :  { %930 = vmatprep.subr.mxu0 %v805_v48  ;;  %1000 = vmatpush2.msra.mxu1 %v870_v47  ;;  %v869_v48 = vld [vmem:[%s2690_s5 + $0x3b8] sm:$0xff] }
  0xb0   :  { %931 = vmatpush2.msra.mxu0 %v804_v49  ;;  %1001 = vmatprep.subr.mxu1 %v869_v48  ;;  %v868_v49 = vld [vmem:[%s2690_s5 + $0x3b0] sm:$0xff] }
  0xb1   :  { %932 = vmatprep.subr.mxu0 %v803_v50  ;;  %1002 = vmatpush2.msra.mxu1 %v868_v49  ;;  %v867_v50 = vld [vmem:[%s2690_s5 + $0x3a8] sm:$0xff] }
  0xb2   :  { %933 = vmatpush2.msra.mxu0 %v802_v51  ;;  %1003 = vmatprep.subr.mxu1 %v867_v50  ;;  %v866_v51 = vld [vmem:[%s2690_s5 + $0x3a0] sm:$0xff] }
  0xb3   :  { %934 = vmatprep.subr.mxu0 %v801_v52  ;;  %1004 = vmatpush2.msra.mxu1 %v866_v51  ;;  %v865_v52 = vld [vmem:[%s2690_s5 + $0x398] sm:$0xff] }
  0xb4   :  { %935 = vmatpush2.msra.mxu0 %v800_v53  ;;  %v298_v53 = vlaneseq  ;;  %1005 = vmatprep.subr.mxu1 %v865_v52 }
  0xb5   :  { %936 = vmatprep.subr.mxu0 %v799_v54  ;;  %v864_v54 = vld [vmem:[%s2690_s5 + $0x390] sm:$0xff] }
  0xb6   :  { %937 = vmatpush2.msra.mxu0 %v798_v55  ;;  %1006 = vmatpush2.msra.mxu1 %v864_v54  ;;  %v863_v55 = vld [vmem:[%s2690_s5 + $0x388] sm:$0xff] }
  0xb7   :  { %938 = vmatprep.subr.mxu0 %v797_v57  ;;  %1007 = vmatprep.subr.mxu1 %v863_v55  ;;  %v862_v57 = vld [vmem:[%s2690_s5 + $0x380] sm:$0xff] }
  0xb8   :  { %939 = vmatpush2.msra.mxu0 %v796_v58  ;;  %1008 = vmatpush2.msra.mxu1 %v862_v57  ;;  %v861_v58 = vld [vmem:[%s2690_s5 + $0x378] sm:$0xff] }
  0xb9   :  { %940 = vmatprep.subr.mxu0 %v795_v59  ;;  %v2461_v59 = vshrl.u32 %v298_v53, 7  ;;  %1009 = vmatprep.subr.mxu1 %v861_v58 }
  0xba   :  { %941 = vmatpush2.msra.mxu0 %v794_v60  ;;  %v860_v60 = vld [vmem:[%s2690_s5 + $0x370] sm:$0xff] }
  0xbb   :  { %942 = vmatprep.subr.mxu0 %v793_v62  ;;  %1010 = vmatpush2.msra.mxu1 %v860_v60  ;;  %v859_v62 = vld [vmem:[%s2690_s5 + $0x368] sm:$0xff] }
  0xbc   :  { %943 = vmatpush2.msra.mxu0 %v792_v63  ;;  %1011 = vmatprep.subr.mxu1 %v859_v62  ;;  %v858_v63 = vld [vmem:[%s2690_s5 + $0x360] sm:$0xff] }
  0xbd   :  { %944 = vmatprep.subr.mxu0 %v791_v1  ;;  %1012 = vmatpush2.msra.mxu1 %v858_v63  ;;  %v857_v1 = vld [vmem:[%s2690_s5 + $0x358] sm:$0xff] }
  0xbe   :  { %945 = vmatpush2.msra.mxu0 %v790_v2  ;;  %v2476_v2 = vsub.s32 0, %v2461_v59  ;;  %1013 = vmatprep.subr.mxu1 %v857_v1  ;;  %v2530_v1 = vld [vmem:[%s2692_s3] sm:$0xf] }
  0xbf   :  { %946 = vmatprep.subr.mxu0 %v789_v4  ;;  %v856_v4 = vld [vmem:[%s2690_s5 + $0x350] sm:$0xff] }
  0xc0   :  { %947 = vmatpush2.msra.mxu0 %v788_v5  ;;  %v2484_v5 = vld [vmem:[%s2691_s2] sm:$0xf]  ;;  %1014 = vmatpush2.msra.mxu1 %v856_v4  ;;  %v699_v4 = vrot.slane %v2530_v1, %v2476_v2 }
  0xc1   :  { %948 = vmatprep.subr.mxu0 %v787_v6  ;;  %v855_v6 = vld [vmem:[%s2690_s5 + $0x348] sm:$0xff]  ;;  %v301_v12 = vrot.slane %v2484_v5, %v2476_v2 }
  0xc2   :  { %949 = vmatpush2.msra.mxu0 %v786_v7  ;;  %v2490_v7 = vsub.s32 1, %v2461_v59  ;;  %1015 = vmatprep.subr.mxu1 %v855_v6  ;;  %v2537_v6 = vld [vmem:[%s2693_s4] sm:$0xf] }
  0xc3   :  { %950 = vmatprep.subr.mxu0 %v785_v8  ;;  %v854_v8 = vld [vmem:[%s2690_s5 + $0x340] sm:$0xff] }
  0xc4   :  { %951 = vmatpush2.msra.mxu0 %v784_v9  ;;  %1016 = vmatpush2.msra.mxu1 %v854_v8  ;;  %v853_v9 = vld [vmem:[%s2690_s5 + $0x338] sm:$0xff]  ;;  %v305_v56 = vrot.slane %v2484_v5, %v2490_v7 }
  0xc5   :  { %952 = vmatprep.subr.mxu0 %v783_v10  ;;  %v852_v10 = vld [vmem:[%s2690_s5 + $0x330] sm:$0xff]  ;;  %1017 = vmatprep.subr.mxu1 %v853_v9 }
  0xc6   :  { %953 = vmatpush2.msra.mxu0 %v782_v11  ;;  %v851_v11 = vld [vmem:[%s2690_s5 + $0x328] sm:$0xff]  ;;  %1018 = vmatpush2.msra.mxu1 %v852_v10  ;;  %v703_v10 = vrot.slane %v2530_v1, %v2490_v7 }
  0xc7   :  { %1019 = vmatprep.subr.mxu1 %v851_v11 }
  0xc8   :  { %1020 = vmatpush2.msra.mxu1 %v850_v13 }
  0xc9   :  { %1021 = vmatprep.subr.mxu1 %v849_v0 }
  0xca   :  { %1022 = vmatpush2.msra.mxu1 %v848_v61 }
  0xcb   :  { %1023 = vmatprep.subr.mxu1 %v847_v14 }
  0xcc   :  { %1024 = vmatpush2.msra.mxu1 %v846_v16  ;;  %v2549_v16 = vsub.s32 3, %v2461_v59 }
 0x103   :  { %v390_v3 = vpop.f32.mrf.mxu0 }
 0x104   :  { %v391_v15 = vadd.f32 %v390_v3, %v301_v12  ;;  %v725_v12 = vrot.slane %v2537_v6, %v2476_v2  ;;  %v2546_v3 = vsub.s32 2, %v2461_v59 }
 0x105   :  { %v461_v17 = vpop.f32.mrf.mxu1  ;;  %v392_v18 = vpop.f32.mrf.mxu0 }
 0x106   :  { %v462_v19 = vadd.f32 %v461_v17, %v391_v15  ;;  %v393_v20 = vadd.f32 %v392_v18, %v305_v56  ;;  %v729_v56 = vrot.slane %v2537_v6, %v2490_v7  ;;  %v309_v18 = vrot.slane %v2484_v5, %v2546_v3 }
 0x107   :  { %v463_v21 = vpop.f32.mrf.mxu1 }
 0x108   :  { %v609_v22 = vsel %vm608_vm0, %v462_v19, 0.0  ;;  %v464_v23 = vadd.f32 %v463_v21, %v393_v20  ;;  %v313_v20 = vrot.slane %v2484_v5, %v2549_v16 }
 0x109   :  { %v610_v24 = vrot.slane %v609_v22, 4 }
 0x10a   :  { %v616_v25 = vsel %vm608_vm0, %v464_v23, 0.0 }
 0x10b   :  { %v611_v26 = vadd.f32 %v610_v24, %v609_v22  ;;  %v617_v27 = vrot.slane %v616_v25, 4 }
 0x10d   :  { %v612_v28 = vrot.slane %v611_v26, 2  ;;  %v618_v29 = vadd.f32 %v617_v27, %v616_v25 }
 0x10f   :  { %v613_v30 = vadd.f32 %v612_v28, %v611_v26  ;;  %v619_v31 = vrot.slane %v618_v29, 2 }
 0x111   :  { %v614_v32 = vrot.slane %v613_v30, 1  ;;  %v620_v33 = vadd.f32 %v619_v31, %v618_v29 }
 0x113   :  { %v615_v34 = vadd.f32 %v614_v32, %v613_v30  ;;  %v621_v35 = vrot.slane %v620_v33, 1 }
 0x115   :  { %v638_v36 = vmul.f32 0.25, %v615_v34  ;;  %v622_v37 = vadd.f32 %v621_v35, %v620_v33 }
 0x117   :  { %v642_v38 = vsub.f32 %v462_v19, %v638_v36  ;;  %v639_v39 = vmul.f32 0.25, %v622_v37 }
 0x119   :  { %v646_v40 = vmul.f32 %v642_v38, %v642_v38  ;;  %v643_v41 = vsub.f32 %v464_v23, %v639_v39 }
 0x11b   :  { %v650_v42 = vsel %vm608_vm0, %v646_v40, 0.0  ;;  %v647_v43 = vmul.f32 %v643_v41, %v643_v41 }
 0x11c   :  { %v651_v44 = vrot.slane %v650_v42, 4 }
 0x11d   :  { %v657_v45 = vsel %vm608_vm0, %v647_v43, 0.0 }
 0x11e   :  { %v652_v46 = vadd.f32 %v651_v44, %v650_v42  ;;  %v658_v47 = vrot.slane %v657_v45, 4 }
 0x120   :  { %v653_v48 = vrot.slane %v652_v46, 2  ;;  %v659_v49 = vadd.f32 %v658_v47, %v657_v45 }
 0x122   :  { %v654_v50 = vadd.f32 %v653_v48, %v652_v46  ;;  %v660_v51 = vrot.slane %v659_v49, 2 }
 0x124   :  { %v655_v52 = vrot.slane %v654_v50, 1  ;;  %v661_v53 = vadd.f32 %v660_v51, %v659_v49 }
 0x126   :  { %v656_v54 = vadd.f32 %v655_v52, %v654_v50  ;;  %v662_v55 = vrot.slane %v661_v53, 1 }
 0x128   :  { %v678_v57 = vmul.f32 0.25, %v656_v54  ;;  %v663_v58 = vadd.f32 %v662_v55, %v661_v53 }
 0x12a   :  { %v682_v60 = vadd.f32 1e-05, %v678_v57  ;;  %v679_v62 = vmul.f32 0.25, %v663_v58 }
 0x12c   :  { %1256 = vrsqrt.f32 %v682_v60  ;;  %v683_v63 = vadd.f32 1e-05, %v679_v62 }
 0x12e   :  { %1258 = vrsqrt.f32 %v683_v63 }
 0x139   :  { %v1257_v8 = vpop.eup %1256 }
 0x13a   :  { %v690_v9 = vmul.f32 %v1257_v8, %v642_v38 }
 0x13b   :  { %v1259_v11 = vpop.eup %1258 }
 0x13c   :  { %v716_v13 = vmul.f32 %v699_v4, %v690_v9  ;;  %v691_v0 = vmul.f32 %v1259_v11, %v643_v41  ;;  %v707_v11 = vrot.slane %v2530_v1, %v2546_v3 }
 0x13e   :  { %v717_v61 = vmul.f32 %v703_v10, %v691_v0  ;;  %v742_v14 = vadd.f32 %v725_v12, %v716_v13  ;;  %v711_v0 = vrot.slane %v2530_v1, %v2549_v16  ;;  %v1135_v1 = vld [vmem:[%s2694_s9 + $0xf8] sm:$0xff] }
 0x13f   :  { %1219 = vmatprep.subr.mxu0 %v1135_v1 }
 0x140   :  { %v743_v15 = vadd.f32 %v729_v56, %v717_v61  ;;  %v746_v19 = vmax.f32 %v742_v14, 0.0  ;;  %v733_v61 = vrot.slane %v2537_v6, %v2546_v3  ;;  %v1119_v3 = vld [vmem:[%s2694_s9 + $0x78] sm:$0xff] }
 0x142   :  { %v747_v17 = vmax.f32 %v743_v15, 0.0 }
 0x144   :  { %954 = vmatprep.mubr.f32.mxu0 %v747_v17  ;;  %v737_v17 = vrot.slane %v2537_v6, %v2549_v16  ;;  %v1134_v6 = vld [vmem:[%s2694_s9 + $0xf0] sm:$0xff] }
 0x145   :  { %955 = vmatmul.mubr.f32.vlgmr.msra.gmra.mxu0 %v746_v19  ;;  %v1118_v16 = vld [vmem:[%s2694_s9 + $0x70] sm:$0xff] }
 0x146   :  { %v532_v21 = vpop.f32.mrf.mxu0  ;;  %v603_v22 = vpop.f32.mrf.mxu1  ;;  %1220 = vmatpush3.msra.mxu0 %v1119_v3 }
 0x147   :  { %v533_v23 = vadd.f32 %v532_v21, %v309_v18  ;;  %1221 = vmatprep.subr.mxu0 %v1134_v6 }
 0x148   :  { %v534_v24 = vpop.f32.mrf.mxu0  ;;  %v605_v27 = vpop.f32.mrf.mxu1  ;;  %1222 = vmatpush3.msra.mxu0 %v1118_v16 }
 0x149   :  { %v604_v25 = vadd.f32 %v603_v22, %v533_v23  ;;  %v535_v26 = vadd.f32 %v534_v24, %v313_v20  ;;  %v1133_v23 = vld [vmem:[%s2694_s9 + $0xe8] sm:$0xff] }
 0x14a   :  { %1223 = vmatprep.subr.mxu0 %v1133_v23  ;;  %v1117_v24 = vld [vmem:[%s2694_s9 + $0x68] sm:$0xff] }
 0x14b   :  { %v623_v59 = vsel %vm608_vm0, %v604_v25, 0.0  ;;  %v606_v28 = vadd.f32 %v605_v27, %v535_v26  ;;  %1224 = vmatpush3.msra.mxu0 %v1117_v24  ;;  %v1116_v26 = vld [vmem:[%s2694_s9 + $0x60] sm:$0xff]  ;;  %v1131_v27 = vld [vmem:[%s2694_s9 + $0xd8] sm:$0xff] }
 0x14c   :  { %v624_v29 = vrot.slane %v623_v59, 4 }
 0x14d   :  { %v630_v30 = vsel %vm608_vm0, %v606_v28, 0.0 }
 0x14e   :  { %v625_v31 = vadd.f32 %v624_v29, %v623_v59  ;;  %v631_v32 = vrot.slane %v630_v30, 4  ;;  %v1115_v59 = vld [vmem:[%s2694_s9 + $0x58] sm:$0xff]  ;;  %v1114_v29 = vld [vmem:[%s2694_s9 + $0x50] sm:$0xff] }
 0x150   :  { %v626_v33 = vrot.slane %v625_v31, 2  ;;  %v632_v34 = vadd.f32 %v631_v32, %v630_v30  ;;  %v1129_v30 = vld [vmem:[%s2694_s9 + $0xc8] sm:$0xff]  ;;  %v1128_v32 = vld [vmem:[%s2694_s9 + $0xc0] sm:$0xff] }
 0x152   :  { %v627_v35 = vadd.f32 %v626_v33, %v625_v31  ;;  %v633_v5 = vrot.slane %v632_v34, 2  ;;  %v1113_v31 = vld [vmem:[%s2694_s9 + $0x48] sm:$0xff]  ;;  %v1112_v33 = vld [vmem:[%s2694_s9 + $0x40] sm:$0xff] }
 0x154   :  { %v628_v36 = vrot.slane %v627_v35, 1  ;;  %v634_v37 = vadd.f32 %v633_v5, %v632_v34  ;;  %v1127_v34 = vld [vmem:[%s2694_s9 + $0xb8] sm:$0xff]  ;;  %v1126_v5 = vld [vmem:[%s2694_s9 + $0xb0] sm:$0xff] }
 0x156   :  { %v629_v38 = vadd.f32 %v628_v36, %v627_v35  ;;  %v635_v39 = vrot.slane %v634_v37, 1  ;;  %v1111_v35 = vld [vmem:[%s2694_s9 + $0x38] sm:$0xff]  ;;  %v1110_v36 = vld [vmem:[%s2694_s9 + $0x30] sm:$0xff] }
 0x158   :  { %v640_v40 = vmul.f32 0.25, %v629_v38  ;;  %v636_v41 = vadd.f32 %v635_v39, %v634_v37  ;;  %v1125_v37 = vld [vmem:[%s2694_s9 + $0xa8] sm:$0xff]  ;;  %v1124_v39 = vld [vmem:[%s2694_s9 + $0xa0] sm:$0xff] }
 0x159   :  { %v1109_v38 = vld [vmem:[%s2694_s9 + $0x28] sm:$0xff] }
 0x15a   :  { %v644_v42 = vsub.f32 %v604_v25, %v640_v40  ;;  %v641_v43 = vmul.f32 0.25, %v636_v41  ;;  %v1132_v25 = vld [vmem:[%s2694_s9 + $0xe0] sm:$0xff]  ;;  %v1123_v41 = vld [vmem:[%s2694_s9 + $0x98] sm:$0xff] }
 0x15b   :  { %1225 = vmatprep.subr.mxu0 %v1132_v25  ;;  %v1108_v40 = vld [vmem:[%s2694_s9 + $0x20] sm:$0xff] }
 0x15c   :  { %v648_v44 = vmul.f32 %v644_v42, %v644_v42  ;;  %v645_v45 = vsub.f32 %v606_v28, %v641_v43  ;;  %1226 = vmatpush3.msra.mxu0 %v1116_v26  ;;  %v1130_v28 = vld [vmem:[%s2694_s9 + $0xd0] sm:$0xff] }
 0x15d   :  { %1227 = vmatprep.subr.mxu0 %v1131_v27  ;;  %v1122_v43 = vld [vmem:[%s2694_s9 + $0x90] sm:$0xff] }
 0x15e   :  { %v664_v46 = vsel %vm608_vm0, %v648_v44, 0.0  ;;  %v649_v47 = vmul.f32 %v645_v45, %v645_v45  ;;  %1228 = vmatpush3.msra.mxu0 %v1115_v59  ;;  %v1106_v44 = vld [vmem:[%s2694_s9 + $0x10] sm:$0xff] }
 0x15f   :  { %v665_v48 = vrot.slane %v664_v46, 4  ;;  %1229 = vmatprep.subr.mxu0 %v1130_v28 }
 0x160   :  { %v671_v49 = vsel %vm608_vm0, %v649_v47, 0.0  ;;  %1230 = vmatpush3.msra.mxu0 %v1114_v29  ;;  %v1120_v47 = vld [vmem:[%s2694_s9 + $0x80] sm:$0xff] }
 0x161   :  { %v666_v50 = vadd.f32 %v665_v48, %v664_v46  ;;  %v672_v51 = vrot.slane %v671_v49, 4  ;;  %1231 = vmatprep.subr.mxu0 %v1129_v30  ;;  %v1105_v46 = vld [vmem:[%s2694_s9 + $0x8] sm:$0xff]  ;;  %v1104_v48 = vld [vmem:[%s2694_s9] sm:$0xff] }
 0x162   :  { %1232 = vmatpush3.msra.mxu0 %v1113_v31 }
 0x163   :  { %v667_v52 = vrot.slane %v666_v50, 2  ;;  %v673_v53 = vadd.f32 %v672_v51, %v671_v49  ;;  %1233 = vmatprep.subr.mxu0 %v1128_v32  ;;  %v878_v49 = vld [vmem:[%s2695_s6] sm:$0x3] }
 0x164   :  { %1234 = vmatpush3.msra.mxu0 %v1112_v33  ;;  %v883_v51 = vrot.slane %v878_v49, %v2476_v2 }
 0x165   :  { %v668_v54 = vadd.f32 %v667_v52, %v666_v50  ;;  %v674_v55 = vrot.slane %v673_v53, 2  ;;  %1235 = vmatprep.subr.mxu0 %v1127_v34  ;;  %v887_v52 = vrot.slane %v878_v49, %v2490_v7 }
 0x166   :  { %1236 = vmatpush3.msra.mxu0 %v1111_v35 }
 0x167   :  { %v669_v57 = vrot.slane %v668_v54, 1  ;;  %v675_v58 = vadd.f32 %v674_v55, %v673_v53  ;;  %1237 = vmatprep.subr.mxu0 %v1126_v5 }
 0x168   :  { %1238 = vmatpush3.msra.mxu0 %v1110_v36  ;;  %v1074_v36 = vld [vmem:[%s2696_s7] sm:$0x3] }
 0x169   :  { %v670_v60 = vadd.f32 %v669_v57, %v668_v54  ;;  %v676_v62 = vrot.slane %v675_v58, 1  ;;  %1239 = vmatprep.subr.mxu0 %v1125_v37  ;;  %v1079_v37 = vrot.slane %v1074_v36, %v2476_v2 }
 0x16a   :  { %1240 = vmatpush3.msra.mxu0 %v1109_v38  ;;  %v1088_v38 = vld [vmem:[%s2697_s8] sm:$0x3] }
 0x16b   :  { %v680_v63 = vmul.f32 0.25, %v670_v60  ;;  %v677_v4 = vadd.f32 %v676_v62, %v675_v58  ;;  %1241 = vmatprep.subr.mxu0 %v1124_v39 }
 0x16c   :  { %1242 = vmatpush3.msra.mxu0 %v1108_v40 }
 0x16d   :  { %v684_v8 = vadd.f32 1e-05, %v680_v63  ;;  %v681_v9 = vmul.f32 0.25, %v677_v4  ;;  %1243 = vmatprep.subr.mxu0 %v1123_v41  ;;  %v1083_v41 = vrot.slane %v1074_v36, %v2490_v7 }
 0x16f   :  { %1260 = vrsqrt.f32 %v684_v8  ;;  %v685_v10 = vadd.f32 1e-05, %v681_v9 }
 0x171   :  { %1262 = vrsqrt.f32 %v685_v10 }
 0x17c   :  { %v1261_v12 = vpop.eup %1260 }
 0x17d   :  { %v692_v13 = vmul.f32 %v1261_v12, %v644_v42  ;;  %v1107_v42 = vld [vmem:[%s2694_s9 + $0x18] sm:$0xff] }
 0x17e   :  { %v1263_v56 = vpop.eup %1262  ;;  %1244 = vmatpush3.msra.mxu0 %v1107_v42 }
 0x17f   :  { %v718_v14 = vmul.f32 %v707_v11, %v692_v13  ;;  %v693_v15 = vmul.f32 %v1263_v56, %v645_v45  ;;  %v1121_v45 = vld [vmem:[%s2694_s9 + $0x88] sm:$0xff]  ;;  %1245 = vmatprep.subr.mxu0 %v1122_v43  ;;  %v1093_v43 = vrot.slane %v1088_v38, %v2476_v2 }
 0x180   :  { %1246 = vmatpush3.msra.mxu0 %v1106_v44 }
 0x181   :  { %v719_v18 = vmul.f32 %v711_v0, %v693_v15  ;;  %v744_v19 = vadd.f32 %v733_v61, %v718_v14  ;;  %1247 = vmatprep.subr.mxu0 %v1121_v45 }
 0x182   :  { %1248 = vmatpush3.msra.mxu0 %v1105_v46  ;;  %v1097_v46 = vrot.slane %v1088_v38, %v2490_v7 }
 0x183   :  { %v745_v20 = vadd.f32 %v737_v17, %v719_v18  ;;  %v748_v22 = vmax.f32 %v744_v19, 0.0  ;;  %1249 = vmatprep.subr.mxu0 %v1120_v47 }
 0x184   :  { %1250 = vmatpush3.msra.mxu0 %v1104_v48 }
 0x185   :  { %v749_v21 = vmax.f32 %v745_v20, 0.0 }
 0x187   :  { %1025 = vmatprep.mubr.f32.mxu1 %v749_v21 }
 0x188   :  { %1026 = vmatmul.mubr.f32.vlgmr.msra.gmra.mxu1 %v748_v22 }
 0x205   :  { %v956_v50 = vpop.f32.mrf.mxu0 }
 0x206   :  { %v957_v54 = vadd.f32 %v956_v50, %v883_v51 }
 0x207   :  { %v958_v53 = vpop.f32.mrf.mxu0 }
 0x208   :  { %v959_v57 = vadd.f32 %v958_v53, %v887_v52  ;;  %v1218_v53 = vld [vmem:[%s2698_s10] ss:$0 sm:$0xff] }
 0x248   :  { %v1027_v55 = vpop.f32.mrf.mxu1 }
 0x249   :  { %v1028_v58 = vadd.f32 %v1027_v55, %v957_v54 }
 0x24a   :  { %v1029_v60 = vpop.f32.mrf.mxu1 }
 0x24b   :  { %v1032_v62 = vsel %vm608_vm0, %v1028_v58, 0.0  ;;  %v1030_v63 = vadd.f32 %v1029_v60, %v959_v57 }
 0x24c   :  { %v1033_v4 = vrot.slane %v1032_v62, 4 }
 0x24d   :  { %v1039_v8 = vsel %vm608_vm0, %v1030_v63, 0.0 }
 0x24e   :  { %v1034_v9 = vadd.f32 %v1033_v4, %v1032_v62  ;;  %v1040_v10 = vrot.slane %v1039_v8, 4 }
 0x250   :  { %v1035_v11 = vrot.slane %v1034_v9, 2  ;;  %v1041_v12 = vadd.f32 %v1040_v10, %v1039_v8 }
 0x252   :  { %v1036_v13 = vadd.f32 %v1035_v11, %v1034_v9  ;;  %v1042_v0 = vrot.slane %v1041_v12, 2 }
 0x254   :  { %v1037_v56 = vrot.slane %v1036_v13, 1  ;;  %v1043_v61 = vadd.f32 %v1042_v0, %v1041_v12 }
 0x256   :  { %v1038_v14 = vadd.f32 %v1037_v56, %v1036_v13  ;;  %v1044_v15 = vrot.slane %v1043_v61, 1 }
 0x258   :  { %v1046_v17 = vmul.f32 0.25, %v1038_v14  ;;  %v1045_v18 = vadd.f32 %v1044_v15, %v1043_v61 }
 0x25a   :  { %v1048_v19 = vsub.f32 %v1028_v58, %v1046_v17  ;;  %v1047_v20 = vmul.f32 0.25, %v1045_v18 }
 0x25c   :  { %v1050_v21 = vmul.f32 %v1048_v19, %v1048_v19  ;;  %v1049_v22 = vsub.f32 %v1030_v63, %v1047_v20 }
 0x25e   :  { %v1052_v1 = vsel %vm608_vm0, %v1050_v21, 0.0  ;;  %v1051_v3 = vmul.f32 %v1049_v22, %v1049_v22 }
 0x25f   :  { %v1053_v6 = vrot.slane %v1052_v1, 4 }
 0x260   :  { %v1059_v16 = vsel %vm608_vm0, %v1051_v3, 0.0 }
 0x261   :  { %v1054_v23 = vadd.f32 %v1053_v6, %v1052_v1  ;;  %v1060_v24 = vrot.slane %v1059_v16, 4 }
 0x263   :  { %v1055_v25 = vrot.slane %v1054_v23, 2  ;;  %v1061_v26 = vadd.f32 %v1060_v24, %v1059_v16 }
 0x265   :  { %v1056_v27 = vadd.f32 %v1055_v25, %v1054_v23  ;;  %v1062_v59 = vrot.slane %v1061_v26, 2 }
 0x267   :  { %v1057_v28 = vrot.slane %v1056_v27, 1  ;;  %v1063_v29 = vadd.f32 %v1062_v59, %v1061_v26 }
 0x269   :  { %v1058_v30 = vadd.f32 %v1057_v28, %v1056_v27  ;;  %v1064_v31 = vrot.slane %v1063_v29, 1 }
 0x26b   :  { %v1066_v32 = vmul.f32 0.25, %v1058_v30  ;;  %v1065_v33 = vadd.f32 %v1064_v31, %v1063_v29 }
 0x26d   :  { %v1068_v34 = vadd.f32 1e-05, %v1066_v32  ;;  %v1067_v35 = vmul.f32 0.25, %v1065_v33 }
 0x26f   :  { %1264 = vrsqrt.f32 %v1068_v34  ;;  %v1069_v5 = vadd.f32 1e-05, %v1067_v35 }
 0x271   :  { %1266 = vrsqrt.f32 %v1069_v5 }
 0x27c   :  { %v1265_v39 = vpop.eup %1264 }
 0x27d   :  { %v1072_v40 = vmul.f32 %v1265_v39, %v1048_v19 }
 0x27e   :  { %v1267_v42 = vpop.eup %1266 }
 0x27f   :  { %v1086_v44 = vmul.f32 %v1079_v37, %v1072_v40  ;;  %v1073_v45 = vmul.f32 %v1267_v42, %v1049_v22 }
 0x281   :  { %v1087_v47 = vmul.f32 %v1083_v41, %v1073_v45  ;;  %v1100_v48 = vadd.f32 %v1093_v43, %v1086_v44 }
 0x283   :  { %v1101_v49 = vadd.f32 %v1097_v46, %v1087_v47  ;;  %v1102_v51 = vmax.f32 %v1100_v48, 0.0 }
 0x285   :  { %v1103_v50 = vmax.f32 %v1101_v49, 0.0 }
 0x287   :  { %1207 = vmatprep.mubr.f32.mxu0 %v1103_v50 }
 0x288   :  { %1208 = vmatmul.mubr.f32.vlgmr.msra.gmra.mxu0 %v1102_v51 }
 0x348   :  { %v1251_v52 = vpop.f32.mrf.mxu0 }
 0x34a   :  { %v1252_v54 = vpop.f32.mrf.mxu0 }
 0x34b   :  { %v1253_v55 = vadd.f32 %v1252_v54, %v1251_v52 }
 0x34d   :  { %v1210_v57 = vadd.f32 %v1253_v55, %v1218_v53 }
 0x34f   :  { %1213 = vst [vmem:[%s2699_s11] sm:$0xf] %v1210_v57 }

</bundles_post_ra>
